<compile_context>
chip_gen: v7x
topology: tpu7x:2x2x1
jax: 0.10.0
libtpu: 0.0.40
codegen_flags: <defaults>
</compile_context>

<pallas_src>
import functools
import math

import jax
import jax.numpy as jnp
import numpy as np
from jax import lax
from jax.experimental import pallas as pl
from jax.experimental.pallas import tpu as pltpu

D_LATENT = 40
D_PHI = 2 * D_LATENT            # 80
D_OUT = 2 * D_PHI               # 160
HALF_LOG_2PI = 0.5 * math.log(2.0 * math.pi)

_P = 28                         # rows per sample inside the kernel (input height)
_N1 = 26 * 32                   # conv1 output lane width (w-block * 32ch)  = 832
_K2 = 25 * 32                   # conv2 input lane width after pool1        = 800
_N2 = 11 * 16                   # conv2 output lane width (w-block * 16ch)  = 176
_K3 = 10 * 16                   # fc3 input lane width after pool2          = 160


# --------------------------------------------------------------------------
# Kernel
# --------------------------------------------------------------------------
def _r_forward_kernel(sample_phi, tb,
                      x_ref, m1_ref, b1_ref, m2_ref, b2_ref, m3_ref, b3_ref,
                      z_ref, phi_ref, score_ref):
    f32 = jnp.float32
    bf16 = jnp.bfloat16
    R = tb * _P                                             # rows in this batch tile

    x = x_ref[...]                                          # (R, 28) f32

    # ---- conv1 (1->32, 3x3 valid) : 3 banded matmuls, K=28, N=832 ----------
    n1 = R - 2
    y1 = jnp.dot(x[0:n1, :].astype(bf16), m1_ref[0], preferred_element_type=f32)
    y1 = y1 + jnp.dot(x[1:n1 + 1, :].astype(bf16), m1_ref[1],
                      preferred_element_type=f32)
    y1 = y1 + jnp.dot(x[2:n1 + 2, :].astype(bf16), m1_ref[2],
                      preferred_element_type=f32)
    y1 = jnp.maximum(y1 + b1_ref[...], 0.0)                 # (R-2, 832), row t -> conv row i=t

    # ---- 2x2 max-pool #1 : shifted maxima (rows then 32-lane blocks) -------
    h1 = jnp.maximum(y1[0:R - 3, :], y1[1:R - 2, :])        # pool H     (R-3, 832)
    p1 = jnp.maximum(h1[:, 0:_K2], h1[:, 32:32 + _K2])      # pool W     (R-3, 800)
    p1 = p1.astype(bf16)                                    # valid at even rows / even w-blocks

    # ---- conv2 (32->16, 3x3 valid) : 3 banded matmuls, K=800, N=176 --------
    n2 = R - 7
    y2 = jnp.dot(p1[0:n2, :], m2_ref[0], preferred_element_type=f32)
    y2 = y2 + jnp.dot(p1[2:n2 + 2, :], m2_ref[1], preferred_element_type=f32)
    y2 = y2 + jnp.dot(p1[4:n2 + 4, :], m2_ref[2], preferred_element_type=f32)
    y2 = jnp.maximum(y2 + b2_ref[...], 0.0)                 # (R-7, 176), valid at t = 2*o_i

    # ---- 2x2 max-pool #2 (floor mode: row/col 10 dropped by the weights) ---
    h2 = jnp.maximum(y2[0:R - 9, :], y2[2:R - 7, :])        # pool H     (R-9, 176)
    p2 = jnp.maximum(h2[:, 0:_K3], h2[:, 16:16 + _K3])      # pool W     (R-9, 160)
    p2 = p2.astype(bf16)                                    # valid at t = 4*h / even o_j-blocks

    # ---- fc3 (400 -> 160) : 5 banded matmuls, K=160, N=160 -----------------
    n3 = R - 25
    g3 = jnp.dot(p2[0:n3, :], m3_ref[0], preferred_element_type=f32)
    for h in range(1, 5):
        g3 = g3 + jnp.dot(p2[4 * h:4 * h + n3, :], m3_ref[h],
                          preferred_element_type=f32)
    logits = g3 + b3_ref[...]                               # (R-25, 160); sample b at row 28*b

    # ---- Normal(mu, softplus(s)) epilogue (f32) ----------------------------
    mu_full = logits[:, :D_PHI]
    pre = logits[:, D_PHI:]
    sigma_full = jnp.maximum(pre, 0.0) + jnp.log(1.0 + jnp.exp(-jnp.abs(pre)))
    logsig_full = jnp.log(sigma_full)

    z = z_ref[...]                                          # (tb, 80)
    for b in range(tb):                                     # static unroll; tb is small
        r = _P * b
        mu = mu_full[r:r + 1, :]
        sigma = sigma_full[r:r + 1, :]
        logsig = logsig_full[r:r + 1, :]
        zb = z[b:b + 1, :]
        if sample_phi:
            phi = mu + sigma * zb                           # reparameterized sample
        else:
            phi = zb
        d = (phi - mu) / sigma
        score = -0.5 * d * d - logsig - HALF_LOG_2PI
        phi_ref[b:b + 1, :] = phi
        score_ref[b:b + 1, :] = score


# --------------------------------------------------------------------------
# Wrapper: banded weight construction (plain JAX, runs once per call)
# --------------------------------------------------------------------------
def _prep_banded_weights(params):
    w1, b1, w2, b2, w3, b3 = params
    f32 = jnp.float32
    bf16 = jnp.bfloat16

    # conv1:  M1[dy][wi, j*32+oc] = w1[oc, 0, dy, wi-j]  for wi-j in {0,1,2}
    w1p = jnp.transpose(w1[:, 0, :, :], (1, 2, 0)).astype(f32)          # (3,3,32) [dy,dx,oc]
    wi = np.arange(28)[:, None]
    jj = np.arange(26)[None, :]
    dx1 = wi - jj
    v1 = ((dx1 >= 0) & (dx1 <= 2)).astype(np.float32)                   # (28,26)
    m1 = w1p[:, np.clip(dx1, 0, 2), :] * v1[None, :, :, None]           # (3,28,26,32)
    m1 = m1.reshape(3, 28, _N1).astype(bf16)
    b1r = jnp.tile(b1.astype(f32), 26).reshape(1, _N1)

    # conv2 (input = pool1 output living at even 32-lane blocks):
    #   M2[dy][j*32+ic, oj*16+oc] = w2[oc, ic, dy, dx]  iff  j == 2*(oj+dx)
    w2p = jnp.transpose(w2, (2, 3, 1, 0)).astype(f32)                   # (3,3,32,16) [dy,dx,ic,oc]
    jb = np.arange(25)[:, None]
    oj = np.arange(11)[None, :]
    dx2 = jb // 2 - oj
    v2 = ((jb % 2 == 0) & (dx2 >= 0) & (dx2 <= 2)).astype(np.float32)   # (25,11)
    m2 = w2p[:, np.clip(dx2, 0, 2), :, :]                               # (3,25,11,32,16)
    m2 = jnp.transpose(m2, (0, 1, 3, 2, 4)) * v2[None, :, None, :, None]
    m2 = m2.reshape(3, _K2, _N2).astype(bf16)
    b2r = jnp.tile(b2.astype(f32), 11).reshape(1, _N2)

    # fc3 (input = pool2 output living at even 16-lane blocks, NCHW flatten):
    #   M3[h][oj*16+ic, n] = w3[n, ic*25 + h*5 + w]  iff  oj == 2*w
    w3p = jnp.transpose(w3.reshape(D_OUT, 16, 5, 5), (2, 3, 1, 0)).astype(f32)  # (5,5,16,160)
    oj3 = np.arange(10)
    v3 = (oj3 % 2 == 0).astype(np.float32)
    m3 = w3p[:, np.clip(oj3 // 2, 0, 4), :, :] * v3[None, :, None, None]        # (5,10,16,160)
    m3 = m3.reshape(5, _K3, D_OUT).astype(bf16)
    b3r = b3.astype(f32).reshape(1, D_OUT)

    return m1, b1r, m2, b2r, m3, b3r


@functools.partial(jax.jit, static_argnames=("sample_phi", "tb"))
def _r_pallas_call(x2d, m1, b1r, m2, b2r, m3, b3r, z, *, sample_phi, tb):
    bp = x2d.shape[0] // _P
    grid = (bp // tb,)
    kern = functools.partial(_r_forward_kernel, sample_phi, tb)

    in_specs = [
        pl.BlockSpec((tb * _P, 28), lambda i: (i, 0)),       # x rows (batch-tiled)
        pl.BlockSpec((3, 28, _N1), lambda i: (0, 0, 0)),     # conv1 banded weights
        pl.BlockSpec((1, _N1), lambda i: (0, 0)),            # conv1 bias (tiled per w-block)
        pl.BlockSpec((3, _K2, _N2), lambda i: (0, 0, 0)),    # conv2 banded weights
        pl.BlockSpec((1, _N2), lambda i: (0, 0)),            # conv2 bias
        pl.BlockSpec((5, _K3, D_OUT), lambda i: (0, 0, 0)),  # fc3 banded weights
        pl.BlockSpec((1, D_OUT), lambda i: (0, 0)),          # fc3 bias
        pl.BlockSpec((tb, D_PHI), lambda i: (i, 0)),         # eps / given phi (batch-tiled)
    ]
    out_specs = (
        pl.BlockSpec((tb, D_PHI), lambda i: (i, 0)),
        pl.BlockSpec((tb, D_PHI), lambda i: (i, 0)),
    )
    return pl.pallas_call(
        kern,
        out_shape=(jax.ShapeDtypeStruct((bp, D_PHI), jnp.float32),
                   jax.ShapeDtypeStruct((bp, D_PHI), jnp.float32)),
        grid=grid,
        in_specs=in_specs,
        out_specs=out_specs,
        compiler_params=pltpu.CompilerParams(
            dimension_semantics=("parallel",),
            vmem_limit_bytes=48 * 1024 * 1024),
    )(x2d, m1, b1r, m2, b2r, m3, b3r, z)


def r_forward(x, params, phi=None, eps=None, tile_b=32):
    """Forward pass of R.  Returns (phi, score), each (B, 80)."""
    B = x.shape[0]
    assert x.shape[1:] == (28, 28), "module requires 28x28 inputs (view(-1, 400))"
    m1, b1r, m2, b2r, m3, b3r = _prep_banded_weights(params)

    if phi is None:
        z = eps.astype(jnp.float32)
        sample = True
    else:
        z = phi.astype(jnp.float32)
        sample = False

    tb = int(min(tile_b, B))
    if tb < B:                       # multi-step grid: tile must respect the (8,128) rule
        tb = max(8, (tb // 8) * 8)
    bp = ((B + tb - 1) // tb) * tb

    x2d = x.astype(jnp.float32).reshape(B * _P, 28)
    if bp != B:
        x2d = jnp.pad(x2d, ((0, (bp - B) * _P), (0, 0)))
        z = jnp.pad(z, ((0, bp - B), (0, 0)))

    phi_out, score = _r_pallas_call(x2d, m1, b1r, m2, b2r, m3, b3r, z,
                                    sample_phi=sample, tb=tb)
    return phi_out[:B], score[:B]


# --------------------------------------------------------------------------
# Parameter init + pure-JAX reference (mirrors the PyTorch module, NCHW)
# --------------------------------------------------------------------------
def init_params(key):
    ks = jax.random.split(key, 6)

    def unif(k, shape, fan_in):
        bound = 1.0 / math.sqrt(fan_in)
        return jax.random.uniform(k, shape, jnp.float32, -bound, bound)

    w1 = unif(ks[0], (32, 1, 3, 3), 1 * 3 * 3)       # conv1.weight
    b1 = unif(ks[1], (32,), 1 * 3 * 3)               # conv1.bias
    w2 = unif(ks[2], (16, 32, 3, 3), 32 * 3 * 3)     # conv2.weight
    b2 = unif(ks[3], (16,), 32 * 3 * 3)              # conv2.bias
    w3 = unif(ks[4], (D_OUT, 400), 400)              # fc3.weight
    b3 = unif(ks[5], (D_OUT,), 400)                  # fc3.bias
    return w1, b1, w2, b2, w3, b3


def r_forward_reference(x, params, eps):
    w1, b1, w2, b2, w3, b3 = params
    hi = lax.Precision.HIGHEST
    y = x[:, None, :, :].astype(jnp.float32)
    y = lax.conv_general_dilated(y, w1, (1, 1), 'VALID',
                                 dimension_numbers=('NCHW', 'OIHW', 'NCHW'),
                                 precision=hi) + b1[None, :, None, None]
    y = jnp.maximum(y, 0.0)
    y = lax.reduce_window(y, -jnp.inf, lax.max, (1, 1, 2, 2), (1, 1, 2, 2), 'VALID')
    y = lax.conv_general_dilated(y, w2, (1, 1), 'VALID',
                                 dimension_numbers=('NCHW', 'OIHW', 'NCHW'),
                                 precision=hi) + b2[None, :, None, None]
    y = jnp.maximum(y, 0.0)
    y = lax.reduce_window(y, -jnp.inf, lax.max, (1, 1, 2, 2), (1, 1, 2, 2), 'VALID')
    y = y.reshape(-1, 400)
    logits = jnp.dot(y, w3.T, precision=hi) + b3
    mu = logits[:, :D_PHI]
    sigma = jax.nn.softplus(logits[:, D_PHI:])
    phi = mu + sigma * eps
    score = -0.5 * ((phi - mu) / sigma) ** 2 - jnp.log(sigma) - HALF_LOG_2PI
    return phi, score


if __name__ == "__main__":
    key = jax.random.PRNGKey(0)
    kp, kx, ke = jax.random.split(key, 3)

    params = init_params(kp)
    B = 2
    # 28x28 spatial size is required by the module (view(-1, 400) after the conv stack)
    x = jax.random.uniform(kx, (B, 28, 28), jnp.float32)
    eps = jax.random.normal(ke, (B, D_PHI), jnp.float32)   # reparameterization noise

    phi, score = r_forward(x, params, eps=eps)
    jax.block_until_ready((phi, score))

    phi_ref, score_ref = r_forward_reference(x, params, eps)
    np.testing.assert_allclose(np.asarray(phi), np.asarray(phi_ref), rtol=5e-2, atol=5e-2)
    np.testing.assert_allclose(np.asarray(score), np.asarray(score_ref), rtol=5e-2, atol=5e-2)

    print("KERNEL_OK")
</pallas_src>

<mosaic_0001>
module attributes {stable_mosaic.version = 11 : i64} {
  func.func @_r_forward_kernel(%arg0: i32, %arg1: memref<56x28xf32, #tpu.memory_space<vmem>>, %arg2: memref<3x28x832xbf16, #tpu.memory_space<vmem>>, %arg3: memref<1x832xf32, #tpu.memory_space<vmem>>, %arg4: memref<3x800x176xbf16, #tpu.memory_space<vmem>>, %arg5: memref<1x176xf32, #tpu.memory_space<vmem>>, %arg6: memref<5x160x160xbf16, #tpu.memory_space<vmem>>, %arg7: memref<1x160xf32, #tpu.memory_space<vmem>>, %arg8: memref<2x80xf32, #tpu.memory_space<vmem>>, %arg9: memref<2x80xf32, #tpu.memory_space<vmem>>, %arg10: memref<2x80xf32, #tpu.memory_space<vmem>>) attributes {dimension_semantics = [#tpu.dimension_semantics<parallel>], iteration_bounds = array<i64: 1>, scalar_prefetch = 0 : i64, scratch_operands = 0 : i64, tpu.core_type = #tpu.core_type<tc>, window_params = [{transform_indices = @transform_0, window_bounds = array<i64: 56, 28>}, {pipeline_mode = #tpu.pipeline_mode<synchronous>, transform_indices = @transform_1, window_bounds = array<i64: 3, 28, 832>}, {pipeline_mode = #tpu.pipeline_mode<synchronous>, transform_indices = @transform_2, window_bounds = array<i64: 1, 832>}, {pipeline_mode = #tpu.pipeline_mode<synchronous>, transform_indices = @transform_3, window_bounds = array<i64: 3, 800, 176>}, {pipeline_mode = #tpu.pipeline_mode<synchronous>, transform_indices = @transform_4, window_bounds = array<i64: 1, 176>}, {pipeline_mode = #tpu.pipeline_mode<synchronous>, transform_indices = @transform_5, window_bounds = array<i64: 5, 160, 160>}, {pipeline_mode = #tpu.pipeline_mode<synchronous>, transform_indices = @transform_6, window_bounds = array<i64: 1, 160>}, {transform_indices = @transform_7, window_bounds = array<i64: 2, 80>}, {transform_indices = @transform_8, window_bounds = array<i64: 2, 80>}, {transform_indices = @transform_9, window_bounds = array<i64: 2, 80>}]} {
    %c0 = arith.constant 0 : index
    %c0_0 = arith.constant 0 : index
    %0 = vector.load %arg1[%c0, %c0_0] : memref<56x28xf32, #tpu.memory_space<vmem>>, vector<56x28xf32>
    %1 = vector.extract_strided_slice %0 {offsets = [0, 0], sizes = [54, 28], strides = [1, 1]} : vector<56x28xf32> to vector<54x28xf32>
    %2 = arith.truncf %1 : vector<54x28xf32> to vector<54x28xbf16>
    %c0_1 = arith.constant 0 : index
    %c0_2 = arith.constant 0 : index
    %c0_3 = arith.constant 0 : index
    %3 = vector.load %arg2[%c0_1, %c0_2, %c0_3] : memref<3x28x832xbf16, #tpu.memory_space<vmem>>, vector<1x28x832xbf16>
    %4 = vector.shape_cast %3 : vector<1x28x832xbf16> to vector<28x832xbf16>
    %cst = arith.constant dense<0.000000e+00> : vector<54x832xf32>
    %5 = tpu.matmul %2, %4, %cst {dimension_numbers = #tpu.dot_dimension_numbers<[1], [0], [0], [1], [0, 0, 1, 1], [], []>} : vector<54x28xbf16>, vector<28x832xbf16>, vector<54x832xf32> -> vector<54x832xf32>
    %6 = vector.extract_strided_slice %0 {offsets = [1, 0], sizes = [54, 28], strides = [1, 1]} : vector<56x28xf32> to vector<54x28xf32>
    %7 = arith.truncf %6 : vector<54x28xf32> to vector<54x28xbf16>
    %c1 = arith.constant 1 : index
    %c0_4 = arith.constant 0 : index
    %c0_5 = arith.constant 0 : index
    %8 = vector.load %arg2[%c1, %c0_4, %c0_5] : memref<3x28x832xbf16, #tpu.memory_space<vmem>>, vector<1x28x832xbf16>
    %9 = vector.shape_cast %8 : vector<1x28x832xbf16> to vector<28x832xbf16>
    %cst_6 = arith.constant dense<0.000000e+00> : vector<54x832xf32>
    %10 = tpu.matmul %7, %9, %cst_6 {dimension_numbers = #tpu.dot_dimension_numbers<[1], [0], [0], [1], [0, 0, 1, 1], [], []>} : vector<54x28xbf16>, vector<28x832xbf16>, vector<54x832xf32> -> vector<54x832xf32>
    %11 = arith.addf %5, %10 : vector<54x832xf32>
    %12 = vector.extract_strided_slice %0 {offsets = [2, 0], sizes = [54, 28], strides = [1, 1]} : vector<56x28xf32> to vector<54x28xf32>
    %13 = arith.truncf %12 : vector<54x28xf32> to vector<54x28xbf16>
    %c2 = arith.constant 2 : index
    %c0_7 = arith.constant 0 : index
    %c0_8 = arith.constant 0 : index
    %14 = vector.load %arg2[%c2, %c0_7, %c0_8] : memref<3x28x832xbf16, #tpu.memory_space<vmem>>, vector<1x28x832xbf16>
    %15 = vector.shape_cast %14 : vector<1x28x832xbf16> to vector<28x832xbf16>
    %cst_9 = arith.constant dense<0.000000e+00> : vector<54x832xf32>
    %16 = tpu.matmul %13, %15, %cst_9 {dimension_numbers = #tpu.dot_dimension_numbers<[1], [0], [0], [1], [0, 0, 1, 1], [], []>} : vector<54x28xbf16>, vector<28x832xbf16>, vector<54x832xf32> -> vector<54x832xf32>
    %17 = arith.addf %11, %16 : vector<54x832xf32>
    %c0_10 = arith.constant 0 : index
    %c0_11 = arith.constant 0 : index
    %18 = vector.load %arg3[%c0_10, %c0_11] : memref<1x832xf32, #tpu.memory_space<vmem>>, vector<1x832xf32>
    %19 = vector.broadcast %18 : vector<1x832xf32> to vector<54x832xf32>
    %20 = arith.addf %17, %19 : vector<54x832xf32>
    %cst_12 = arith.constant 0.000000e+00 : f32
    %21 = vector.broadcast %cst_12 : f32 to vector<54x832xf32>
    %22 = arith.maximumf %20, %21 : vector<54x832xf32>
    %23 = vector.extract_strided_slice %22 {offsets = [0, 0], sizes = [53, 832], strides = [1, 1]} : vector<54x832xf32> to vector<53x832xf32>
    %24 = vector.extract_strided_slice %22 {offsets = [1, 0], sizes = [53, 832], strides = [1, 1]} : vector<54x832xf32> to vector<53x832xf32>
    %25 = arith.maximumf %23, %24 : vector<53x832xf32>
    %26 = vector.extract_strided_slice %25 {offsets = [0, 0], sizes = [53, 800], strides = [1, 1]} : vector<53x832xf32> to vector<53x800xf32>
    %27 = vector.extract_strided_slice %25 {offsets = [0, 32], sizes = [53, 800], strides = [1, 1]} : vector<53x832xf32> to vector<53x800xf32>
    %28 = arith.maximumf %26, %27 : vector<53x800xf32>
    %29 = arith.truncf %28 : vector<53x800xf32> to vector<53x800xbf16>
    %30 = vector.extract_strided_slice %29 {offsets = [0, 0], sizes = [49, 800], strides = [1, 1]} : vector<53x800xbf16> to vector<49x800xbf16>
    %c0_13 = arith.constant 0 : index
    %c0_14 = arith.constant 0 : index
    %c0_15 = arith.constant 0 : index
    %31 = vector.load %arg4[%c0_13, %c0_14, %c0_15] : memref<3x800x176xbf16, #tpu.memory_space<vmem>>, vector<1x800x176xbf16>
    %32 = vector.shape_cast %31 : vector<1x800x176xbf16> to vector<800x176xbf16>
    %cst_16 = arith.constant dense<0.000000e+00> : vector<49x176xf32>
    %33 = tpu.matmul %30, %32, %cst_16 {dimension_numbers = #tpu.dot_dimension_numbers<[1], [0], [0], [1], [0, 0, 1, 1], [], []>} : vector<49x800xbf16>, vector<800x176xbf16>, vector<49x176xf32> -> vector<49x176xf32>
    %34 = vector.extract_strided_slice %29 {offsets = [2, 0], sizes = [49, 800], strides = [1, 1]} : vector<53x800xbf16> to vector<49x800xbf16>
    %c1_17 = arith.constant 1 : index
    %c0_18 = arith.constant 0 : index
    %c0_19 = arith.constant 0 : index
    %35 = vector.load %arg4[%c1_17, %c0_18, %c0_19] : memref<3x800x176xbf16, #tpu.memory_space<vmem>>, vector<1x800x176xbf16>
    %36 = vector.shape_cast %35 : vector<1x800x176xbf16> to vector<800x176xbf16>
    %cst_20 = arith.constant dense<0.000000e+00> : vector<49x176xf32>
    %37 = tpu.matmul %34, %36, %cst_20 {dimension_numbers = #tpu.dot_dimension_numbers<[1], [0], [0], [1], [0, 0, 1, 1], [], []>} : vector<49x800xbf16>, vector<800x176xbf16>, vector<49x176xf32> -> vector<49x176xf32>
    %38 = arith.addf %33, %37 : vector<49x176xf32>
    %39 = vector.extract_strided_slice %29 {offsets = [4, 0], sizes = [49, 800], strides = [1, 1]} : vector<53x800xbf16> to vector<49x800xbf16>
    %c2_21 = arith.constant 2 : index
    %c0_22 = arith.constant 0 : index
    %c0_23 = arith.constant 0 : index
    %40 = vector.load %arg4[%c2_21, %c0_22, %c0_23] : memref<3x800x176xbf16, #tpu.memory_space<vmem>>, vector<1x800x176xbf16>
    %41 = vector.shape_cast %40 : vector<1x800x176xbf16> to vector<800x176xbf16>
    %cst_24 = arith.constant dense<0.000000e+00> : vector<49x176xf32>
    %42 = tpu.matmul %39, %41, %cst_24 {dimension_numbers = #tpu.dot_dimension_numbers<[1], [0], [0], [1], [0, 0, 1, 1], [], []>} : vector<49x800xbf16>, vector<800x176xbf16>, vector<49x176xf32> -> vector<49x176xf32>
    %43 = arith.addf %38, %42 : vector<49x176xf32>
    %c0_25 = arith.constant 0 : index
    %c0_26 = arith.constant 0 : index
    %44 = vector.load %arg5[%c0_25, %c0_26] : memref<1x176xf32, #tpu.memory_space<vmem>>, vector<1x176xf32>
    %45 = vector.broadcast %44 : vector<1x176xf32> to vector<49x176xf32>
    %46 = arith.addf %43, %45 : vector<49x176xf32>
    %cst_27 = arith.constant 0.000000e+00 : f32
    %47 = vector.broadcast %cst_27 : f32 to vector<49x176xf32>
    %48 = arith.maximumf %46, %47 : vector<49x176xf32>
    %49 = vector.extract_strided_slice %48 {offsets = [0, 0], sizes = [47, 176], strides = [1, 1]} : vector<49x176xf32> to vector<47x176xf32>
    %50 = vector.extract_strided_slice %48 {offsets = [2, 0], sizes = [47, 176], strides = [1, 1]} : vector<49x176xf32> to vector<47x176xf32>
    %51 = arith.maximumf %49, %50 : vector<47x176xf32>
    %52 = vector.extract_strided_slice %51 {offsets = [0, 0], sizes = [47, 160], strides = [1, 1]} : vector<47x176xf32> to vector<47x160xf32>
    %53 = vector.extract_strided_slice %51 {offsets = [0, 16], sizes = [47, 160], strides = [1, 1]} : vector<47x176xf32> to vector<47x160xf32>
    %54 = arith.maximumf %52, %53 : vector<47x160xf32>
    %55 = arith.truncf %54 : vector<47x160xf32> to vector<47x160xbf16>
    %56 = vector.extract_strided_slice %55 {offsets = [0, 0], sizes = [31, 160], strides = [1, 1]} : vector<47x160xbf16> to vector<31x160xbf16>
    %c0_28 = arith.constant 0 : index
    %c0_29 = arith.constant 0 : index
    %c0_30 = arith.constant 0 : index
    %57 = vector.load %arg6[%c0_28, %c0_29, %c0_30] : memref<5x160x160xbf16, #tpu.memory_space<vmem>>, vector<1x160x160xbf16>
    %58 = vector.shape_cast %57 : vector<1x160x160xbf16> to vector<160x160xbf16>
    %cst_31 = arith.constant dense<0.000000e+00> : vector<31x160xf32>
    %59 = tpu.matmul %56, %58, %cst_31 {dimension_numbers = #tpu.dot_dimension_numbers<[1], [0], [0], [1], [0, 0, 1, 1], [], []>} : vector<31x160xbf16>, vector<160x160xbf16>, vector<31x160xf32> -> vector<31x160xf32>
    %60 = vector.extract_strided_slice %55 {offsets = [4, 0], sizes = [31, 160], strides = [1, 1]} : vector<47x160xbf16> to vector<31x160xbf16>
    %c1_32 = arith.constant 1 : index
    %c0_33 = arith.constant 0 : index
    %c0_34 = arith.constant 0 : index
    %61 = vector.load %arg6[%c1_32, %c0_33, %c0_34] : memref<5x160x160xbf16, #tpu.memory_space<vmem>>, vector<1x160x160xbf16>
    %62 = vector.shape_cast %61 : vector<1x160x160xbf16> to vector<160x160xbf16>
    %cst_35 = arith.constant dense<0.000000e+00> : vector<31x160xf32>
    %63 = tpu.matmul %60, %62, %cst_35 {dimension_numbers = #tpu.dot_dimension_numbers<[1], [0], [0], [1], [0, 0, 1, 1], [], []>} : vector<31x160xbf16>, vector<160x160xbf16>, vector<31x160xf32> -> vector<31x160xf32>
    %64 = arith.addf %59, %63 : vector<31x160xf32>
    %65 = vector.extract_strided_slice %55 {offsets = [8, 0], sizes = [31, 160], strides = [1, 1]} : vector<47x160xbf16> to vector<31x160xbf16>
    %c2_36 = arith.constant 2 : index
    %c0_37 = arith.constant 0 : index
    %c0_38 = arith.constant 0 : index
    %66 = vector.load %arg6[%c2_36, %c0_37, %c0_38] : memref<5x160x160xbf16, #tpu.memory_space<vmem>>, vector<1x160x160xbf16>
    %67 = vector.shape_cast %66 : vector<1x160x160xbf16> to vector<160x160xbf16>
    %cst_39 = arith.constant dense<0.000000e+00> : vector<31x160xf32>
    %68 = tpu.matmul %65, %67, %cst_39 {dimension_numbers = #tpu.dot_dimension_numbers<[1], [0], [0], [1], [0, 0, 1, 1], [], []>} : vector<31x160xbf16>, vector<160x160xbf16>, vector<31x160xf32> -> vector<31x160xf32>
    %69 = arith.addf %64, %68 : vector<31x160xf32>
    %70 = vector.extract_strided_slice %55 {offsets = [12, 0], sizes = [31, 160], strides = [1, 1]} : vector<47x160xbf16> to vector<31x160xbf16>
    %c3 = arith.constant 3 : index
    %c0_40 = arith.constant 0 : index
    %c0_41 = arith.constant 0 : index
    %71 = vector.load %arg6[%c3, %c0_40, %c0_41] : memref<5x160x160xbf16, #tpu.memory_space<vmem>>, vector<1x160x160xbf16>
    %72 = vector.shape_cast %71 : vector<1x160x160xbf16> to vector<160x160xbf16>
    %cst_42 = arith.constant dense<0.000000e+00> : vector<31x160xf32>
    %73 = tpu.matmul %70, %72, %cst_42 {dimension_numbers = #tpu.dot_dimension_numbers<[1], [0], [0], [1], [0, 0, 1, 1], [], []>} : vector<31x160xbf16>, vector<160x160xbf16>, vector<31x160xf32> -> vector<31x160xf32>
    %74 = arith.addf %69, %73 : vector<31x160xf32>
    %75 = vector.extract_strided_slice %55 {offsets = [16, 0], sizes = [31, 160], strides = [1, 1]} : vector<47x160xbf16> to vector<31x160xbf16>
    %c4 = arith.constant 4 : index
    %c0_43 = arith.constant 0 : index
    %c0_44 = arith.constant 0 : index
    %76 = vector.load %arg6[%c4, %c0_43, %c0_44] : memref<5x160x160xbf16, #tpu.memory_space<vmem>>, vector<1x160x160xbf16>
    %77 = vector.shape_cast %76 : vector<1x160x160xbf16> to vector<160x160xbf16>
    %cst_45 = arith.constant dense<0.000000e+00> : vector<31x160xf32>
    %78 = tpu.matmul %75, %77, %cst_45 {dimension_numbers = #tpu.dot_dimension_numbers<[1], [0], [0], [1], [0, 0, 1, 1], [], []>} : vector<31x160xbf16>, vector<160x160xbf16>, vector<31x160xf32> -> vector<31x160xf32>
    %79 = arith.addf %74, %78 : vector<31x160xf32>
    %c0_46 = arith.constant 0 : index
    %c0_47 = arith.constant 0 : index
    %80 = vector.load %arg7[%c0_46, %c0_47] : memref<1x160xf32, #tpu.memory_space<vmem>>, vector<1x160xf32>
    %81 = vector.broadcast %80 : vector<1x160xf32> to vector<31x160xf32>
    %82 = arith.addf %79, %81 : vector<31x160xf32>
    %83 = vector.extract_strided_slice %82 {offsets = [0, 0], sizes = [31, 80], strides = [1, 1]} : vector<31x160xf32> to vector<31x80xf32>
    %84 = vector.extract_strided_slice %82 {offsets = [0, 80], sizes = [31, 80], strides = [1, 1]} : vector<31x160xf32> to vector<31x80xf32>
    %cst_48 = arith.constant 0.000000e+00 : f32
    %85 = vector.broadcast %cst_48 : f32 to vector<31x80xf32>
    %86 = arith.maximumf %84, %85 : vector<31x80xf32>
    %87 = math.absf %84 : vector<31x80xf32>
    %cst_49 = arith.constant 0.000000e+00 : f32
    %88 = vector.broadcast %cst_49 : f32 to vector<31x80xf32>
    %89 = arith.subf %88, %87 : vector<31x80xf32>
    %90 = math.exp %89 : vector<31x80xf32>
    %cst_50 = arith.constant 1.000000e+00 : f32
    %91 = vector.broadcast %cst_50 : f32 to vector<31x80xf32>
    %92 = arith.addf %91, %90 : vector<31x80xf32>
    %93 = math.log %92 : vector<31x80xf32>
    %94 = arith.addf %86, %93 : vector<31x80xf32>
    %95 = math.log %94 : vector<31x80xf32>
    %c0_51 = arith.constant 0 : index
    %c0_52 = arith.constant 0 : index
    %96 = vector.load %arg8[%c0_51, %c0_52] : memref<2x80xf32, #tpu.memory_space<vmem>>, vector<2x80xf32>
    %97 = vector.extract_strided_slice %83 {offsets = [0, 0], sizes = [1, 80], strides = [1, 1]} : vector<31x80xf32> to vector<1x80xf32>
    %98 = vector.extract_strided_slice %94 {offsets = [0, 0], sizes = [1, 80], strides = [1, 1]} : vector<31x80xf32> to vector<1x80xf32>
    %99 = vector.extract_strided_slice %95 {offsets = [0, 0], sizes = [1, 80], strides = [1, 1]} : vector<31x80xf32> to vector<1x80xf32>
    %100 = vector.extract_strided_slice %96 {offsets = [0, 0], sizes = [1, 80], strides = [1, 1]} : vector<2x80xf32> to vector<1x80xf32>
    %101 = arith.mulf %98, %100 : vector<1x80xf32>
    %102 = arith.addf %97, %101 : vector<1x80xf32>
    %103 = arith.subf %102, %97 : vector<1x80xf32>
    %104 = arith.divf %103, %98 : vector<1x80xf32>
    %cst_53 = arith.constant -5.000000e-01 : f32
    %105 = vector.broadcast %cst_53 : f32 to vector<1x80xf32>
    %106 = arith.mulf %105, %104 : vector<1x80xf32>
    %107 = arith.mulf %106, %104 : vector<1x80xf32>
    %108 = arith.subf %107, %99 : vector<1x80xf32>
    %cst_54 = arith.constant 0.918938517 : f32
    %109 = vector.broadcast %cst_54 : f32 to vector<1x80xf32>
    %110 = arith.subf %108, %109 : vector<1x80xf32>
    %c0_55 = arith.constant 0 : index
    %c0_56 = arith.constant 0 : index
    %111 = vector.load %arg9[%c0_55, %c0_56] : memref<2x80xf32, #tpu.memory_space<vmem>>, vector<1x80xf32>
    tpu.vector_store %arg9[%c0_55, %c0_56], %102 {strides = array<i32>} : memref<2x80xf32, #tpu.memory_space<vmem>>, vector<1x80xf32>,
    %c0_57 = arith.constant 0 : index
    %c0_58 = arith.constant 0 : index
    %112 = vector.load %arg10[%c0_57, %c0_58] : memref<2x80xf32, #tpu.memory_space<vmem>>, vector<1x80xf32>
    tpu.vector_store %arg10[%c0_57, %c0_58], %110 {strides = array<i32>} : memref<2x80xf32, #tpu.memory_space<vmem>>, vector<1x80xf32>,
    %113 = vector.extract_strided_slice %83 {offsets = [28, 0], sizes = [1, 80], strides = [1, 1]} : vector<31x80xf32> to vector<1x80xf32>
    %114 = vector.extract_strided_slice %94 {offsets = [28, 0], sizes = [1, 80], strides = [1, 1]} : vector<31x80xf32> to vector<1x80xf32>
    %115 = vector.extract_strided_slice %95 {offsets = [28, 0], sizes = [1, 80], strides = [1, 1]} : vector<31x80xf32> to vector<1x80xf32>
    %116 = vector.extract_strided_slice %96 {offsets = [1, 0], sizes = [1, 80], strides = [1, 1]} : vector<2x80xf32> to vector<1x80xf32>
    %117 = arith.mulf %114, %116 : vector<1x80xf32>
    %118 = arith.addf %113, %117 : vector<1x80xf32>
    %119 = arith.subf %118, %113 : vector<1x80xf32>
    %120 = arith.divf %119, %114 : vector<1x80xf32>
    %cst_59 = arith.constant -5.000000e-01 : f32
    %121 = vector.broadcast %cst_59 : f32 to vector<1x80xf32>
    %122 = arith.mulf %121, %120 : vector<1x80xf32>
    %123 = arith.mulf %122, %120 : vector<1x80xf32>
    %124 = arith.subf %123, %115 : vector<1x80xf32>
    %cst_60 = arith.constant 0.918938517 : f32
    %125 = vector.broadcast %cst_60 : f32 to vector<1x80xf32>
    %126 = arith.subf %124, %125 : vector<1x80xf32>
    %c1_61 = arith.constant 1 : index
    %c0_62 = arith.constant 0 : index
    %127 = vector.load %arg9[%c1_61, %c0_62] : memref<2x80xf32, #tpu.memory_space<vmem>>, vector<1x80xf32>
    tpu.vector_store %arg9[%c1_61, %c0_62], %118 {strides = array<i32>} : memref<2x80xf32, #tpu.memory_space<vmem>>, vector<1x80xf32>,
    %c1_63 = arith.constant 1 : index
    %c0_64 = arith.constant 0 : index
    %128 = vector.load %arg10[%c1_63, %c0_64] : memref<2x80xf32, #tpu.memory_space<vmem>>, vector<1x80xf32>
    tpu.vector_store %arg10[%c1_63, %c0_64], %126 {strides = array<i32>} : memref<2x80xf32, #tpu.memory_space<vmem>>, vector<1x80xf32>,
    return
  }
  func.func @transform_0(%arg0: i32) -> (i32, i32) {
    %c0_i32 = arith.constant 0 : i32
    %c0_i32_0 = arith.constant 0 : i32
    return %arg0, %c0_i32 : i32, i32
  }
  func.func @transform_1(%arg0: i32) -> (i32, i32, i32) {
    %c0_i32 = arith.constant 0 : i32
    %c0_i32_0 = arith.constant 0 : i32
    %c0_i32_1 = arith.constant 0 : i32
    %c0_i32_2 = arith.constant 0 : i32
    return %c0_i32, %c0_i32_0, %c0_i32_1 : i32, i32, i32
  }
  func.func @transform_2(%arg0: i32) -> (i32, i32) {
    %c0_i32 = arith.constant 0 : i32
    %c0_i32_0 = arith.constant 0 : i32
    %c0_i32_1 = arith.constant 0 : i32
    return %c0_i32, %c0_i32_0 : i32, i32
  }
  func.func @transform_3(%arg0: i32) -> (i32, i32, i32) {
    %c0_i32 = arith.constant 0 : i32
    %c0_i32_0 = arith.constant 0 : i32
    %c0_i32_1 = arith.constant 0 : i32
    %c0_i32_2 = arith.constant 0 : i32
    return %c0_i32, %c0_i32_0, %c0_i32_1 : i32, i32, i32
  }
  func.func @transform_4(%arg0: i32) -> (i32, i32) {
    %c0_i32 = arith.constant 0 : i32
    %c0_i32_0 = arith.constant 0 : i32
    %c0_i32_1 = arith.constant 0 : i32
    return %c0_i32, %c0_i32_0 : i32, i32
  }
  func.func @transform_5(%arg0: i32) -> (i32, i32, i32) {
    %c0_i32 = arith.constant 0 : i32
    %c0_i32_0 = arith.constant 0 : i32
    %c0_i32_1 = arith.constant 0 : i32
    %c0_i32_2 = arith.constant 0 : i32
    return %c0_i32, %c0_i32_0, %c0_i32_1 : i32, i32, i32
  }
  func.func @transform_6(%arg0: i32) -> (i32, i32) {
    %c0_i32 = arith.constant 0 : i32
    %c0_i32_0 = arith.constant 0 : i32
    %c0_i32_1 = arith.constant 0 : i32
    return %c0_i32, %c0_i32_0 : i32, i32
  }
  func.func @transform_7(%arg0: i32) -> (i32, i32) {
    %c0_i32 = arith.constant 0 : i32
    %c0_i32_0 = arith.constant 0 : i32
    return %arg0, %c0_i32 : i32, i32
  }
  func.func @transform_8(%arg0: i32) -> (i32, i32) {
    %c0_i32 = arith.constant 0 : i32
    %c0_i32_0 = arith.constant 0 : i32
    return %arg0, %c0_i32 : i32, i32
  }
  func.func @transform_9(%arg0: i32) -> (i32, i32) {
    %c0_i32 = arith.constant 0 : i32
    %c0_i32_0 = arith.constant 0 : i32
    return %arg0, %c0_i32 : i32, i32
  }
}

</mosaic_0001>

<bundles_post_ra>
// kernel: _r_pallas_call.1
= control target key start
LH: loop header
LB: loop body
LE: loop exit
PB: predicated region body
PF: predicated region fallthrough
CT: control target
= control target key end

     0   :  { %15 = vsyncpa [#allocation3], 0  ;;  %v10992_v2 = vmov 0   ;;  %vm188_vm0 = vcmask 1045504   ;;  %vm78_vm1 = vsmask.f32 7424  ;;  %s10982_s0 = inlined_call_operand.vmem [shape: f32[56,28], index: 0, kind: input, shape index: {}]   ;;  %s10983_s1 = inlined_call_operand.vmem [shape: bf16[3,28,832], index: 1, kind: input, shape index: {}]   ;;  %s10984_s2 = inlined_call_operand.vmem [shape: f32[1,832], index: 2, kind: input, shape index: {}]   ;;  %s10985_s3 = inlined_call_operand.vmem [shape: bf16[3,800,176], index: 3, kind: input, shape index: {}]   ;;  %s10986_s4 = inlined_call_operand.vmem [shape: f32[1,176], index: 4, kind: input, shape index: {}]   ;;  %s10987_s5 = inlined_call_operand.vmem [shape: bf16[5,160,160], index: 5, kind: input, shape index: {}]   ;;  %s10988_s6 = inlined_call_operand.vmem [shape: f32[1,160], index: 6, kind: input, shape index: {}]   ;;  %s10989_s7 = inlined_call_operand.vmem [shape: f32[2,80], index: 7, kind: input, shape index: {}]   ;;  %s10990_s8 = inlined_call_operand.hbm [shape: f32[2,80], index: 8, kind: output, shape index: {0}]   ;;  %s10991_s9 = inlined_call_operand.hbm [shape: f32[2,80], index: 9, kind: output, shape index: {1}]  }
   0x1   :  { %v7418_v0 = vld [vmem:[%s10983_s1 + $0x74] ss:$28 sps:$4 sm:$0xff]   ;;  %v7420_v1 = vld [vmem:[%s10983_s1 + $0x88] ss:$28 sps:$4 sm:$0xff]   ;;  %242 = vmatprep.mubr.bf16.mxu0 %v10992_v2  ;;  %v37_v10 = vld [vmem:[%s10982_s0 + $0x18] sm:$0xff]  ;;  %vm175_vm2 = vcmask 228352  }
   0x2   :  { %210 = vmatprep.subr.bf16.mxu0 %v7418_v0  ;;  %v7421_v3 = vld [vmem:[%s10983_s1 + $0x70] ss:$28 sps:$4 sm:$0xff]   ;;  %7015 = vmatprep.subr.bf16.mxu1 %v7420_v1  ;;  %v34_v5 = vld [vmem:[%s10982_s0] sm:$0xff]  ;;  %v7431_v25 = vld [vmem:[%s10983_s1 + $0x7c] ss:$28 sps:$4 sm:$0xff]   ;;  %vm879_vm3 = vcmask 1046528  }
   0x3   :  { %v7422_v4 = vld [vmem:[%s10983_s1 + $0xac] ss:$28 sps:$4 sm:$0x3f]   ;;  %211 = vmatpush1.bf16.msra.mxu0 %v7421_v3  ;;  %7016 = vmatpush3.bf16.msra.mxu1 %v7420_v1  ;;  %v7424_v6 = vld [vmem:[%s10983_s1 + $0xc0] ss:$28 sps:$4 sm:$0x3f]  }
   0x4   :  { %v35_v7 = vld [vmem:[%s10982_s0 + $0x8] sm:$0xff]  ;;  %6192 = vmatprep.subr.msk.bf16.mxu0 %vm188_vm0, %v7422_v4  ;;  %v36_v9 = vld [vmem:[%s10982_s0 + $0x10] sm:$0xff]  ;;  %7263 = vmatprep.subr.msk.bf16.mxu1 %vm188_vm0, %v7424_v6  ;;  %v208_v12 = vsel %vm188_vm0, %v7424_v6, 0  ;;  %v38_v14 = vld [vmem:[%s10982_s0 + $0x20] sm:$0xff] }
   0x5   :  { %v7425_v8 = vld [vmem:[%s10983_s1 + $0xa8] ss:$28 sps:$4 sm:$0x3f]   ;;  %v8243_v11 = vpack.c.bf16 %v35_v7, %v34_v5  ;;  %v8247_v13 = vpack.c.bf16 %v37_v10, %v36_v9  ;;  %v40_v28 = vld [vmem:[%s10982_s0 + $0x30] sm:$0xff]  ;;  %v7440_v54 = vld [vmem:[%s10983_s1 + $0x80] ss:$28 sps:$4 sm:$0xff]  }
   0x6   :  { %v39_v15 = vld [vmem:[%s10982_s0 + $0x28] sm:$0xff]  ;;  %v190_v16 = vsel %vm188_vm0, %v7425_v8, 0  ;;  %v7429_v32 = vld [vmem:[%s10983_s1 + $0x78] ss:$28 sps:$4 sm:$0xff]   ;;  %v8279_v33 = vpack.c.bf16 %v40_v28, %v40_v28  ;;  %v7442_v49 = vld [vmem:[%s10983_s1 + $0x84] ss:$28 sps:$4 sm:$0xff]  }
   0x7   :  { %v80_v17 = vshrl.u32 %v8243_v11, 16  ;;  %v82_v18 = vshll.u32 %v8243_v11, 16  ;;  %v8258_v19 = vpack.c.bf16 %v39_v15, %v38_v14  ;;  %213 = vmatpush1.bf16.msra.mxu0 %v190_v16  ;;  %7018 = vmatpush3.bf16.msra.mxu1 %v208_v12  ;;  %v87_v20 = vshll.u32 %v8247_v13, 16  ;;  %v7428_v22 = vld [vmem:[%s10983_s1 + $0xc] ss:$28 sps:$4 sm:$0xff]  }
   0x8   :  { %v91_v21 = vshrl.u32 %v8247_v13, 16  ;;  %v7426_v27 = vld [vmem:[%s10983_s1 + $0x8] ss:$28 sps:$4 sm:$0xff]   ;;  %652 = vmatprep.subr.bf16.mxu1 %v7428_v22  ;;  %281 = vmatprep.subr.bf16.mxu0 %v7431_v25  ;;  %v103_v38 = vshll.u32 %v8279_v33, 16  ;;  %v107_v41 = vshrl.u32 %v8279_v33, 16  ;;  %v880_v0 = vrot.slane %v8243_v11, 1 }
   0x9   :  { %v84_v23 = vrot.slane %v82_v18, 1  ;;  %v95_v24 = vshll.u32 %v8258_v19, 16  ;;  %v89_v26 = vrot.slane %v87_v20, 1  ;;  %v99_v29 = vshrl.u32 %v8258_v19, 16  ;;  %v7435_v45 = vld [vmem:[%s10983_s1 + $0x18] ss:$28 sps:$4 sm:$0xff]  }
   0xa   :  { %v7432_v35 = vld [vmem:[%s10983_s1 + $0x44] ss:$28 sps:$4 sm:$0x3f]   ;;  %v7436_v42 = vld [vmem:[%s10983_s1 + $0xb4] ss:$28 sps:$4 sm:$0x3f]  }
   0xb   :  { %v85_v30 = vor.u32 %v84_v23, %v80_v17  ;;  %v97_v31 = vrot.slane %v95_v24, 1  ;;  %v93_v34 = vor.u32 %v91_v21, %v89_v26  ;;  %v7434_v39 = vld [vmem:[%s10983_s1 + $0x40] ss:$28 sps:$4 sm:$0x3f]   ;;  %v105_v43 = vrot.slane %v103_v38, 1 }
   0xc   :  { %v7438_v44 = vld [vmem:[%s10983_s1 + $0xb0] ss:$28 sps:$4 sm:$0x3f]   ;;  %v567_v47 = vsel %vm188_vm0, %v7434_v39, 0  ;;  %v7455_v57 = vld [vmem:[%s10983_s1 + $0x4] ss:$28 sps:$4 sm:$0xff]  }
   0xd   :  { %v8285_v36 = vsel %vm78_vm1, %v85_v30, %v89_v26  ;;  %v101_v37 = vor.u32 %v99_v29, %v97_v31  ;;  %v8296_v40 = vsel %vm78_vm1, %v93_v34, %v97_v31  ;;  %v196_v48 = vsel %vm188_vm0, %v7438_v44, 0  ;;  %v7439_v51 = vld [vmem:[%s10983_s1 + $0x50] ss:$28 sps:$4 sm:$0x3f]   ;;  %v7443_v59 = vld [vmem:[%s10983_s1 + $0xe8] ss:$28 sps:$4 sm:$0xff]  }
   0xe   :  { %7019 = vmatprep.mubr.msk.bf16.mxu1 %vm175_vm2, %v8285_v36  ;;  %6193 = vmatmul.mubr.msk.bf16.vlgmr.msra.gmra.mrb[0].mxu0 %vm175_vm2, %v8285_v36  ;;  %v8323_v50 = vor.u32 %v107_v41, %v105_v43  ;;  %v579_v52 = vsel %vm188_vm0, %v7439_v51, 0  ;;  %v7445_v53 = vld [vmem:[%s10983_s1 + $0xec] ss:$28 sps:$4 sm:$0xff]   ;;  %v7448_v55 = vld [vmem:[%s10983_s1 + $0xb8] ss:$28 sps:$4 sm:$0x3f]  }
   0xf   :  { %7020 = vmatmul.mubr.msk.bf16.vlgmr.msra.gmra.mrb[0].mxu1 %vm175_vm2, %v8296_v40  ;;  %282 = vmatpush1.bf16.msra.mxu0 %v7429_v32  ;;  %v8312_v46 = vsel %vm78_vm1, %v101_v37, %v105_v43  ;;  %v7446_v56 = vld [vmem:[%s10983_s1 + $0xbc] ss:$28 sps:$4 sm:$0x3f]   ;;  %v202_v58 = vsel %vm188_vm0, %v7448_v55, 0  ;;  %v881_v1 = vrot.slane %v8247_v13, 1  ;;  %v883_v9 = vrot.slane %v8258_v19, 1 }
  0x10   :  { %653 = vmatpush1.bf16.msra.mxu1 %v7426_v27  ;;  %252 = vmatprep.mubr.bf16.mxu0 %v10992_v2  ;;  %v7449_v60 = vld [vmem:[%s10983_s1 + $0x124] ss:$28 sps:$4 sm:$0x3f]   ;;  %v7452_v62 = vld [vmem:[%s10983_s1 + $0xf8] ss:$28 sps:$4 sm:$0xff]   ;;  %v8446_v15 = vrot.slane %v8279_v33, 1 }
  0x11   :  { %6230 = vmatprep.subr.msk.bf16.mxu1 %vm188_vm0, %v7432_v35  ;;  %6197 = vmatprep.subr.msk.bf16.mxu0 %vm188_vm0, %v7436_v42  ;;  %v7451_v61 = vld [vmem:[%s10983_s1 + $0x120] ss:$28 sps:$4 sm:$0x3f]   ;;  %v7459_v4 = vld [vmem:[%s10983_s1 + $0x38] ss:$28 sps:$4 sm:$0x3f]   ;;  %v8417_v6 = vsel %vm879_vm3, %v880_v0, %v881_v1  ;;  %v8437_v14 = vsel %vm879_vm3, %v881_v1, %v883_v9 }
  0x12   :  { %7023 = vmatprep.mubr.msk.bf16.mxu1 %vm175_vm2, %v8312_v46  ;;  %v971_v63 = vsel %vm188_vm0, %v7451_v61, 0  ;;  %v7453_v3 = vld [vmem:[%s10983_s1] ss:$28 sps:$4 sm:$0xff]   ;;  %v7456_v5 = vld [vmem:[%s10983_s1 + $0x130] ss:$28 sps:$4 sm:$0x3f]   ;;  %v8450_v16 = vsel %vm879_vm3, %v883_v9, %v8446_v15 }
  0x13   :  { %284 = vmatpush1.bf16.msra.mxu0 %v196_v48  ;;  %v7457_v7 = vld [vmem:[%s10983_s1 + $0x3c] ss:$28 sps:$4 sm:$0x3f]   ;;  %v7462_v8 = vld [vmem:[%s10983_s1 + $0x14] ss:$28 sps:$4 sm:$0xff]   ;;  %v561_v10 = vsel %vm188_vm0, %v7459_v4, 0 }
  0x14   :  { %655 = vmatpush1.bf16.msra.mxu1 %v567_v47  ;;  %352 = vmatprep.subr.bf16.mxu0 %v7442_v49  ;;  %v983_v12 = vsel %vm188_vm0, %v7456_v5, 0  ;;  %v7460_v17 = vld [vmem:[%s10983_s1 + $0x10] ss:$28 sps:$4 sm:$0xff]   ;;  %v7465_v18 = vld [vmem:[%s10983_s1 + $0x48] ss:$28 sps:$4 sm:$0x3f]  }
  0x15   :  { %7027 = vmatprep.subr.bf16.mxu1 %v7435_v45  ;;  %v7463_v20 = vld [vmem:[%s10983_s1 + $0x4c] ss:$28 sps:$4 sm:$0x3f]   ;;  %v7468_v21 = vld [vmem:[%s10983_s1 + $0xe4] ss:$28 sps:$4 sm:$0xff]   ;;  %v573_v22 = vsel %vm188_vm0, %v7465_v18, 0 }
  0x16   :  { %6194 = vmatmul.mubr.msk.bf16.gmra.mrb[4].mxu0 %vm175_vm2, %v8296_v40  ;;  %v7466_v23 = vld [vmem:[%s10983_s1 + $0xe0] ss:$28 sps:$4 sm:$0xff]   ;;  %v7471_v25 = vld [vmem:[%s10983_s1 + $0x118] ss:$28 sps:$4 sm:$0x3f]  }
  0x17   :  { %7024 = vmatmul.mubr.msk.bf16.gmra.mrb[4].mxu1 %vm175_vm2, %v8323_v50  ;;  %262 = vmatprep.mubr.bf16.mxu0 %v10992_v2  ;;  %v7469_v24 = vld [vmem:[%s10983_s1 + $0x11c] ss:$28 sps:$4 sm:$0x3f]   ;;  %v7474_v26 = vld [vmem:[%s10983_s1 + $0xf4] ss:$28 sps:$4 sm:$0xff]   ;;  %v965_v27 = vsel %vm188_vm0, %v7471_v25, 0 }
  0x18   :  { %684 = vmatprep.mubr.bf16.mxu1 %v10992_v2 }
  0x1e   :  { %6195 = vmatmul.mubr.msk.bf16.gmra.mrb[8].mxu0 %vm175_vm2, %v8312_v46 }
  0x1f   :  { %6231 = vmatmul.mubr.msk.bf16.vlgmr.msra.gmra.mrb[8].mxu1 %vm175_vm2, %v8243_v11  ;;  %272 = vmatprep.mubr.bf16.mxu0 %v10992_v2 }
  0x20   :  { %7028 = vmatpush3.bf16.msra.mxu1 %v7435_v45  ;;  %694 = vmatprep.mubr.bf16.mxu1 %v10992_v2 }
  0x21   :  { %7264 = vmatprep.subr.msk.bf16.mxu1 %vm188_vm0, %v7439_v51 }
  0x24   :  { %7030 = vmatpush3.bf16.msra.mxu1 %v579_v52 }
  0x25   :  { %1056 = vmatprep.subr.bf16.mxu1 %v7445_v53 }
  0x26   :  { %6196 = vmatmul.mubr.msk.bf16.gmra.mrb[12].mxu0 %vm175_vm2, %v8323_v50 }
  0x27   :  { %6232 = vmatmul.mubr.msk.bf16.gmra.mrb[12].mxu1 %vm175_vm2, %v8247_v13  ;;  %313 = vmatprep.mubr.bf16.mxu0 %v10992_v2 }
  0x28   :  { %704 = vmatprep.mubr.bf16.mxu1 %v10992_v2 }
  0x2e   :  { %6198 = vmatmul.mubr.msk.bf16.vlgmr.msra.gmra.mrb[16].mxu0 %vm175_vm2, %v8285_v36 }
  0x2f   :  { %6233 = vmatmul.mubr.msk.bf16.gmra.mrb[16].mxu1 %vm175_vm2, %v8258_v19  ;;  %353 = vmatpush1.bf16.msra.mxu0 %v7440_v54 }
  0x30   :  { %323 = vmatprep.mubr.bf16.mxu0 %v10992_v2  ;;  %714 = vmatprep.mubr.bf16.mxu1 %v10992_v2 }
  0x31   :  { %6202 = vmatprep.subr.msk.bf16.mxu0 %vm188_vm0, %v7446_v56 }
  0x33   :  { %355 = vmatpush1.bf16.msra.mxu0 %v202_v58 }
  0x34   :  { %581 = vmatprep.subr.bf16.mxu0 %v7455_v57 }
  0x36   :  { %6199 = vmatmul.mubr.msk.bf16.gmra.mrb[20].mxu0 %vm175_vm2, %v8296_v40 }
  0x37   :  { %6234 = vmatmul.mubr.msk.bf16.gmra.mrb[20].mxu1 %vm175_vm2, %v8279_v33  ;;  %333 = vmatprep.mubr.bf16.mxu0 %v10992_v2 }
  0x38   :  { %7031 = vmatprep.mubr.msk.bf16.mxu1 %vm175_vm2, %v8243_v11 }
  0x3e   :  { %6200 = vmatmul.mubr.msk.bf16.gmra.mrb[24].mxu0 %vm175_vm2, %v8312_v46 }
  0x3f   :  { %7032 = vmatmul.mubr.msk.bf16.vlgmr.msra.gmra.mrb[0].mxu1 %vm175_vm2, %v8247_v13  ;;  %343 = vmatprep.mubr.bf16.mxu0 %v10992_v2 }
  0x40   :  { %1057 = vmatpush1.bf16.msra.mxu1 %v7443_v59  ;;  %7035 = vmatprep.mubr.msk.bf16.mxu1 %vm175_vm2, %v8258_v19 }
  0x41   :  { %6279 = vmatprep.subr.msk.bf16.mxu1 %vm188_vm0, %v7449_v60 }
  0x44   :  { %1059 = vmatpush1.bf16.msra.mxu1 %v971_v63 }
  0x45   :  { %7039 = vmatprep.subr.bf16.mxu1 %v7452_v62 }
  0x46   :  { %6201 = vmatmul.mubr.msk.bf16.gmra.mrb[28].mxu0 %vm175_vm2, %v8323_v50 }
  0x47   :  { %7036 = vmatmul.mubr.msk.bf16.gmra.mrb[24].mxu1 %vm175_vm2, %v8279_v33  ;;  %384 = vmatprep.mubr.bf16.mxu0 %v10992_v2 }
  0x48   :  { %1088 = vmatprep.mubr.bf16.mxu1 %v10992_v2 }
  0x4e   :  { %6203 = vmatmul.mubr.msk.bf16.vlgmr.msra.gmra.mrb[32].mxu0 %vm175_vm2, %v8285_v36 }
  0x4f   :  { %6280 = vmatmul.mubr.msk.bf16.vlgmr.msra.gmra.mrb[8].mxu1 %vm175_vm2, %v8417_v6  ;;  %582 = vmatpush1.bf16.msra.mxu0 %v7453_v3 }
  0x50   :  { %7040 = vmatpush3.bf16.msra.mxu1 %v7452_v62  ;;  %394 = vmatprep.mubr.bf16.mxu0 %v10992_v2 }
  0x51   :  { %1098 = vmatprep.mubr.bf16.mxu1 %v10992_v2  ;;  %7265 = vmatprep.subr.msk.bf16.mxu1 %vm188_vm0, %v7456_v5 }
  0x52   :  { %6225 = vmatprep.subr.msk.bf16.mxu0 %vm188_vm0, %v7457_v7 }
  0x53   :  { %584 = vmatpush1.bf16.msra.mxu0 %v561_v10 }
  0x54   :  { %7042 = vmatpush3.bf16.msra.mxu1 %v983_v12  ;;  %723 = vmatprep.subr.bf16.mxu0 %v7462_v8 }
  0x56   :  { %6204 = vmatmul.mubr.msk.bf16.gmra.mrb[36].mxu0 %vm175_vm2, %v8296_v40 }
  0x57   :  { %6281 = vmatmul.mubr.msk.bf16.gmra.mrb[12].mxu1 %vm175_vm2, %v8437_v14  ;;  %404 = vmatprep.mubr.bf16.mxu0 %v10992_v2 }
  0x58   :  { %1108 = vmatprep.mubr.bf16.mxu1 %v10992_v2 }
  0x5e   :  { %6205 = vmatmul.mubr.msk.bf16.gmra.mrb[40].mxu0 %vm175_vm2, %v8312_v46 }
  0x5f   :  { %6282 = vmatmul.mubr.msk.bf16.gmra.mrb[16].mxu1 %vm175_vm2, %v8450_v16  ;;  %414 = vmatprep.mubr.bf16.mxu0 %v10992_v2 }
  0x60   :  { %1118 = vmatprep.mubr.bf16.mxu1 %v10992_v2 }
  0x66   :  { %6206 = vmatmul.mubr.msk.bf16.gmra.mrb[44].mxu0 %vm175_vm2, %v8323_v50 }
  0x67   :  { %6283 = vmatmul.mubr.msk.bf16.gmra.mrb[28].mxu1 %vm175_vm2, %v8446_v15  ;;  %613 = vmatprep.mubr.bf16.mxu0 %v10992_v2 }
  0x68   :  { %7043 = vmatprep.mubr.msk.bf16.mxu1 %vm175_vm2, %v8417_v6 }
  0x6e   :  { %6226 = vmatmul.mubr.msk.bf16.vlgmr.msra.gmra.mrb[0].mxu0 %vm175_vm2, %v8243_v11 }
  0x6f   :  { %7044 = vmatmul.mubr.msk.bf16.vlgmr.msra.gmra.mrb[0].mxu1 %vm175_vm2, %v8437_v14  ;;  %724 = vmatpush1.bf16.msra.mxu0 %v7460_v17 }
  0x70   :  { %623 = vmatprep.mubr.bf16.mxu0 %v10992_v2  ;;  %7047 = vmatprep.mubr.msk.bf16.mxu1 %vm175_vm2, %v8450_v16 }
  0x71   :  { %6235 = vmatprep.subr.msk.bf16.mxu0 %vm188_vm0, %v7463_v20 }
  0x73   :  { %726 = vmatpush1.bf16.msra.mxu0 %v573_v22 }
  0x74   :  { %985 = vmatprep.subr.bf16.mxu0 %v7468_v21 }
  0x76   :  { %6227 = vmatmul.mubr.msk.bf16.gmra.mrb[4].mxu0 %vm175_vm2, %v8247_v13 }
  0x77   :  { %7048 = vmatmul.mubr.msk.bf16.gmra.mrb[32].mxu1 %vm175_vm2, %v8446_v15  ;;  %633 = vmatprep.mubr.bf16.mxu0 %v10992_v2 }
  0x78   :  { %3061 = vmatprep.mubr.bf16.mxu1 %v10992_v2 }
  0x7e   :  { %6228 = vmatmul.mubr.msk.bf16.gmra.mrb[8].mxu0 %vm175_vm2, %v8258_v19 }
  0x7f   :  { %643 = vmatprep.mubr.bf16.mxu0 %v10992_v2 }
  0x86   :  { %6229 = vmatmul.mubr.msk.bf16.gmra.mrb[48].mxu0 %vm175_vm2, %v8279_v33 }
  0x87   :  { %755 = vmatprep.mubr.bf16.mxu0 %v10992_v2 }
  0x8e   :  { %6236 = vmatmul.mubr.msk.bf16.vlgmr.msra.gmra.mrb[32].mxu0 %vm175_vm2, %v8243_v11 }
  0x8f   :  { %986 = vmatpush1.bf16.msra.mxu0 %v7466_v23  ;;  %765 = vmatprep.mubr.bf16.mxu0 %v10992_v2 }
  0x90   :  { %6274 = vmatprep.subr.msk.bf16.mxu0 %vm188_vm0, %v7469_v24 }
  0x93   :  { %988 = vmatpush1.bf16.msra.mxu0 %v965_v27 }
  0x94   :  { %1127 = vmatprep.subr.bf16.mxu0 %v7474_v26 }
  0x96   :  { %6237 = vmatmul.mubr.msk.bf16.gmra.mrb[36].mxu0 %vm175_vm2, %v8247_v13 }
  0x97   :  { %775 = vmatprep.mubr.bf16.mxu0 %v10992_v2 }
  0x9e   :  { %6238 = vmatmul.mubr.msk.bf16.gmra.mrb[40].mxu0 %vm175_vm2, %v8258_v19 }
  0x9f   :  { %785 = vmatprep.mubr.bf16.mxu0 %v10992_v2 }
  0xa6   :  { %6239 = vmatmul.mubr.msk.bf16.gmra.mrb[52].mxu0 %vm175_vm2, %v8279_v33 }
  0xa7   :  { %1017 = vmatprep.mubr.bf16.mxu0 %v10992_v2 }
  0xa8   :  { %16 = vsyncpa [#allocation5], 0  ;;  %v7472_v11 = vld [vmem:[%s10983_s1 + $0xf0] ss:$28 sps:$4 sm:$0xff]   ;;  %v1313_v53 = vlaneseq  ;;  %s8155_s27 = smov 96   ;;  %vm2803_vm4 = vcmask 261120  }
  0xa9   :  { %v7475_v13 = vld [vmem:[%s10983_s1 + $0x12c] ss:$28 sps:$4 sm:$0x3f]   ;;  %vm1832_vm5 = vcmask 785408   ;;  %s8156_s25 = smov 112   ;;  %vm5021_vm6 = vcmask 916480  }
  0xaa   :  { %v7477_v19 = vld [vmem:[%s10983_s1 + $0x128] ss:$28 sps:$4 sm:$0x3f]   ;;  %v8570_v55 = vshrl.u32 %v1313_v53, 7  ;;  %vm5448_vm7 = vcmask 1043456   ;;  %vm5641_vm8 = vcmask 1041408  }
  0xab   :  { %v977_v28 = vsel %vm188_vm0, %v7477_v19, 0  ;;  %vm6063_vm9 = vcmask 392192   ;;  %vm6090_vm10 = vcmask 647168   ;;  %s8159_s21 = smov [#allocation2]   ;;  %vm6131_vm11 = vcmask 651268  }
  0xac   :  { %v1323_v4 = vsub.s32 2, %v8570_v55  ;;  %v1327_v7 = vsub.s32 3, %v8570_v55  ;;  %s6140_s22 = sshll.u32 %s8159_s21, 4  ;;  %s6141_s22 = int_to_ptr.vmem [resolvable:$true] %s6140_s22 }
  0xad   :  { %p8111_p1 = scmp.lt.s32.totalorder %s6141_s22, %s6141_s22 }
  0xae   :  { %6275 = vmatmul.mubr.msk.bf16.vlgmr.msra.gmra.mrb[0].mxu0 %vm175_vm2, %v8417_v6 }
  0xaf   :  { %1027 = vmatprep.mubr.bf16.mxu0 %v10992_v2  ;;  %1128 = vmatpush1.bf16.msra.mxu0 %v7472_v11 }
  0xb0   :  { %6284 = vmatprep.subr.msk.bf16.mxu0 %vm188_vm0, %v7475_v13 }
  0xb3   :  { %1130 = vmatpush1.bf16.msra.mxu0 %v977_v28 }
  0xb6   :  { %6276 = vmatmul.mubr.msk.bf16.gmra.mrb[4].mxu0 %vm175_vm2, %v8437_v14 }
  0xb7   :  { %1037 = vmatprep.mubr.bf16.mxu0 %v10992_v2 }
  0xbe   :  { %6277 = vmatmul.mubr.msk.bf16.gmra.mrb[8].mxu0 %vm175_vm2, %v8450_v16 }
  0xbf   :  { %1047 = vmatprep.mubr.bf16.mxu0 %v10992_v2 }
  0xc6   :  { %6278 = vmatmul.mubr.msk.bf16.gmra.mrb[56].mxu0 %vm175_vm2, %v8446_v15 }
  0xc7   :  { %1159 = vmatprep.mubr.bf16.mxu0 %v10992_v2 }
  0xce   :  { %6285 = vmatmul.mubr.msk.bf16.vlgmr.msra.gmra.mrb[32].mxu0 %vm175_vm2, %v8417_v6  ;;  %v8586_v6 = vld [vmem:[%s10984_s2] sm:$0x7f]  ;;  %s8157_s2 = smov 80  }
  0xcf   :  { %1169 = vmatprep.mubr.bf16.mxu0 %v10992_v2  ;;  %v8590_v8 = vrot.slane %v8586_v6, %v1323_v4  ;;  %v8593_v10 = vrot.slane %v8586_v6, %v1327_v7 }
  0xd6   :  { %6286 = vmatmul.mubr.msk.bf16.gmra.mrb[36].mxu0 %vm175_vm2, %v8437_v14 }
  0xd7   :  { %1179 = vmatprep.mubr.bf16.mxu0 %v10992_v2 }
  0xde   :  { %6287 = vmatmul.mubr.msk.bf16.gmra.mrb[40].mxu0 %vm175_vm2, %v8450_v16 }
  0xdf   :  { %1189 = vmatprep.mubr.bf16.mxu0 %v10992_v2 }
  0xe6   :  { %6288 = vmatmul.mubr.msk.bf16.gmra.mrb[60].mxu0 %vm175_vm2, %v8446_v15 }
  0xea   :  { %v7025_v29 = vpop.f32.mrb[4].mxu1 }
  0xeb   :  { %v473_v30 = vpop.f32.mrb[5].mxu1 }
  0xec   :  { %v7026_v31 = vpop.f32.mrb[6].mxu1 }
  0xed   :  { %v476_v32 = vpop.f32.mrb[7].mxu1 }
  0xf9   :  { %v8558_v33 = vpop.f32.mrb[12].mxu0 }
  0xfa   :  { %v8560_v34 = vpop.f32.mrb[13].mxu0 }
  0xfb   :  { %v278_v35 = vpop.f32.mrb[14].mxu0 }
  0xfc   :  { %v279_v36 = vpop.f32.mrb[15].mxu0 }
 0x101   :  { %v315_v37 = vpop.f32.mrb[16].mxu0 }
 0x102   :  { %v317_v38 = vpop.f32.mrb[17].mxu0 }
 0x103   :  { %v319_v39 = vpop.f32.mrb[18].mxu0 }
 0x104   :  { %v321_v40 = vpop.f32.mrb[19].mxu0 }
 0x109   :  { %v325_v41 = vpop.f32.mrb[20].mxu0 }
 0x10a   :  { %v716_v42 = vpop.f32.mrb[20].mxu1  ;;  %v327_v43 = vpop.f32.mrb[21].mxu0 }
 0x10b   :  { %v718_v44 = vpop.f32.mrb[21].mxu1  ;;  %v329_v45 = vpop.f32.mrb[22].mxu0 }
 0x10c   :  { %v720_v46 = vpop.f32.mrb[22].mxu1  ;;  %v331_v47 = vpop.f32.mrb[23].mxu0 }
 0x10d   :  { %v721_v48 = vpop.f32.mrb[23].mxu1 }
 0x111   :  { %v8562_v49 = vpop.f32.mrb[24].mxu0 }
 0x112   :  { %v8564_v50 = vpop.f32.mrb[25].mxu0 }
 0x113   :  { %v8566_v51 = vpop.f32.mrb[26].mxu0 }
 0x114   :  { %v8568_v52 = vpop.f32.mrb[27].mxu0 }
 0x119   :  { %v345_v54 = vpop.f32.mrb[28].mxu0 }
 0x11a   :  { %v8572_v56 = vadd.f32 %v716_v42, %v345_v54  ;;  %v7037_v57 = vpop.f32.mrb[24].mxu1  ;;  %v347_v58 = vpop.f32.mrb[29].mxu0 }
 0x11b   :  { %v8574_v59 = vadd.f32 %v7037_v57, %v7025_v29  ;;  %v8576_v60 = vadd.f32 %v718_v44, %v347_v58  ;;  %v844_v61 = vpop.f32.mrb[25].mxu1  ;;  %v349_v62 = vpop.f32.mrb[30].mxu0 }
 0x11c   :  { %v8578_v63 = vadd.f32 %v844_v61, %v473_v30  ;;  %v7038_v0 = vpop.f32.mrb[26].mxu1  ;;  %v350_v1 = vpop.f32.mrb[31].mxu0 }
 0x11d   :  { %v847_v3 = vpop.f32.mrb[27].mxu1 }
 0x11e   :  { %v8581_v5 = vadd.f32 %v847_v3, %v476_v32 }
 0x122   :  { %v1090_v9 = vpop.f32.mrb[8].mxu1 }
 0x123   :  { %v7051_v12 = vadd.f32 %v1090_v9, %v315_v37  ;;  %v1092_v14 = vpop.f32.mrb[9].mxu1 }
 0x124   :  { %v7052_v15 = vadd.f32 %v1092_v14, %v317_v38  ;;  %v1094_v16 = vpop.f32.mrb[10].mxu1 }
 0x125   :  { %v1350_v17 = vadd.f32 %v7051_v12, %v8590_v8  ;;  %v7053_v18 = vadd.f32 %v1094_v16, %v319_v39  ;;  %v1096_v20 = vpop.f32.mrb[11].mxu1 }
 0x126   :  { %v1351_v21 = vadd.f32 %v7052_v15, %v8593_v10  ;;  %v7054_v22 = vadd.f32 %v1096_v20, %v321_v40 }
 0x127   :  { %v1399_v23 = vmax.f32 %v1350_v17, 0.0  ;;  %v1357_v24 = vadd.f32 %v7053_v18, %v8590_v8 }
 0x128   :  { %v1400_v25 = vmax.f32 %v1351_v21, 0.0  ;;  %v1358_v26 = vadd.f32 %v7054_v22, %v8593_v10 }
 0x129   :  { %v1406_v27 = vmax.f32 %v1357_v24, 0.0  ;;  %v1502_v19 = vrot.slane %v1399_v23, 1 }
 0x12a   :  { %v1407_v11 = vmax.f32 %v1358_v26, 0.0  ;;  %v1100_v13 = vpop.f32.mrb[12].mxu1  ;;  %v1505_v31 = vrot.slane %v1400_v25, 1 }
 0x12b   :  { %v1503_v28 = vrot.slane %v1406_v27, 1  ;;  %v7055_v29 = vadd.f32 %v1100_v13, %v325_v41  ;;  %v1102_v30 = vpop.f32.mrb[13].mxu1 }
 0x12c   :  { %v1506_v32 = vrot.slane %v1407_v11, 1  ;;  %v7056_v35 = vadd.f32 %v1102_v30, %v327_v43  ;;  %v1104_v36 = vpop.f32.mrb[14].mxu1 }
 0x12d   :  { %v1364_v37 = vadd.f32 %v7055_v29, %v8590_v8  ;;  %v7057_v38 = vadd.f32 %v1104_v36, %v329_v45  ;;  %v1106_v39 = vpop.f32.mrb[15].mxu1  ;;  %v1504_v40 = vsel %vm879_vm3, %v1502_v19, %v1503_v28 }
 0x12e   :  { %v1365_v42 = vadd.f32 %v7056_v35, %v8593_v10  ;;  %v7058_v44 = vadd.f32 %v1106_v39, %v331_v47  ;;  %v8602_v46 = vmax.f32 %v1399_v23, %v1504_v40  ;;  %v1507_v48 = vsel %vm879_vm3, %v1505_v31, %v1506_v32 }
 0x12f   :  { %v1413_v53 = vmax.f32 %v1364_v37, 0.0  ;;  %v1371_v41 = vadd.f32 %v7057_v38, %v8590_v8  ;;  %v8606_v54 = vmax.f32 %v1400_v25, %v1507_v48  ;;  %v1339_v37 = vsub.s32 6, %v8570_v55 }
 0x130   :  { %v1414_v43 = vmax.f32 %v1365_v42, 0.0  ;;  %v1372_v57 = vadd.f32 %v7058_v44, %v8593_v10 }
 0x131   :  { %v1521_v58 = vrot.slane %v1413_v53, 1  ;;  %v1420_v45 = vmax.f32 %v1371_v41, 0.0 }
 0x132   :  { %v1523_v61 = vrot.slane %v1414_v43, 1  ;;  %v1421_v62 = vmax.f32 %v1372_v57, 0.0  ;;  %v1110_v0 = vpop.f32.mrb[16].mxu1 }
 0x133   :  { %v1535_v1 = vrot.slane %v1420_v45, 1  ;;  %v7059_v47 = vadd.f32 %v1110_v0, %v8562_v49  ;;  %v1112_v3 = vpop.f32.mrb[17].mxu1  ;;  %v1522_v4 = vsel %vm879_vm3, %v1503_v28, %v1521_v58  ;;  %v1340_v0 = vrot.slane %v8586_v6, %v1339_v37 }
 0x134   :  { %v1537_v7 = vrot.slane %v1421_v62, 1  ;;  %v7060_v9 = vadd.f32 %v1112_v3, %v8564_v50  ;;  %v1114_v12 = vpop.f32.mrb[18].mxu1  ;;  %v8612_v14 = vmax.f32 %v1406_v27, %v1522_v4  ;;  %v1524_v15 = vsel %vm879_vm3, %v1506_v32, %v1523_v61 }
 0x135   :  { %v1378_v16 = vadd.f32 %v7059_v47, %v8590_v8  ;;  %v7061_v17 = vadd.f32 %v1114_v12, %v8566_v51  ;;  %v1116_v18 = vpop.f32.mrb[19].mxu1  ;;  %v1536_v20 = vsel %vm879_vm3, %v1521_v58, %v1535_v1  ;;  %v8618_v21 = vmax.f32 %v1407_v11, %v1524_v15 }
 0x136   :  { %v1379_v49 = vadd.f32 %v7060_v9, %v8593_v10  ;;  %v7062_v22 = vadd.f32 %v1116_v18, %v8568_v52  ;;  %v8622_v23 = vmax.f32 %v1413_v53, %v1536_v20  ;;  %v1538_v50 = vsel %vm879_vm3, %v1523_v61, %v1537_v7 }
 0x137   :  { %v1427_v24 = vmax.f32 %v1378_v16, 0.0  ;;  %v1385_v25 = vadd.f32 %v7061_v17, %v8590_v8  ;;  %v8626_v26 = vmax.f32 %v1414_v43, %v1538_v50 }
 0x138   :  { %v1428_v27 = vmax.f32 %v1379_v49, 0.0  ;;  %v1386_v51 = vadd.f32 %v7062_v22, %v8593_v10 }
 0x139   :  { %v1549_v13 = vrot.slane %v1427_v24, 1  ;;  %v1434_v19 = vmax.f32 %v1385_v25, 0.0  ;;  %v8629_v11 = vpop.f32.mrb[44].mxu0 }
 0x13a   :  { %v1551_v28 = vrot.slane %v1428_v27, 1  ;;  %v1435_v29 = vmax.f32 %v1386_v51, 0.0  ;;  %v1120_v30 = vpop.f32.mrb[28].mxu1  ;;  %v8631_v52 = vpop.f32.mrb[45].mxu0 }
 0x13b   :  { %v1563_v31 = vrot.slane %v1434_v19, 1  ;;  %v1306_v32 = vadd.f32 %v1120_v30, %v8572_v56  ;;  %v1122_v35 = vpop.f32.mrb[29].mxu1  ;;  %v420_v36 = vpop.f32.mrb[46].mxu0  ;;  %v1550_v38 = vsel %vm879_vm3, %v1535_v1, %v1549_v13 }
 0x13c   :  { %v1565_v39 = vrot.slane %v1435_v29, 1  ;;  %v1307_v40 = vadd.f32 %v1122_v35, %v8576_v60  ;;  %v1124_v42 = vpop.f32.mrb[30].mxu1  ;;  %v421_v44 = vpop.f32.mrb[47].mxu0  ;;  %v8637_v48 = vmax.f32 %v1420_v45, %v1550_v38  ;;  %v1552_v53 = vsel %vm879_vm3, %v1537_v7, %v1551_v28 }
 0x13d   :  { %v8641_v41 = vadd.f32 %v8590_v8, %v1306_v32  ;;  %v1125_v43 = vpop.f32.mrb[31].mxu1  ;;  %v1564_v56 = vsel %vm879_vm3, %v1549_v13, %v1563_v31  ;;  %v8644_v57 = vmax.f32 %v1421_v62, %v1552_v53 }
 0x13e   :  { %v8647_v58 = vadd.f32 %v8593_v10, %v1307_v40  ;;  %v8649_v61 = vmax.f32 %v1427_v24, %v1564_v56  ;;  %v1566_v60 = vsel %vm879_vm3, %v1551_v28, %v1565_v39 }
 0x13f   :  { %v1441_v45 = vmax.f32 %v8641_v41, 0.0  ;;  %v8654_v1 = vmax.f32 %v1428_v27, %v1566_v60 }
 0x140   :  { %v10994_v8 = vmax.f32 %v8647_v58, 0.0 }
 0x141   :  { %v8659_v47 = vrot.slane %v1441_v45, 1 }
 0x142   :  { %v8663_v10 = vrot.slane %v10994_v8, 1  ;;  %v7045_v62 = vpop.f32.mrb[0].mxu1  ;;  %v1335_v8 = vsub.s32 5, %v8570_v55 }
 0x143   :  { %v1368_v3 = vadd.f32 %v7045_v62, %v1340_v0  ;;  %v1232_v4 = vpop.f32.mrb[1].mxu1  ;;  %v1578_v7 = vsel %vm879_vm3, %v1563_v31, %v8659_v47  ;;  %v7480_v31 = vld [vmem:[%s10985_s3 + $0x624] ss:$8 sps:$4 sm:$0xff]   ;;  %v7481_v62 = vld [vmem:[%s10985_s3 + $0x630] ss:$8 sps:$4 sm:$0xff]  }
 0x144   :  { %v1354_v9 = vadd.f32 %v1340_v0, %v1232_v4  ;;  %v7046_v12 = vpop.f32.mrb[2].mxu1  ;;  %v8667_v15 = vmax.f32 %v1434_v19, %v1578_v7  ;;  %v1580_v16 = vsel %vm879_vm3, %v1565_v39, %v8663_v10  ;;  %v7478_v19 = vld [vmem:[%s10985_s3 + $0x620] ss:$8 sps:$4 sm:$0xff]   ;;  %3029 = vmatprep.subr.bf16.mxu1 %v7480_v31 }
 0x145   :  { %v1417_v17 = vmax.f32 %v1368_v3, 0.0  ;;  %v1375_v18 = vadd.f32 %v7046_v12, %v1340_v0  ;;  %v1235_v20 = vpop.f32.mrb[3].mxu1  ;;  %v8671_v49 = vmax.f32 %v1435_v29, %v1580_v16  ;;  %3030 = vmatpush1.bf16.msra.mxu1 %v7478_v19  ;;  %v7486_v12 = vld [vmem:[%s10985_s3 + $0x4] ss:$8 sps:$4 sm:$0xff]  }
 0x146   :  { %11036 = vst [vmem:[#allocation8_spill] sm:$0xff] %v8667_v15  ;;  %v1403_v22 = vmax.f32 %v1354_v9, 0.0  ;;  %v1361_v50 = vadd.f32 %v1340_v0, %v1235_v20  ;;  %v7492_v19 = vld [vmem:[%s10985_s3 + $0x324] ss:$8 sps:$4 sm:$0xff]  }
 0x147   :  { %v1424_v24 = vmax.f32 %v1375_v18, 0.0  ;;  %v1529_v27 = vrot.slane %v1417_v17, 1  ;;  %2816 = vmatprep.subr.bf16.mxu0 %v7492_v19  ;;  %v7552_v19 = vld [vmem:[%s10985_s3 + $0x3c4] ss:$8 sps:$4 sm:$0xff]  }
 0x148   :  { %v1410_v25 = vmax.f32 %v1361_v50, 0.0  ;;  %v1514_v51 = vrot.slane %v1403_v22, 1 }
 0x149   :  { %v1543_v13 = vrot.slane %v1424_v24, 1 }
 0x14a   :  { %v1515_v28 = vrot.slane %v1410_v25, 1  ;;  %v7049_v30 = vpop.f32.mrb[32].mxu1 }
 0x14b   :  { %v1310_v29 = vadd.f32 %v7049_v30, %v8574_v59  ;;  %v1248_v32 = vpop.f32.mrb[33].mxu1  ;;  %v1544_v35 = vsel %vm879_vm3, %v1529_v27, %v1543_v13  ;;  %v7490_v30 = vld [vmem:[%s10985_s3 + $0x320] ss:$8 sps:$4 sm:$0xff]  }
 0x14c   :  { %v1530_v36 = vsel %vm879_vm3, %v1515_v28, %v1529_v27  ;;  %v1296_v37 = vadd.f32 %v1248_v32, %v8578_v63  ;;  %v7050_v38 = vpop.f32.mrb[34].mxu1  ;;  %v1516_v39 = vsel %vm879_vm3, %v1514_v51, %v1515_v28  ;;  %v8684_v40 = vmax.f32 %v1417_v17, %v1544_v35  ;;  %v7483_v63 = vld [vmem:[%s10985_s3 + $0x634] ss:$8 sps:$4 sm:$0xff]   ;;  %2817 = vmatpush1.bf16.msra.mxu0 %v7490_v30 }
 0x14d   :  { %v8686_v42 = vmax.f32 %v1410_v25, %v1530_v36  ;;  %v1396_v44 = vadd.f32 %v1340_v0, %v1310_v29  ;;  %v1251_v53 = vpop.f32.mrb[35].mxu1  ;;  %v8688_v43 = vmax.f32 %v1403_v22, %v1516_v39  ;;  %3031 = vmatprep.subr.bf16.mxu1 %v7483_v63  ;;  %v7498_v36 = vld [vmem:[%s10985_s3 + $0x334] ss:$8 sps:$4 sm:$0xff]   ;;  %v7508_v38 = vld [vmem:[%s10985_s3 + $0x350] ss:$8 sps:$4 sm:$0xff]  }
 0x14e   :  { %v1382_v59 = vadd.f32 %v1340_v0, %v1296_v37  ;;  %v1303_v56 = vadd.f32 %v1251_v53, %v8581_v5  ;;  %3032 = vmatpush1.bf16.msra.mxu1 %v7481_v62  ;;  %2818 = vmatprep.subr.bf16.mxu0 %v7498_v36  ;;  %v7504_v37 = vld [vmem:[%s10985_s3 + $0x344] ss:$8 sps:$4 sm:$0xff]   ;;  %v7510_v39 = vld [vmem:[%s10985_s3 + $0x354] ss:$8 sps:$4 sm:$0xff]   ;;  %v7526_v63 = vld [vmem:[%s10985_s3 + $0x380] ss:$8 sps:$4 sm:$0xff]  }
 0x14f   :  { %v7273_v60 = vpack.i.bf16 %v8686_v42, %v8688_v43  ;;  %v1445_v3 = vmax.f32 %v1396_v44, 0.0  ;;  %3612 = vmatprep.subr.bf16.mxu1 %v7486_v12  ;;  %v7514_v44 = vld [vmem:[%s10985_s3 + $0x360] ss:$8 sps:$4 sm:$0xff]   ;;  %v7516_v53 = vld [vmem:[%s10985_s3 + $0x364] ss:$8 sps:$4 sm:$0xff]  }
 0x150   :  { %v1431_v4 = vmax.f32 %v1382_v59, 0.0  ;;  %v1389_v7 = vadd.f32 %v1340_v0, %v1303_v56  ;;  %v7520_v59 = vld [vmem:[%s10985_s3 + $0x370] ss:$8 sps:$4 sm:$0xff]   ;;  %v7522_v56 = vld [vmem:[%s10985_s3 + $0x374] ss:$8 sps:$4 sm:$0xff]  }
 0x151   :  { %7274 = vrot.lane.b32.xlu0 %v7273_v60, %s8155_s27  ;;  %v1585_v16 = vrot.slane %v1445_v3, 1  ;;  %v7528_v60 = vld [vmem:[%s10985_s3 + $0x384] ss:$8 sps:$4 sm:$0xff]   ;;  %v7532_v62 = vld [vmem:[%s10985_s3 + $0x390] ss:$8 sps:$4 sm:$0xff]  }
 0x152   :  { %v1557_v5 = vrot.slane %v1431_v4, 1  ;;  %v1438_v9 = vmax.f32 %v1389_v7, 0.0  ;;  %v7538_v12 = vld [vmem:[%s10985_s3 + $0x3a0] ss:$8 sps:$4 sm:$0xff]  }
 0x153   :  { %v8730_v35 = vmax.f32 %v1445_v3, %v1585_v16  ;;  %v7534_v3 = vld [vmem:[%s10985_s3 + $0x394] ss:$8 sps:$4 sm:$0xff]  }
 0x154   :  { %v1571_v17 = vrot.slane %v1438_v9, 1  ;;  %v1558_v18 = vsel %vm879_vm3, %v1543_v13, %v1557_v5 }
 0x155   :  { %v8704_v20 = vmax.f32 %v1424_v24, %v1558_v18 }
 0x156   :  { %v1572_v0 = vsel %vm879_vm3, %v1557_v5, %v1571_v17  ;;  %v1586_v22 = vsel %vm879_vm3, %v1571_v17, %v1585_v16  ;;  %v7540_v16 = vld [vmem:[%s10985_s3 + $0x3a4] ss:$8 sps:$4 sm:$0xff]  }
 0x157   :  { %v7278_v50 = vpack.i.bf16 %v8704_v20, %v8684_v40  ;;  %v8710_v25 = vmax.f32 %v1431_v4, %v1572_v0  ;;  %v8712_v27 = vmax.f32 %v1438_v9, %v1586_v22  ;;  %v8780_v9 = vsub.s32 0, %v8570_v55 }
 0x158   :  { %v8792_v0 = vsub.s32 1, %v8570_v55 }
 0x159   :  { %7279 = vrot.lane.b32.xlu0 %v7278_v50, %s8155_s27  ;;  %v645_v51 = vpop.f32.mrb[48].mxu0  ;;  %v7283_v13 = vpack.i.bf16 %v8712_v27, %v8710_v25  ;;  %11037 = vst [vmem:[#allocation9_spill] sm:$0xff] %v8780_v9  ;;  %v8796_v22 = vrot.slane %v8586_v6, %v8780_v9  ;;  %v7544_v50 = vld [vmem:[%s10985_s3 + $0x3b0] ss:$8 sps:$4 sm:$0xff]  }
 0x15a   :  { %v8718_v24 = vadd.f32 %v645_v51, %v8558_v33  ;;  %v647_v28 = vpop.f32.mrb[49].mxu0  ;;  %v7496_v33 = vld [vmem:[%s10985_s3 + $0x330] ss:$8 sps:$4 sm:$0xff]   ;;  %11038 = vst [vmem:[#allocation10_spill] sm:$0xff] %v8792_v0  ;;  %v8806_v51 = vrot.slane %v8586_v6, %v8792_v0 }
 0x15b   :  { %7284 = vrot.lane.b32.xlu1 %v7283_v13, %s8155_s27  ;;  %v8728_v31 = vadd.f32 %v647_v28, %v8560_v34  ;;  %v649_v29 = vpop.f32.mrb[50].mxu0  ;;  %2819 = vmatpush1.bf16.msra.mxu0 %v7496_v33  ;;  %v7502_v34 = vld [vmem:[%s10985_s3 + $0x340] ss:$8 sps:$4 sm:$0xff]  }
 0x15c   :  { %v650_v32 = vpop.f32.mrb[51].mxu0  ;;  %2820 = vmatprep.subr.bf16.mxu0 %v7504_v37  ;;  %v7550_v33 = vld [vmem:[%s10985_s3 + $0x3c0] ss:$8 sps:$4 sm:$0xff]  }
 0x15f   :  { %1830 = vrot.lane.b32.xlu1 %v8730_v35, %s8155_s27  ;;  %2821 = vmatpush1.bf16.msra.mxu0 %v7502_v34 }
 0x160   :  { %2822 = vmatprep.subr.bf16.mxu0 %v7510_v39 }
 0x163   :  { %2823 = vmatpush1.bf16.msra.mxu0 %v7508_v38 }
 0x164   :  { %2824 = vmatprep.subr.bf16.mxu0 %v7516_v53  ;;  %v7556_v53 = vld [vmem:[%s10985_s3 + $0x3d0] ss:$8 sps:$4 sm:$0xff]  }
 0x167   :  { %2825 = vmatpush1.bf16.msra.mxu0 %v7514_v44 }
 0x168   :  { %2826 = vmatprep.subr.bf16.mxu0 %v7522_v56 }
 0x16b   :  { %2827 = vmatpush1.bf16.msra.mxu0 %v7520_v59  ;;  %v7558_v59 = vld [vmem:[%s10985_s3 + $0x3d4] ss:$8 sps:$4 sm:$0xff]  }
 0x16c   :  { %2828 = vmatprep.subr.bf16.mxu0 %v7528_v60 }
 0x16f   :  { %2829 = vmatpush1.bf16.msra.mxu0 %v7526_v63 }
 0x170   :  { %2830 = vmatprep.subr.bf16.mxu0 %v7534_v3 }
 0x173   :  { %2831 = vmatpush1.bf16.msra.mxu0 %v7532_v62 }
 0x174   :  { %2832 = vmatprep.subr.bf16.mxu0 %v7540_v16 }
 0x177   :  { %2833 = vmatpush1.bf16.msra.mxu0 %v7538_v12 }
 0x179   :  { %v787_v4 = vpop.f32.mrb[52].mxu0 }
 0x17a   :  { %v8777_v7 = vadd.f32 %v787_v4, %v8629_v11  ;;  %v789_v5 = vpop.f32.mrb[53].mxu0 }
 0x17b   :  { %v8789_v17 = vadd.f32 %v789_v5, %v8631_v52  ;;  %v791_v18 = vpop.f32.mrb[54].mxu0  ;;  %v7546_v52 = vld [vmem:[%s10985_s3 + $0x3b4] ss:$8 sps:$4 sm:$0xff]  }
 0x17c   :  { %v792_v11 = vpop.f32.mrb[55].mxu0  ;;  %2834 = vmatprep.subr.bf16.mxu0 %v7546_v52  ;;  %v7564_v18 = vld [vmem:[%s10985_s3 + $0x3e4] ss:$8 sps:$4 sm:$0xff]  }
 0x17d   :  { %2835 = vmatpush1.bf16.msra.mxu0 %v7544_v50 }
 0x17e   :  { %2836 = vmatprep.subr.bf16.mxu0 %v7552_v19 }
 0x181   :  { %v1019_v13 = vpop.f32.mrb[0].mxu0  ;;  %2837 = vmatpush1.bf16.msra.mxu0 %v7550_v33 }
 0x182   :  { %v1348_v28 = vadd.f32 %v8796_v22, %v1019_v13  ;;  %v1021_v30 = vpop.f32.mrb[1].mxu0  ;;  %2838 = vmatprep.subr.bf16.mxu0 %v7558_v59 }
 0x183   :  { %v1349_v29 = vadd.f32 %v8806_v51, %v1021_v30  ;;  %v1023_v32 = vpop.f32.mrb[2].mxu0 }
 0x184   :  { %v1397_v36 = vmax.f32 %v1348_v28, 0.0  ;;  %v1355_v34 = vadd.f32 %v8796_v22, %v1023_v32  ;;  %v1025_v37 = vpop.f32.mrb[3].mxu0  ;;  %v7562_v28 = vld [vmem:[%s10985_s3 + $0x3e0] ss:$8 sps:$4 sm:$0xff]  }
 0x185   :  { %v1398_v38 = vmax.f32 %v1349_v29, 0.0  ;;  %v1356_v39 = vadd.f32 %v8806_v51, %v1025_v37  ;;  %2839 = vmatpush1.bf16.msra.mxu0 %v7556_v53  ;;  %v7570_v53 = vld [vmem:[%s10985_s3 + $0x3f4] ss:$8 sps:$4 sm:$0xff]  }
 0x186   :  { %v1404_v44 = vmax.f32 %v1355_v34, 0.0  ;;  %v1496_v63 = vrot.slane %v1397_v36, 1  ;;  %2840 = vmatprep.subr.bf16.mxu0 %v7564_v18 }
 0x187   :  { %v1405_v56 = vmax.f32 %v1356_v39, 0.0  ;;  %v1499_v62 = vrot.slane %v1398_v38, 1 }
 0x188   :  { %v1497_v60 = vrot.slane %v1404_v44, 1 }
 0x189   :  { %v1500_v3 = vrot.slane %v1405_v56, 1  ;;  %v1029_v4 = vpop.f32.mrb[4].mxu0  ;;  %2841 = vmatpush1.bf16.msra.mxu0 %v7562_v28 }
 0x18a   :  { %v1362_v5 = vadd.f32 %v8796_v22, %v1029_v4  ;;  %v1031_v12 = vpop.f32.mrb[5].mxu0  ;;  %v1498_v16 = vsel %vm879_vm3, %v1496_v63, %v1497_v60  ;;  %2842 = vmatprep.subr.bf16.mxu0 %v7570_v53 }
 0x18b   :  { %v1363_v11 = vadd.f32 %v8806_v51, %v1031_v12  ;;  %v1033_v50 = vpop.f32.mrb[6].mxu0  ;;  %v1501_v52 = vsel %vm879_vm3, %v1499_v62, %v1500_v3  ;;  %v8831_v13 = vmax.f32 %v1397_v36, %v1498_v16 }
 0x18c   :  { %v1411_v30 = vmax.f32 %v1362_v5, 0.0  ;;  %v1369_v19 = vadd.f32 %v8796_v22, %v1033_v50  ;;  %v1035_v29 = vpop.f32.mrb[7].mxu0  ;;  %v8837_v32 = vmax.f32 %v1398_v38, %v1501_v52  ;;  %v7568_v38 = vld [vmem:[%s10985_s3 + $0x3f0] ss:$8 sps:$4 sm:$0xff]  }
 0x18d   :  { %v1412_v33 = vmax.f32 %v1363_v11, 0.0  ;;  %v1370_v34 = vadd.f32 %v8806_v51, %v1035_v29  ;;  %2843 = vmatpush1.bf16.msra.mxu0 %v7568_v38 }
 0x18e   :  { %v1517_v37 = vrot.slane %v1411_v30, 1  ;;  %v1418_v39 = vmax.f32 %v1369_v19, 0.0  ;;  %v7288_v36 = vpack.i.bf16 %v8602_v46, %v8837_v32  ;;  %v7576_v19 = vld [vmem:[%s10985_s3 + $0x404] ss:$8 sps:$4 sm:$0xff]  }
 0x18f   :  { %v1519_v59 = vrot.slane %v1412_v33, 1  ;;  %v1419_v63 = vmax.f32 %v1370_v34, 0.0  ;;  %2844 = vmatprep.subr.bf16.mxu0 %v7576_v19 }
 0x190   :  { %v1531_v62 = vrot.slane %v1418_v39, 1  ;;  %7289 = vrot.lane.b32.xlu0 %v7288_v36, %s8155_s27  ;;  %v1518_v4 = vsel %vm879_vm3, %v1497_v60, %v1517_v37 }
 0x191   :  { %v1533_v5 = vrot.slane %v1419_v63, 1  ;;  %v1039_v12 = vpop.f32.mrb[8].mxu0  ;;  %v8850_v16 = vmax.f32 %v1404_v44, %v1518_v4  ;;  %v1520_v18 = vsel %vm879_vm3, %v1500_v3, %v1519_v59 }
 0x192   :  { %v1376_v11 = vadd.f32 %v8796_v22, %v1039_v12  ;;  %v1041_v50 = vpop.f32.mrb[9].mxu0  ;;  %v8854_v52 = vmax.f32 %v1405_v56, %v1520_v18  ;;  %v1532_v28 = vsel %vm879_vm3, %v1517_v37, %v1531_v62  ;;  %v7574_v56 = vld [vmem:[%s10985_s3 + $0x400] ss:$8 sps:$4 sm:$0xff]  }
 0x193   :  { %v1377_v60 = vadd.f32 %v8806_v51, %v1041_v50  ;;  %v1043_v29 = vpop.f32.mrb[10].mxu0  ;;  %v7298_v44 = vpack.i.bf16 %v8850_v16, %v8831_v13  ;;  %v1534_v3 = vsel %vm879_vm3, %v1519_v59, %v1533_v5  ;;  %v8864_v34 = vmax.f32 %v1411_v30, %v1532_v28  ;;  %2845 = vmatpush1.bf16.msra.mxu0 %v7574_v56 }
 0x194   :  { %v1425_v36 = vmax.f32 %v1376_v11, 0.0  ;;  %v1383_v37 = vadd.f32 %v8796_v22, %v1043_v29  ;;  %v1045_v53 = vpop.f32.mrb[11].mxu0  ;;  %v7293_v38 = vpack.i.bf16 %v8612_v14, %v8854_v52  ;;  %v8872_v4 = vmax.f32 %v1412_v33, %v1534_v3  ;;  %v7582_v11 = vld [vmem:[%s10985_s3 + $0x414] ss:$8 sps:$4 sm:$0xff]   ;;  %v7580_v33 = vld [vmem:[%s10985_s3 + $0x410] ss:$8 sps:$4 sm:$0xff]  }
 0x195   :  { %v1426_v12 = vmax.f32 %v1377_v60, 0.0  ;;  %v1384_v18 = vadd.f32 %v8806_v51, %v1045_v53  ;;  %7299 = vrot.lane.b32.xlu0 %v7298_v44, %s8155_s27  ;;  %2846 = vmatprep.subr.bf16.mxu0 %v7582_v11  ;;  %v1331_v53 = vsub.s32 4, %v8570_v55 }
 0x196   :  { %v1545_v30 = vrot.slane %v1425_v36, 1  ;;  %v1432_v59 = vmax.f32 %v1383_v37, 0.0  ;;  %7294 = vrot.lane.b32.xlu1 %v7293_v38, %s8155_s27  ;;  %v7303_v60 = vpack.i.bf16 %v8622_v23, %v8872_v4 }
 0x197   :  { %v1547_v50 = vrot.slane %v1426_v12, 1  ;;  %v1433_v28 = vmax.f32 %v1384_v18, 0.0  ;;  %2847 = vmatpush1.bf16.msra.mxu0 %v7580_v33 }
 0x198   :  { %v1559_v19 = vrot.slane %v1432_v59, 1  ;;  %v1546_v29 = vsel %vm879_vm3, %v1531_v62, %v1545_v30 }
 0x199   :  { %v1561_v44 = vrot.slane %v1433_v28, 1  ;;  %v1049_v3 = vpop.f32.mrb[56].mxu0  ;;  %v8886_v56 = vmax.f32 %v1418_v39, %v1546_v29  ;;  %v1548_v37 = vsel %vm879_vm3, %v1533_v5, %v1547_v50  ;;  %v7588_v39 = vld [vmem:[%s10985_s3 + $0x424] ss:$8 sps:$4 sm:$0xff]  }
 0x19a   :  { %v1304_v38 = vadd.f32 %v1049_v3, %v8718_v24  ;;  %7304 = vrot.lane.b32.xlu1 %v7303_v60, %s8155_s27  ;;  %v1051_v18 = vpop.f32.mrb[57].mxu0  ;;  %v8892_v2 = vmax.f32 %v1419_v63, %v1548_v37  ;;  %v1560_v62 = vsel %vm879_vm3, %v1545_v30, %v1559_v19  ;;  %2887 = vmatprep.subr.bf16.mxu0 %v7588_v39 }
 0x19b   :  { %v1305_v5 = vadd.f32 %v1051_v18, %v8728_v31  ;;  %v7313_v11 = vpack.i.bf16 %v8886_v56, %v8864_v34  ;;  %v1053_v33 = vpop.f32.mrb[58].mxu0  ;;  %v1562_v24 = vsel %vm879_vm3, %v1547_v50, %v1561_v44  ;;  %v8903_v60 = vmax.f32 %v1425_v36, %v1560_v62 }
 0x19c   :  { %v1390_v63 = vadd.f32 %v8796_v22, %v1304_v38  ;;  %v7308_v55 = vpack.i.bf16 %v8637_v48, %v8892_v2  ;;  %v1054_v30 = vpop.f32.mrb[59].mxu0  ;;  %v8908_v29 = vmax.f32 %v1426_v12, %v1562_v24  ;;  %v8914_v50 = vrot.slane %v8586_v6, %v1331_v53 }
 0x19d   :  { %v1391_v3 = vadd.f32 %v8806_v51, %v1305_v5  ;;  %v8917_v22 = vrot.slane %v8586_v6, %v1335_v8 }
 0x19e   :  { %v1439_v31 = vmax.f32 %v1390_v63, 0.0  ;;  %7314 = vrot.lane.b32.xlu1 %v7313_v11, %s8155_s27  ;;  %7309 = vrot.lane.b32.xlu0 %v7308_v55, %s8155_s27  ;;  %v7318_v12 = vpack.i.bf16 %v8649_v61, %v8908_v29 }
 0x19f   :  { %v1440_v36 = vmax.f32 %v1391_v3, 0.0 }
 0x1a0   :  { %v1573_v37 = vrot.slane %v1439_v31, 1 }
 0x1a1   :  { %v1575_v38 = vrot.slane %v1440_v36, 1  ;;  %v1161_v18 = vpop.f32.mrb[32].mxu0 }
 0x1a2   :  { %v1352_v51 = vadd.f32 %v8914_v50, %v1161_v18  ;;  %7319 = vrot.lane.b32.xlu0 %v7318_v12, %s8155_s27  ;;  %v1163_v62 = vpop.f32.mrb[33].mxu0  ;;  %v1574_v39 = vsel %vm879_vm3, %v1559_v19, %v1573_v37  ;;  %v8931_v55 = vmax.f32 %v1439_v31, %v1573_v37 }
 0x1a3   :  { %v1353_v53 = vadd.f32 %v8917_v22, %v1163_v62  ;;  %v1165_v5 = vpop.f32.mrb[34].mxu0  ;;  %v8925_v11 = vmax.f32 %v1432_v59, %v1574_v39  ;;  %v1576_v6 = vsel %vm879_vm3, %v1561_v44, %v1575_v38  ;;  %v8936_v12 = vmax.f32 %v1440_v36, %v1575_v38 }
 0x1a4   :  { %v1401_v8 = vmax.f32 %v1352_v51, 0.0  ;;  %v1359_v33 = vadd.f32 %v8914_v50, %v1165_v5  ;;  %v1167_v24 = vpop.f32.mrb[35].mxu0  ;;  %v8929_v63 = vmax.f32 %v1433_v28, %v1576_v6  ;;  %v8944_v28 = vmax.f32 %v1441_v45, %v8659_v47 }
 0x1a5   :  { %v1402_v30 = vmax.f32 %v1353_v53, 0.0  ;;  %v1360_v3 = vadd.f32 %v8917_v22, %v1167_v24  ;;  %v7328_v19 = vpack.i.bf16 %v8925_v11, %v8903_v60  ;;  %v7338_v38 = vpack.i.bf16 %v8606_v54, %v8931_v55 }
 0x1a6   :  { %v1408_v59 = vmax.f32 %v1359_v33, 0.0  ;;  %v7323_v44 = vpack.i.bf16 %v8667_v15, %v8929_v63  ;;  %11039 = vst [vmem:[#allocation11_spill] sm:$0xff] %v8944_v28  ;;  %v1508_v31 = vrot.slane %v1401_v8, 1  ;;  %v7333_v5 = vpack.i.bf16 %v8944_v28, %v8936_v12 }
 0x1a7   :  { %v1409_v18 = vmax.f32 %v1360_v3, 0.0  ;;  %7329 = vrot.lane.b32.xlu0 %v7328_v19, %s8155_s27  ;;  %v1511_v51 = vrot.slane %v1402_v30, 1 }
 0x1a8   :  { %v1509_v37 = vrot.slane %v1408_v59, 1  ;;  %7324 = vrot.lane.b32.xlu1 %v7323_v44, %s8155_s27 }
 0x1a9   :  { %v1512_v62 = vrot.slane %v1409_v18, 1  ;;  %v1171_v36 = vpop.f32.mrb[36].mxu0 }
 0x1aa   :  { %v1366_v39 = vadd.f32 %v8914_v50, %v1171_v36  ;;  %v1173_v53 = vpop.f32.mrb[37].mxu0  ;;  %v1510_v41 = vsel %vm879_vm3, %v1508_v31, %v1509_v37 }
 0x1ab   :  { %v1367_v45 = vadd.f32 %v8917_v22, %v1173_v53  ;;  %v1175_v47 = vpop.f32.mrb[38].mxu0  ;;  %7339 = vrot.lane.b32.xlu0 %v7338_v38, %s8155_s27  ;;  %v8955_v6 = vmax.f32 %v1401_v8, %v1510_v41  ;;  %v1513_v33 = vsel %vm879_vm3, %v1511_v51, %v1512_v62 }
 0x1ac   :  { %v1415_v24 = vmax.f32 %v1366_v39, 0.0  ;;  %v1373_v3 = vadd.f32 %v8914_v50, %v1175_v47  ;;  %v1177_v19 = vpop.f32.mrb[39].mxu0  ;;  %7334 = vrot.lane.b32.xlu1 %v7333_v5, %s8155_s27  ;;  %v8960_v44 = vmax.f32 %v1402_v30, %v1513_v33 }
 0x1ad   :  { %11040 = vst [vmem:[#allocation12_spill] sm:$0xff] %v8955_v6  ;;  %v1416_v36 = vmax.f32 %v1367_v45, 0.0  ;;  %v1374_v31 = vadd.f32 %v8917_v22, %v1177_v19  ;;  %v7343_v53 = vpack.i.bf16 %v8618_v21, %v8955_v6 }
 0x1ae   :  { %v1525_v0 = vrot.slane %v1415_v24, 1  ;;  %v1422_v38 = vmax.f32 %v1373_v3, 0.0 }
 0x1af   :  { %v1527_v8 = vrot.slane %v1416_v36, 1  ;;  %v1423_v41 = vmax.f32 %v1374_v31, 0.0 }
 0x1b0   :  { %v1539_v9 = vrot.slane %v1422_v38, 1  ;;  %7344 = vrot.lane.b32.xlu1 %v7343_v53, %s8155_s27  ;;  %v1526_v51 = vsel %vm879_vm3, %v1509_v37, %v1525_v0 }
 0x1b1   :  { %v1541_v39 = vrot.slane %v1423_v41, 1  ;;  %v1181_v47 = vpop.f32.mrb[40].mxu0  ;;  %v8967_v5 = vmax.f32 %v1408_v59, %v1526_v51  ;;  %v1528_v30 = vsel %vm879_vm3, %v1512_v62, %v1527_v8 }
 0x1b2   :  { %v1380_v45 = vadd.f32 %v8914_v50, %v1181_v47  ;;  %v1183_v33 = vpop.f32.mrb[41].mxu0  ;;  %v1540_v19 = vsel %vm879_vm3, %v1525_v0, %v1539_v9  ;;  %v8972_v6 = vmax.f32 %v1409_v18, %v1528_v30 }
 0x1b3   :  { %11041 = vst [vmem:[#allocation13_spill] sm:$0xff] %v8967_v5  ;;  %v1381_v3 = vadd.f32 %v8917_v22, %v1183_v33  ;;  %v1185_v31 = vpop.f32.mrb[42].mxu0  ;;  %1756 = vrot.lane.b32.xlu0 %v8967_v5, %s8155_s27  ;;  %v8977_v37 = vmax.f32 %v1415_v24, %v1540_v19  ;;  %v1542_v59 = vsel %vm879_vm3, %v1527_v8, %v1541_v39 }
 0x1b4   :  { %v1429_v53 = vmax.f32 %v1380_v45, 0.0  ;;  %v1387_v62 = vadd.f32 %v8914_v50, %v1185_v31  ;;  %v1187_v51 = vpop.f32.mrb[43].mxu0  ;;  %v8981_v47 = vmax.f32 %v1416_v36, %v1542_v59 }
 0x1b5   :  { %11042 = vst [vmem:[#allocation14_spill] sm:$0xff] %v8977_v37  ;;  %v1430_v28 = vmax.f32 %v1381_v3, 0.0  ;;  %v1388_v0 = vadd.f32 %v8917_v22, %v1187_v51  ;;  %v7348_v18 = vpack.i.bf16 %v8977_v37, %v8626_v26 }
 0x1b6   :  { %v1553_v30 = vrot.slane %v1429_v53, 1  ;;  %v1436_v33 = vmax.f32 %v1387_v62, 0.0 }
 0x1b7   :  { %v1555_v15 = vrot.slane %v1430_v28, 1  ;;  %v1437_v5 = vmax.f32 %v1388_v0, 0.0  ;;  %7349 = vrot.lane.b32.xlu1 %v7348_v18, %s8155_s27 }
 0x1b8   :  { %v1567_v24 = vrot.slane %v1436_v33, 1  ;;  %v1554_v8 = vsel %vm879_vm3, %v1539_v9, %v1553_v30 }
 0x1b9   :  { %v1569_v45 = vrot.slane %v1437_v5, 1  ;;  %v1191_v19 = vpop.f32.mrb[60].mxu0  ;;  %v8988_v31 = vmax.f32 %v1422_v38, %v1554_v8  ;;  %v1556_v36 = vsel %vm879_vm3, %v1541_v39, %v1555_v15 }
 0x1ba   :  { %v1308_v3 = vadd.f32 %v1191_v19, %v8777_v7  ;;  %v1193_v59 = vpop.f32.mrb[61].mxu0  ;;  %v1568_v51 = vsel %vm879_vm3, %v1553_v30, %v1567_v24  ;;  %v8993_v37 = vmax.f32 %v1423_v41, %v1556_v36 }
 0x1bb   :  { %v1309_v62 = vadd.f32 %v1193_v59, %v8789_v17  ;;  %v7353_v0 = vpack.i.bf16 %v8988_v31, %v8644_v57  ;;  %v8998_v18 = vmax.f32 %v1429_v53, %v1568_v51  ;;  %v1570_v9 = vsel %vm879_vm3, %v1555_v15, %v1569_v45  ;;  %v1195_v38 = vpop.f32.mrb[62].mxu0 }
 0x1bc   :  { %v1394_v8 = vadd.f32 %v8914_v50, %v1308_v3  ;;  %v9002_v39 = vmax.f32 %v1430_v28, %v1570_v9  ;;  %v1196_v7 = vpop.f32.mrb[63].mxu0  ;;  %v11043_v15 = vmax.f32 %v8647_v58, 0.0 }
 0x1bd   :  { %v1395_v19 = vadd.f32 %v8917_v22, %v1309_v62  ;;  %7354 = vrot.lane.b32.xlu0 %v7353_v0, %s8155_s27  ;;  %v7358_v17 = vpack.i.bf16 %v8998_v18, %v8654_v1 }
 0x1be   :  { %v1443_v41 = vmax.f32 %v1394_v8, 0.0  ;;  %v9012_v50 = vmax.f32 %v11043_v15, %v8663_v10 }
 0x1bf   :  { %v1444_v30 = vmax.f32 %v1395_v19, 0.0  ;;  %7359 = vrot.lane.b32.xlu1 %v7358_v17, %s8155_s27 }
 0x1c0   :  { %v1581_v53 = vrot.slane %v1443_v41, 1 }
 0x1c1   :  { %v1583_v36 = vrot.slane %v1444_v30, 1 }
 0x1c2   :  { %v9014_v28 = vmax.f32 %v1443_v41, %v1581_v53  ;;  %v1582_v22 = vsel %vm879_vm3, %v1567_v24, %v1581_v53 }
 0x1c3   :  { %v9017_v3 = vpop.permute.xlu0 %7274  ;;  %v9019_v59 = vmax.f32 %v1436_v33, %v1582_v22  ;;  %v1584_v51 = vsel %vm879_vm3, %v1569_v45, %v1583_v36  ;;  %v7378_v33 = vpack.i.bf16 %v8993_v37, %v8981_v47  ;;  %v7373_v45 = vpack.i.bf16 %v8972_v6, %v8960_v44 }
 0x1c4   :  { %v7368_v62 = vpack.i.bf16 %v9014_v28, %v9012_v50  ;;  %v9024_v0 = vmax.f32 %v1437_v5, %v1584_v51  ;;  %v11007_v9 = vunpack.i.h.bf16 %v9017_v3  ;;  %v11006_v58 = vunpack.i.l.bf16 %v9017_v3 }
 0x1c5   :  { %v7363_v10 = vpack.i.bf16 %v9019_v59, %v8671_v49  ;;  %v9048_v19 = vmax.f32 %v1444_v30, %v1583_v36 }
 0x1c6   :  { %7369 = vrot.lane.b32.xlu1 %v7368_v62, %s8155_s27  ;;  %v1937_v24 = vmax.f32 %v8686_v42, %v11007_v9  ;;  %v1930_v5 = vmax.f32 %v8688_v43, %v11006_v58  ;;  %v7383_v43 = vpack.i.bf16 %v9024_v0, %v9002_v39  ;;  %v7484_v62 = vld [vmem:[%s10985_s3] ss:$8 sps:$4 sm:$0xff]  }
 0x1c7   :  { %7364 = vrot.lane.b32.xlu0 %v7363_v10, %s8155_s27  ;;  %v7489_v10 = vld [vmem:[%s10985_s3 + $0x14] ss:$8 sps:$4 sm:$0xff]  }
 0x1c8   :  { %v9050_v42 = vpack.c.bf16 %v1937_v24, %v1930_v5  ;;  %v11046_v5 = vmov 0  }
 0x1ca   :  { %7379 = vrot.lane.b32.xlu1 %v7378_v33, %s8155_s27 }
 0x1cb   :  { %v9043_v38 = vpop.permute.xlu0 %7279  ;;  %7374 = vrot.lane.b32.xlu0 %v7373_v45, %s8155_s27  ;;  %v7495_v45 = vld [vmem:[%s10985_s3 + $0x24] ss:$8 sps:$4 sm:$0xff]  }
 0x1cc   :  { %v11009_v8 = vunpack.i.h.bf16 %v9043_v38  ;;  %v11008_v7 = vunpack.i.l.bf16 %v9043_v38 }
 0x1cd   :  { %v9052_v17 = vpop.permute.xlu1 %7284 }
 0x1ce   :  { %v1951_v41 = vmax.f32 %v8704_v20, %v11009_v8  ;;  %v1944_v53 = vmax.f32 %v8684_v40, %v11008_v7  ;;  %v11005_v15 = vunpack.i.h.bf16 %v9052_v17  ;;  %v11004_v30 = vunpack.i.l.bf16 %v9052_v17  ;;  %1828 = vrot.lane.b32.xlu1 %v9048_v19, %s8155_s27 }
 0x1cf   :  { %7384 = vrot.lane.b32.xlu0 %v7383_v43, %s8155_s27  ;;  %v2248_v40 = vrot.slane %v9050_v42, 1 }
 0x1d0   :  { %v9067_v36 = vpack.c.bf16 %v1951_v41, %v1944_v53  ;;  %v1965_v22 = vmax.f32 %v8712_v27, %v11005_v15  ;;  %v1958_v20 = vmax.f32 %v8710_v25, %v11004_v30  ;;  %v7487_v25 = vld [vmem:[%s10985_s3 + $0x10] ss:$8 sps:$4 sm:$0xff]   ;;  %v7493_v53 = vld [vmem:[%s10985_s3 + $0x20] ss:$8 sps:$4 sm:$0xff]  }
 0x1d1   :  { %v9086_v24 = vpop.permute.xlu1 %1830 }
 0x1d2   :  { %11044 = vst [vmem:[#allocation15_spill] sm:$0xff] %v9067_v36  ;;  %v2249_v51 = vrot.slane %v9067_v36, 1  ;;  %v9083_v33 = vpack.c.bf16 %v1965_v22, %v1958_v20  ;;  %v1972_v43 = vmax.f32 %v8730_v35, %v9086_v24  ;;  %v7501_v22 = vld [vmem:[%s10985_s3 + $0x34] ss:$8 sps:$4 sm:$0xff]   ;;  %v7499_v35 = vld [vmem:[%s10985_s3 + $0x30] ss:$8 sps:$4 sm:$0xff]  }
 0x1d4   :  { %11045 = vst [vmem:[#allocation16_spill] sm:$0xff] %v9083_v33  ;;  %v2250_v27 = vsel %vm879_vm3, %v2248_v40, %v2249_v51  ;;  %v2263_v41 = vrot.slane %v9083_v33, 1  ;;  %v9105_v20 = vpack.c.bf16 %v1972_v43, %v1972_v43  ;;  %v7519_v43 = vld [vmem:[%s10985_s3 + $0x64] ss:$8 sps:$4 sm:$0xff]  }
 0x1d5   :  { %6493 = vmatmul.mubr.msk.bf16.vlgmr.msra.gmra.mrb[36].mxu1 %vm2803_vm4, %v2250_v27  ;;  %v7513_v27 = vld [vmem:[%s10985_s3 + $0x54] ss:$8 sps:$4 sm:$0xff]  }
 0x1d6   :  { %3613 = vmatpush1.bf16.msra.mxu1 %v7484_v62  ;;  %3071 = vmatprep.mubr.bf16.mxu1 %v11046_v5  ;;  %11047 = vst [vmem:[#allocation17_spill] sm:$0xff] %v9105_v20  ;;  %v2264_v40 = vsel %vm879_vm3, %v2249_v51, %v2263_v41  ;;  %v7507_v62 = vld [vmem:[%s10985_s3 + $0x44] ss:$8 sps:$4 sm:$0xff]   ;;  %v7505_v51 = vld [vmem:[%s10985_s3 + $0x40] ss:$8 sps:$4 sm:$0xff]  }
 0x1d7   :  { %3614 = vmatprep.subr.bf16.mxu1 %v7489_v10  ;;  %v2277_v10 = vrot.slane %v9105_v20, 1 }
 0x1da   :  { %3615 = vmatpush1.bf16.msra.mxu1 %v7487_v25  ;;  %v2278_v25 = vsel %vm879_vm3, %v2263_v41, %v2277_v10  ;;  %v7525_v41 = vld [vmem:[%s10985_s3 + $0x74] ss:$8 sps:$4 sm:$0xff]  }
 0x1db   :  { %3616 = vmatprep.subr.bf16.mxu1 %v7495_v45  ;;  %v7511_v45 = vld [vmem:[%s10985_s3 + $0x50] ss:$8 sps:$4 sm:$0xff]  }
 0x1dd   :  { %6494 = vmatmul.mubr.msk.bf16.gmra.mrb[40].mxu1 %vm2803_vm4, %v2264_v40  ;;  %v7531_v40 = vld [vmem:[%s10985_s3 + $0x84] ss:$8 sps:$4 sm:$0xff]  }
 0x1de   :  { %3617 = vmatpush1.bf16.msra.mxu1 %v7493_v53  ;;  %3081 = vmatprep.mubr.bf16.mxu1 %v11046_v5  ;;  %v7517_v53 = vld [vmem:[%s10985_s3 + $0x60] ss:$8 sps:$4 sm:$0xff]  }
 0x1df   :  { %3618 = vmatprep.subr.bf16.mxu1 %v7501_v22  ;;  %v7523_v22 = vld [vmem:[%s10985_s3 + $0x70] ss:$8 sps:$4 sm:$0xff]  }
 0x1e2   :  { %3619 = vmatpush1.bf16.msra.mxu1 %v7499_v35  ;;  %v7529_v35 = vld [vmem:[%s10985_s3 + $0x80] ss:$8 sps:$4 sm:$0xff]  }
 0x1e3   :  { %3620 = vmatprep.subr.bf16.mxu1 %v7507_v62  ;;  %v7537_v62 = vld [vmem:[%s10985_s3 + $0x94] ss:$8 sps:$4 sm:$0xff]  }
 0x1e5   :  { %6495 = vmatmul.mubr.msk.bf16.gmra.mrb[44].mxu1 %vm2803_vm4, %v2278_v25  ;;  %v7549_v25 = vld [vmem:[%s10985_s3 + $0xb4] ss:$8 sps:$4 sm:$0xff]  }
 0x1e6   :  { %3621 = vmatpush1.bf16.msra.mxu1 %v7505_v51  ;;  %3091 = vmatprep.mubr.bf16.mxu1 %v11046_v5  ;;  %v7543_v51 = vld [vmem:[%s10985_s3 + $0xa4] ss:$8 sps:$4 sm:$0xff]  }
 0x1e7   :  { %3622 = vmatprep.subr.bf16.mxu1 %v7513_v27  ;;  %v7541_v27 = vld [vmem:[%s10985_s3 + $0xa0] ss:$8 sps:$4 sm:$0xff]  }
 0x1ea   :  { %3623 = vmatpush1.bf16.msra.mxu1 %v7511_v45  ;;  %v7547_v45 = vld [vmem:[%s10985_s3 + $0xb0] ss:$8 sps:$4 sm:$0xff]  }
 0x1eb   :  { %3624 = vmatprep.subr.bf16.mxu1 %v7519_v43  ;;  %v7555_v43 = vld [vmem:[%s10985_s3 + $0xc4] ss:$8 sps:$4 sm:$0xff]  }
 0x1ed   :  { %6496 = vmatmul.mubr.msk.bf16.gmra.mrb[48].mxu1 %vm2803_vm4, %v2277_v10  ;;  %v7535_v10 = vld [vmem:[%s10985_s3 + $0x90] ss:$8 sps:$4 sm:$0xff]  }
 0x1ee   :  { %3625 = vmatpush1.bf16.msra.mxu1 %v7517_v53 }
 0x1ef   :  { %3626 = vmatprep.subr.bf16.mxu1 %v7525_v41  ;;  %v7553_v41 = vld [vmem:[%s10985_s3 + $0xc0] ss:$8 sps:$4 sm:$0xff]  }
 0x1f2   :  { %3627 = vmatpush1.bf16.msra.mxu1 %v7523_v22  ;;  %v7561_v22 = vld [vmem:[%s10985_s3 + $0xd4] ss:$8 sps:$4 sm:$0xff]  }
 0x1f3   :  { %3628 = vmatprep.subr.bf16.mxu1 %v7531_v40 }
 0x1f6   :  { %3629 = vmatpush1.bf16.msra.mxu1 %v7529_v35 }
 0x1f7   :  { %3630 = vmatprep.subr.bf16.mxu1 %v7537_v62  ;;  %v7559_v62 = vld [vmem:[%s10985_s3 + $0xd0] ss:$8 sps:$4 sm:$0xff]  }
 0x1fa   :  { %3631 = vmatpush1.bf16.msra.mxu1 %v7535_v10 }
 0x1fb   :  { %3632 = vmatprep.subr.bf16.mxu1 %v7543_v51  ;;  %v7567_v51 = vld [vmem:[%s10985_s3 + $0xe4] ss:$8 sps:$4 sm:$0xff]  }
 0x1fe   :  { %3633 = vmatpush1.bf16.msra.mxu1 %v7541_v27 }
 0x1ff   :  { %3634 = vmatprep.subr.bf16.mxu1 %v7549_v25 }
 0x202   :  { %3635 = vmatpush1.bf16.msra.mxu1 %v7547_v45  ;;  %v9169_v53 = vpop.permute.xlu0 %7289 }
 0x203   :  { %3636 = vmatprep.subr.bf16.mxu1 %v7555_v43  ;;  %v11010_v40 = vunpack.i.h.bf16 %v9169_v53  ;;  %v7291_v35 = vunpack.i.l.bf16 %v9169_v53 }
 0x205   :  { %v1834_v43 = vsel %vm1832_vm5, %v7291_v35, %v11010_v40 }
 0x206   :  { %3637 = vmatpush1.bf16.msra.mxu1 %v7553_v41 }
 0x207   :  { %3638 = vmatprep.subr.bf16.mxu1 %v7561_v22  ;;  %v7300_v10 = vpop.permute.xlu0 %7299  ;;  %v7565_v22 = vld [vmem:[%s10985_s3 + $0xe0] ss:$8 sps:$4 sm:$0xff]  }
 0x208   :  { %v7302_v27 = vunpack.i.h.bf16 %v7300_v10  ;;  %v7301_v25 = vunpack.i.l.bf16 %v7300_v10  ;;  %v9185_v45 = vpop.permute.xlu1 %7294  ;;  %v7573_v10 = vld [vmem:[%s10985_s3 + $0xf4] ss:$8 sps:$4 sm:$0xff]  }
 0x209   :  { %v11013_v41 = vunpack.i.h.bf16 %v9185_v45  ;;  %v7296_v30 = vunpack.i.l.bf16 %v9185_v45 }
 0x20a   :  { %3639 = vmatpush1.bf16.msra.mxu1 %v7559_v62  ;;  %v1833_v58 = vsel %vm1832_vm5, %v7301_v25, %v7291_v35  ;;  %v1925_v62 = vmax.f32 %v8837_v32, %v1834_v43  ;;  %v7579_v32 = vld [vmem:[%s10985_s3 + $0x104] ss:$8 sps:$4 sm:$0xff]  }
 0x20b   :  { %v1840_v15 = vsel %vm1832_vm5, %v7296_v30, %v11013_v41  ;;  %3640 = vmatprep.subr.bf16.mxu1 %v7567_v51  ;;  %v1839_v9 = vsel %vm1832_vm5, %v7302_v27, %v7296_v30  ;;  %v7571_v51 = vld [vmem:[%s10985_s3 + $0xf0] ss:$8 sps:$4 sm:$0xff]   ;;  %v1924_v35 = vmax.f32 %v8831_v13, %v1833_v58 }
 0x20c   :  { %v9203_v7 = vpop.permute.xlu1 %7304  ;;  %v1932_v8 = vmax.f32 %v8854_v52, %v1840_v15  ;;  %v1931_v30 = vmax.f32 %v8850_v16, %v1839_v9  ;;  %v7577_v16 = vld [vmem:[%s10985_s3 + $0x100] ss:$8 sps:$4 sm:$0xff]  }
 0x20d   :  { %v11014_v40 = vunpack.i.h.bf16 %v9203_v7  ;;  %v7306_v20 = vunpack.i.l.bf16 %v9203_v7 }
 0x20e   :  { %3641 = vmatpush1.bf16.msra.mxu1 %v7565_v22  ;;  %v1974_v41 = vpack.c.bf16 %v1932_v8, %v1925_v62  ;;  %v1973_v9 = vpack.c.bf16 %v1931_v30, %v1924_v35  ;;  %v7585_v62 = vld [vmem:[%s10985_s3 + $0x114] ss:$8 sps:$4 sm:$0xff]  }
 0x20f   :  { %3642 = vmatprep.subr.bf16.mxu1 %v7573_v10  ;;  %v1846_v52 = vsel %vm1832_vm5, %v7306_v20, %v11014_v40 }
 0x210   :  { %3644 = vmatprep.mubr.bf16.mxu1 %v1974_v41  ;;  %v7315_v15 = vpop.permute.xlu1 %7314  ;;  %v9220_v27 = vpop.permute.xlu0 %7309 }
 0x211   :  { %v7317_v25 = vunpack.i.h.bf16 %v7315_v15  ;;  %v7316_v43 = vunpack.i.l.bf16 %v7315_v15  ;;  %v11015_v8 = vunpack.i.h.bf16 %v9220_v27  ;;  %v7311_v13 = vunpack.i.l.bf16 %v9220_v27 }
 0x212   :  { %3643 = vmatpush1.bf16.msra.mxu1 %v7571_v51  ;;  %v1939_v51 = vmax.f32 %v8872_v4, %v1846_v52 }
 0x213   :  { %v1845_v58 = vsel %vm1832_vm5, %v7316_v43, %v7306_v20  ;;  %v1851_v22 = vsel %vm1832_vm5, %v7317_v25, %v7311_v13  ;;  %v1852_v10 = vsel %vm1832_vm5, %v7311_v13, %v11015_v8  ;;  %3683 = vmatprep.subr.bf16.mxu1 %v7579_v32  ;;  %v7583_v32 = vld [vmem:[%s10985_s3 + $0x110] ss:$8 sps:$4 sm:$0xff]  }
 0x214   :  { %v9235_v15 = vpop.permute.xlu0 %7319  ;;  %v1946_v40 = vmax.f32 %v8892_v2, %v1852_v10  ;;  %v1938_v35 = vmax.f32 %v8864_v34, %v1845_v58  ;;  %v1945_v20 = vmax.f32 %v8886_v56, %v1851_v22  ;;  %v2233_v2 = vrot.slane %v1974_v41, 1  ;;  %v7591_v34 = vld [vmem:[%s10985_s3 + $0x124] ss:$8 sps:$4 sm:$0xff]   ;;  %v7586_v22 = vld [vmem:[%s10985_s3 + $0x420] ss:$8 sps:$4 sm:$0xff]  }
 0x215   :  { %3645 = vmatmul.mubr.bf16.vlgmr.msra.gmra.mrb[36].mxu1 %v1973_v9  ;;  %v11016_v30 = vunpack.i.h.bf16 %v9235_v15  ;;  %v7321_v25 = vunpack.i.l.bf16 %v9235_v15  ;;  %v4001_v10 = vrot.slane %v1974_v41, 2 }
 0x216   :  { %3684 = vmatpush1.bf16.msra.mxu1 %v7577_v16  ;;  %v9246_v43 = vpack.c.bf16 %v1946_v40, %v1939_v51  ;;  %v9248_v13 = vpack.c.bf16 %v1945_v20, %v1938_v35  ;;  %v2230_v16 = vrot.slane %v1973_v9, 1  ;;  %v3998_v51 = vrot.slane %v1973_v9, 2  ;;  %v7594_v9 = vld [vmem:[%s10985_s3 + $0x434] ss:$8 sps:$4 sm:$0xff]  }
 0x217   :  { %3685 = vmatprep.subr.bf16.mxu1 %v7585_v62  ;;  %v1858_v40 = vsel %vm1832_vm5, %v7321_v25, %v11016_v30  ;;  %v7589_v30 = vld [vmem:[%s10985_s3 + $0x120] ss:$8 sps:$4 sm:$0xff]  }
 0x218   :  { %3654 = vmatprep.mubr.bf16.mxu1 %v9246_v43  ;;  %v11017_v4 = vrot.slane %v9246_v43, 1  ;;  %v11018_v56 = vrot.slane %v9248_v13, 1  ;;  %v4002_v62 = vrot.slane %v9246_v43, 2 }
 0x219   :  { %v7330_v58 = vpop.permute.xlu0 %7329 }
 0x21a   :  { %3686 = vmatpush1.bf16.msra.mxu1 %v7583_v32  ;;  %v7332_v35 = vunpack.i.h.bf16 %v7330_v58  ;;  %v7331_v20 = vunpack.i.l.bf16 %v7330_v58  ;;  %v9264_v8 = vpop.permute.xlu1 %7324  ;;  %v2235_v52 = vsel %vm879_vm3, %v2233_v2, %v11017_v4  ;;  %v2232_v41 = vsel %vm879_vm3, %v2230_v16, %v11018_v56  ;;  %v7597_v2 = vld [vmem:[%s10985_s3 + $0x134] ss:$8 sps:$4 sm:$0xff]  }
 0x21b   :  { %v7326_v58 = vunpack.i.l.bf16 %v9264_v8  ;;  %2848 = vmatprep.mubr.bf16.mxu0 %v2235_v52  ;;  %3687 = vmatprep.subr.bf16.mxu1 %v7591_v34  ;;  %v9286_v4 = vsel %vm188_vm0, %v4001_v10, %v4002_v62  ;;  %v11048_v16 = vrot.slane %v9248_v13, 2  ;;  %v1953_v52 = vmax.f32 %v8908_v29, %v1858_v40 }
 0x21c   :  { %v1857_v32 = vsel %vm1832_vm5, %v7331_v20, %v7321_v25  ;;  %2849 = vmatmul.mubr.bf16.vlgmr.msra.gmra.mrb[64].mxu0 %v2232_v41  ;;  %v11049_v33 = vunpack.i.h.bf16 %v9264_v8 }
 0x21d   :  { %v9291_v56 = vsel %vm188_vm0, %v3998_v51, %v11048_v16  ;;  %v1863_v34 = vsel %vm1832_vm5, %v7332_v35, %v7326_v58  ;;  %3655 = vmatmul.mubr.bf16.gmra.mrb[40].mxu1 %v9248_v13  ;;  %2888 = vmatpush1.bf16.msra.mxu0 %v7586_v22  ;;  %v7340_v10 = vpop.permute.xlu0 %7339  ;;  %v7592_v51 = vld [vmem:[%s10985_s3 + $0x430] ss:$8 sps:$4 sm:$0xff]   ;;  %v1952_v16 = vmax.f32 %v8903_v60, %v1857_v32  ;;  %v7600_v60 = vld [vmem:[%s10985_s3 + $0x444] ss:$8 sps:$4 sm:$0xff]  }
 0x21e   :  { %v1864_v36 = vsel %vm1832_vm5, %v7326_v58, %v11049_v33  ;;  %3688 = vmatpush1.bf16.msra.mxu1 %v7589_v30  ;;  %v7342_v25 = vunpack.i.h.bf16 %v7340_v10  ;;  %v7341_v20 = vunpack.i.l.bf16 %v7340_v10  ;;  %v9304_v29 = vpop.permute.xlu1 %7334  ;;  %2889 = vmatprep.subr.bf16.mxu0 %v7594_v9  ;;  %v7595_v33 = vld [vmem:[%s10985_s3 + $0x130] ss:$8 sps:$4 sm:$0xff]   ;;  %v1959_v22 = vmax.f32 %v8925_v11, %v1863_v34  ;;  %v7603_v30 = vld [vmem:[%s10985_s3 + $0x144] ss:$8 sps:$4 sm:$0xff]  }
 0x21f   :  { %v1960_v40 = vmax.f32 %v8929_v63, %v1864_v36  ;;  %v11023_v35 = vunpack.i.h.bf16 %v9304_v29  ;;  %v7336_v41 = vunpack.i.l.bf16 %v9304_v29  ;;  %3689 = vmatprep.subr.bf16.mxu1 %v7597_v2  ;;  %v11050_v63 = vunpack.i.h.bf16 %v9169_v53  ;;  %v7598_v36 = vld [vmem:[%s10985_s3 + $0x440] ss:$8 sps:$4 sm:$0xff]  }
 0x220   :  { %v9319_v32 = vpack.c.bf16 %v1959_v22, %v1952_v16  ;;  %v7601_v53 = vld [vmem:[%s10985_s3 + $0x140] ss:$8 sps:$4 sm:$0xff]  }
 0x221   :  { %v1988_v9 = vpack.c.bf16 %v1960_v40, %v1953_v52  ;;  %v1835_v11 = vsel %vm1832_vm5, %v11050_v63, %v7342_v25  ;;  %2890 = vmatpush1.bf16.msra.mxu0 %v7592_v51  ;;  %v1870_v58 = vsel %vm1832_vm5, %v7336_v41, %v11023_v35  ;;  %v1869_v2 = vsel %vm1832_vm5, %v7341_v20, %v7336_v41 }
 0x222   :  { %3690 = vmatpush1.bf16.msra.mxu1 %v7595_v33  ;;  %v9331_v34 = vpop.permute.xlu1 %7344  ;;  %v11025_v10 = vrot.slane %v9319_v32, 1  ;;  %v1967_v51 = vmax.f32 %v8936_v12, %v1870_v58  ;;  %v1966_v16 = vmax.f32 %v8931_v55, %v1869_v2  ;;  %2891 = vmatprep.subr.bf16.mxu0 %v7600_v60  ;;  %v4019_v33 = vrot.slane %v9319_v32, 2  ;;  %v7606_v60 = vld [vmem:[%s10985_s3 + $0x454] ss:$8 sps:$4 sm:$0xff]  }
 0x223   :  { %3664 = vmatprep.mubr.bf16.mxu1 %v1988_v9  ;;  %v2253_v52 = vrot.slane %v1988_v9, 1  ;;  %v7347_v40 = vunpack.i.h.bf16 %v9331_v34  ;;  %v11024_v22 = vunpack.i.l.bf16 %v9331_v34  ;;  %3691 = vmatprep.subr.bf16.mxu1 %v7603_v30  ;;  %v4021_v20 = vrot.slane %v1988_v9, 2  ;;  %v7609_v30 = vld [vmem:[%s10985_s3 + $0x154] ss:$8 sps:$4 sm:$0xff]  }
 0x224   :  { %v11051_v41 = vrot.slane %v9246_v43, 1  ;;  %v11052_v35 = vrot.slane %v9248_v13, 1  ;;  %v9350_v55 = vpack.c.bf16 %v1967_v51, %v1967_v51  ;;  %v9358_v9 = vpack.c.bf16 %v1966_v16, %v1966_v16  ;;  %v7612_v43 = vld [vmem:[%s10985_s3 + $0x464] ss:$8 sps:$4 sm:$0xff]  }
 0x225   :  { %v11053_v58 = vunpack.i.h.bf16 %v9185_v45  ;;  %3665 = vmatmul.mubr.bf16.gmra.mrb[44].mxu1 %v9319_v32  ;;  %2892 = vmatpush1.bf16.msra.mxu0 %v7598_v36  ;;  %v9367_v51 = vpop.permute.xlu0 %1756  ;;  %v9375_v16 = vsel %vm188_vm0, %v4002_v62, %v4021_v20  ;;  %v1926_v45 = vmax.f32 %v8602_v46, %v1835_v11  ;;  %v7607_v36 = vld [vmem:[%s10985_s3 + $0x150] ss:$8 sps:$4 sm:$0xff]   ;;  %v7615_v46 = vld [vmem:[%s10985_s3 + $0x164] ss:$8 sps:$4 sm:$0xff]   ;;  %v11054_v62 = vrot.slane %v9248_v13, 2 }
 0x226   :  { %v2254_v63 = vsel %vm879_vm3, %v11051_v41, %v2253_v52  ;;  %v2252_v12 = vsel %vm879_vm3, %v11052_v35, %v11025_v10  ;;  %v1836_v35 = vsel %vm1832_vm5, %v7342_v25, %v11024_v22  ;;  %v7604_v41 = vld [vmem:[%s10985_s3 + $0x450] ss:$8 sps:$4 sm:$0xff]   ;;  %3692 = vmatpush1.bf16.msra.mxu1 %v7601_v53  ;;  %v1842_v25 = vsel %vm1832_vm5, %v7347_v40, %v9367_v51 }
 0x227   :  { %v1841_v2 = vsel %vm1832_vm5, %v11053_v58, %v7347_v40  ;;  %2858 = vmatprep.mubr.bf16.mxu0 %v2254_v63  ;;  %v2267_v22 = vrot.slane %v9350_v55, 1  ;;  %3674 = vmatprep.mubr.bf16.mxu1 %v9350_v55  ;;  %v9396_v11 = vsel %vm188_vm0, %v11054_v62, %v4019_v33  ;;  %v11027_v53 = vrot.slane %v9350_v55, 2 }
 0x228   :  { %v1933_v58 = vmax.f32 %v8612_v14, %v1841_v2  ;;  %2859 = vmatmul.mubr.bf16.gmra.mrb[68].mxu0 %v2252_v12  ;;  %v1927_v14 = vmax.f32 %v8606_v54, %v1836_v35  ;;  %v1934_v63 = vmax.f32 %v8618_v21, %v1842_v25  ;;  %2893 = vmatprep.subr.bf16.mxu0 %v7606_v60  ;;  %v11026_v2 = vrot.slane %v9358_v9, 2  ;;  %v7610_v54 = vld [vmem:[%s10985_s3 + $0x460] ss:$8 sps:$4 sm:$0xff]  }
 0x229   :  { %3693 = vmatprep.subr.bf16.mxu1 %v7609_v30  ;;  %v2268_v12 = vsel %vm879_vm3, %v2253_v52, %v2267_v22  ;;  %2894 = vmatpush1.bf16.msra.mxu0 %v7604_v41  ;;  %v9404_v10 = vpop.permute.xlu1 %7349  ;;  %v9412_v13 = vsel %vm188_vm0, %v4021_v20, %v11027_v53  ;;  %v7613_v21 = vld [vmem:[%s10985_s3 + $0x160] ss:$8 sps:$4 sm:$0xff]   ;;  %v2265_v52 = vrot.slane %v9358_v9, 1  ;;  %v7618_v30 = vld [vmem:[%s10985_s3 + $0x474] ss:$8 sps:$4 sm:$0xff]   ;;  %v11059_v53 = vunpack.i.h.bf16 %v9264_v8 }
 0x22a   :  { %v9399_v40 = vpack.c.bf16 %v1933_v58, %v1926_v45  ;;  %2868 = vmatprep.mubr.bf16.mxu0 %v2268_v12  ;;  %3694 = vmatpush1.bf16.msra.mxu1 %v7607_v36  ;;  %v9421_v60 = vsel %vm188_vm0, %v4019_v33, %v11026_v2  ;;  %v7352_v20 = vunpack.i.h.bf16 %v9404_v10  ;;  %v7351_v35 = vunpack.i.l.bf16 %v9404_v10  ;;  %v7621_v45 = vld [vmem:[%s10985_s3 + $0x174] ss:$8 sps:$4 sm:$0xff]   ;;  %v7616_v33 = vld [vmem:[%s10985_s3 + $0x470] ss:$8 sps:$4 sm:$0xff]  }
 0x22b   :  { %2895 = vmatprep.subr.bf16.mxu0 %v7612_v43  ;;  %3695 = vmatprep.subr.bf16.mxu1 %v7615_v46  ;;  %v9428_v41 = vpack.c.bf16 %v1934_v63, %v1927_v14  ;;  %v11055_v58 = vrot.slane %v9319_v32, 1  ;;  %v7619_v36 = vld [vmem:[%s10985_s3 + $0x170] ss:$8 sps:$4 sm:$0xff]   ;;  %v7624_v43 = vld [vmem:[%s10985_s3 + $0x484] ss:$8 sps:$4 sm:$0xff]   ;;  %v11056_v32 = vunpack.i.h.bf16 %v9203_v7 }
 0x22c   :  { %v7627_v14 = vld [vmem:[%s10985_s3 + $0x184] ss:$8 sps:$4 sm:$0xff]   ;;  %v1848_v63 = vsel %vm1832_vm5, %v7351_v35, %v7352_v20 }
 0x22d   :  { %3675 = vmatmul.mubr.bf16.gmra.mrb[52].mxu1 %v9358_v9  ;;  %2896 = vmatpush1.bf16.msra.mxu0 %v7610_v54  ;;  %v2266_v25 = vsel %vm879_vm3, %v11055_v58, %v2265_v52  ;;  %v1847_v62 = vsel %vm1832_vm5, %v11056_v32, %v7351_v35  ;;  %v11063_v10 = vld [vmem:[#allocation11_spill] sm:$0xff] }
 0x22e   :  { %3696 = vmatpush1.bf16.msra.mxu1 %v7613_v21  ;;  %3715 = vmatprep.mubr.bf16.mxu1 %v9428_v41  ;;  %v7622_v21 = vld [vmem:[%s10985_s3 + $0x480] ss:$8 sps:$4 sm:$0xff]  }
 0x22f   :  { %2897 = vmatprep.subr.bf16.mxu0 %v7618_v30  ;;  %v9447_v46 = vpop.permute.xlu0 %7354  ;;  %3697 = vmatprep.subr.bf16.mxu1 %v7621_v45  ;;  %v11057_v30 = vunpack.i.h.bf16 %v9220_v27  ;;  %v7630_v45 = vld [vmem:[%s10985_s3 + $0x494] ss:$8 sps:$4 sm:$0xff]   ;;  %v1940_v27 = vmax.f32 %v8622_v23, %v1847_v62  ;;  %v7628_v23 = vld [vmem:[%s10985_s3 + $0x490] ss:$8 sps:$4 sm:$0xff]   ;;  %v7639_v62 = vld [vmem:[%s10985_s3 + $0x1a4] ss:$8 sps:$4 sm:$0xff]  }
 0x230   :  { %2869 = vmatmul.mubr.bf16.gmra.mrb[72].mxu0 %v2266_v25  ;;  %v7357_v12 = vunpack.i.h.bf16 %v9447_v46  ;;  %v7356_v54 = vunpack.i.l.bf16 %v9447_v46 }
 0x231   :  { %2878 = vmatprep.mubr.bf16.mxu0 %v2267_v22  ;;  %2898 = vmatpush1.bf16.msra.mxu0 %v7616_v33  ;;  %v9469_v35 = vpop.permute.xlu1 %7359  ;;  %v7625_v22 = vld [vmem:[%s10985_s3 + $0x180] ss:$8 sps:$4 sm:$0xff]   ;;  %v1941_v33 = vmax.f32 %v8626_v26, %v1848_v63  ;;  %v7631_v26 = vld [vmem:[%s10985_s3 + $0x190] ss:$8 sps:$4 sm:$0xff]   ;;  %v2236_v63 = vrot.slane %v9399_v40, 1 }
 0x232   :  { %v1853_v7 = vsel %vm1832_vm5, %v11057_v30, %v7356_v54  ;;  %v1854_v58 = vsel %vm1832_vm5, %v7356_v54, %v7357_v12  ;;  %3698 = vmatpush1.bf16.msra.mxu1 %v7619_v36  ;;  %2899 = vmatprep.subr.bf16.mxu0 %v7624_v43  ;;  %v7633_v36 = vld [vmem:[%s10985_s3 + $0x194] ss:$8 sps:$4 sm:$0xff]   ;;  %v11031_v30 = vunpack.i.l.bf16 %v9469_v35 }
 0x233   :  { %v1947_v25 = vmax.f32 %v8637_v48, %v1853_v7  ;;  %v1948_v32 = vmax.f32 %v8644_v57, %v1854_v58  ;;  %3699 = vmatprep.subr.bf16.mxu1 %v7627_v14  ;;  %v7636_v48 = vld [vmem:[%s10985_s3 + $0x4a4] ss:$8 sps:$4 sm:$0xff]   ;;  %v2239_v57 = vrot.slane %v9428_v41, 1  ;;  %v4007_v58 = vrot.slane %v9428_v41, 2  ;;  %v7634_v41 = vld [vmem:[%s10985_s3 + $0x4a0] ss:$8 sps:$4 sm:$0xff]  }
 0x235   :  { %v9484_v43 = vpack.c.bf16 %v1947_v25, %v1940_v27  ;;  %v9486_v54 = vpack.c.bf16 %v1948_v32, %v1941_v33  ;;  %2900 = vmatpush1.bf16.msra.mxu0 %v7622_v21  ;;  %v11058_v27 = vunpack.i.h.bf16 %v9235_v15 }
 0x236   :  { %3700 = vmatpush1.bf16.msra.mxu1 %v7625_v22  ;;  %2901 = vmatprep.subr.bf16.mxu0 %v7630_v45 }
 0x237   :  { %3701 = vmatprep.subr.bf16.mxu1 %v7633_v36  ;;  %v11028_v14 = vrot.slane %v9486_v54, 1  ;;  %v11029_v21 = vrot.slane %v9484_v43, 1  ;;  %v11030_v22 = vrot.slane %v9486_v54, 2  ;;  %v11032_v45 = vrot.slane %v9484_v43, 2 }
 0x238   :  { %2879 = vmatmul.mubr.bf16.gmra.mrb[76].mxu0 %v2265_v52  ;;  %v9505_v7 = vpop.permute.xlu1 %7369  ;;  %v4004_v52 = vrot.slane %v9399_v40, 2  ;;  %v1859_v33 = vsel %vm1832_vm5, %v11058_v27, %v11031_v30  ;;  %v7637_v27 = vld [vmem:[%s10985_s3 + $0x1a0] ss:$8 sps:$4 sm:$0xff]  }
 0x239   :  { %2902 = vmatpush1.bf16.msra.mxu0 %v7628_v23  ;;  %v9516_v25 = vpop.permute.xlu0 %7364  ;;  %v2241_v32 = vsel %vm879_vm3, %v2239_v57, %v11028_v14  ;;  %v9527_v36 = vsel %vm879_vm3, %v2236_v63, %v11029_v21  ;;  %v7371_v15 = vunpack.i.l.bf16 %v9505_v7  ;;  %v7642_v57 = vld [vmem:[%s10985_s3 + $0x4b4] ss:$8 sps:$4 sm:$0xff]   ;;  %v9540_v2 = vsel %vm188_vm0, %v4007_v58, %v11030_v22 }
 0x23a   :  { %3702 = vmatpush1.bf16.msra.mxu1 %v7631_v26  ;;  %v7366_v23 = vunpack.i.l.bf16 %v9516_v25  ;;  %2919 = vmatprep.mubr.bf16.mxu0 %v2241_v32  ;;  %v9545_v26 = vsel %vm188_vm0, %v4004_v52, %v11032_v45  ;;  %v7645_v63 = vld [vmem:[%s10985_s3 + $0x1b4] ss:$8 sps:$4 sm:$0xff]   ;;  %v1954_v32 = vmax.f32 %v8649_v61, %v1859_v33  ;;  %v7367_v58 = vunpack.i.h.bf16 %v9516_v25  ;;  %v7640_v61 = vld [vmem:[%s10985_s3 + $0x4b0] ss:$8 sps:$4 sm:$0xff]  }
 0x23b   :  { %2903 = vmatprep.subr.bf16.mxu0 %v7636_v48  ;;  %3703 = vmatprep.subr.bf16.mxu1 %v7639_v62  ;;  %v11060_v22 = vld [vmem:[#allocation8_spill] sm:$0xff]  ;;  %v11035_v8 = vunpack.i.h.bf16 %v9505_v7 }
 0x23c   :  { %v1865_v14 = vsel %vm1832_vm5, %v11059_v53, %v7366_v23  ;;  %v9554_v21 = vpop.permute.xlu1 %7379  ;;  %v11061_v53 = vunpack.i.h.bf16 %v9304_v29  ;;  %v7643_v25 = vld [vmem:[%s10985_s3 + $0x1b0] ss:$8 sps:$4 sm:$0xff]  }
 0x23d   :  { %v1961_v30 = vmax.f32 %v11060_v22, %v1865_v14  ;;  %2904 = vmatpush1.bf16.msra.mxu0 %v7634_v41  ;;  %v7382_v48 = vunpack.i.h.bf16 %v9554_v21  ;;  %v11033_v62 = vunpack.i.l.bf16 %v9554_v21  ;;  %v9560_v52 = vpop.permute.xlu0 %7374  ;;  %v7362_v41 = vunpack.i.h.bf16 %v9469_v35 }
 0x23e   :  { %v1871_v33 = vsel %vm1832_vm5, %v11061_v53, %v7371_v15  ;;  %3704 = vmatpush1.bf16.msra.mxu1 %v7637_v27  ;;  %v11034_v14 = vunpack.i.h.bf16 %v9560_v52  ;;  %2905 = vmatprep.subr.bf16.mxu0 %v7642_v57  ;;  %v7648_v27 = vld [vmem:[%s10985_s3 + $0x4c4] ss:$8 sps:$4 sm:$0xff]  }
 0x23f   :  { %v9575_v45 = vpack.c.bf16 %v1961_v30, %v1954_v32  ;;  %v1849_v29 = vsel %vm1832_vm5, %v7352_v20, %v11033_v62  ;;  %3705 = vmatprep.subr.bf16.mxu1 %v7645_v63  ;;  %v1855_v57 = vsel %vm1832_vm5, %v7357_v12, %v7382_v48  ;;  %v11062_v53 = vld [vmem:[#allocation14_spill] sm:$0xff]  ;;  %v1968_v22 = vmax.f32 %v11063_v10, %v1871_v33 }
 0x240   :  { %v1942_v30 = vmax.f32 %v11062_v53, %v1849_v29  ;;  %v7651_v32 = vld [vmem:[%s10985_s3 + $0x1c4] ss:$8 sps:$4 sm:$0xff]   ;;  %v1866_v20 = vsel %vm1832_vm5, %v7366_v23, %v7367_v58  ;;  %v1949_v63 = vmax.f32 %v8988_v31, %v1855_v57  ;;  %v1843_v62 = vsel %vm1832_vm5, %v9367_v51, %v11034_v14  ;;  %v7646_v12 = vld [vmem:[%s10985_s3 + $0x4c0] ss:$8 sps:$4 sm:$0xff]  }
 0x241   :  { %2906 = vmatpush1.bf16.msra.mxu0 %v7640_v61  ;;  %v9601_v46 = vpop.permute.xlu0 %7384  ;;  %v1872_v33 = vsel %vm1832_vm5, %v7371_v15, %v11035_v8  ;;  %v11064_v29 = vld [vmem:[#allocation13_spill] sm:$0xff]  ;;  %v11065_v31 = vunpack.i.l.bf16 %v9560_v52  ;;  %v11066_v57 = vunpack.i.l.bf16 %v9331_v34  ;;  %v11067_v61 = vunpack.i.l.bf16 %v9469_v35  ;;  %v11068_v15 = vld [vmem:[#allocation12_spill] sm:$0xff] }
 0x242   :  { %v1935_v23 = vmax.f32 %v11064_v29, %v1843_v62  ;;  %3706 = vmatpush1.bf16.msra.mxu1 %v7643_v25  ;;  %v7649_v51 = vld [vmem:[%s10985_s3 + $0x1c0] ss:$8 sps:$4 sm:$0xff]   ;;  %v9621_v14 = vpack.c.bf16 %v1949_v63, %v1942_v30  ;;  %2907 = vmatprep.subr.bf16.mxu0 %v7648_v27  ;;  %v7654_v34 = vld [vmem:[%s10985_s3 + $0x4d4] ss:$8 sps:$4 sm:$0xff]   ;;  %v1962_v62 = vmax.f32 %v8671_v49, %v1866_v20  ;;  %v7387_v25 = vunpack.i.h.bf16 %v9601_v46  ;;  %v7652_v49 = vld [vmem:[%s10985_s3 + $0x4d0] ss:$8 sps:$4 sm:$0xff]  }
 0x243   :  { %v1837_v53 = vsel %vm1832_vm5, %v11066_v57, %v11065_v31  ;;  %v1860_v10 = vsel %vm1832_vm5, %v11067_v61, %v7362_v41  ;;  %v7386_v29 = vunpack.i.l.bf16 %v9601_v46  ;;  %3707 = vmatprep.subr.bf16.mxu1 %v7651_v32  ;;  %v7657_v35 = vld [vmem:[%s10985_s3 + $0x1d4] ss:$8 sps:$4 sm:$0xff]   ;;  %v1969_v30 = vmax.f32 %v9012_v50, %v1872_v33  ;;  %v7655_v50 = vld [vmem:[%s10985_s3 + $0x1d0] ss:$8 sps:$4 sm:$0xff]  }
 0x244   :  { %v1928_v8 = vmax.f32 %v11068_v15, %v1837_v53  ;;  %v9634_v63 = vpack.c.bf16 %v1968_v22, %v1968_v22  ;;  %v2255_v20 = vrot.slane %v9575_v45, 1  ;;  %v1955_v31 = vmax.f32 %v8654_v1, %v1860_v10  ;;  %v7663_v1 = vld [vmem:[%s10985_s3 + $0x1e4] ss:$8 sps:$4 sm:$0xff]   ;;  %v7666_v61 = vld [vmem:[%s10985_s3 + $0x4f4] ss:$8 sps:$4 sm:$0xff]  }
 0x245   :  { %2908 = vmatpush1.bf16.msra.mxu0 %v7646_v12  ;;  %v1861_v32 = vsel %vm1832_vm5, %v7362_v41, %v7386_v29  ;;  %v1867_v22 = vsel %vm1832_vm5, %v7367_v58, %v7387_v25  ;;  %v9667_v53 = vpack.c.bf16 %v1969_v30, %v1969_v30  ;;  %v7669_v10 = vld [vmem:[%s10985_s3 + $0x1f4] ss:$8 sps:$4 sm:$0xff]  }
 0x246   :  { %v9636_v27 = vpack.c.bf16 %v1935_v23, %v1928_v8  ;;  %3708 = vmatpush1.bf16.msra.mxu1 %v7649_v51  ;;  %v7660_v8 = vld [vmem:[%s10985_s3 + $0x4e4] ss:$8 sps:$4 sm:$0xff]   ;;  %v1956_v12 = vmax.f32 %v8998_v18, %v1861_v32  ;;  %2909 = vmatprep.subr.bf16.mxu0 %v7654_v34  ;;  %v9659_v41 = vpack.c.bf16 %v1962_v62, %v1955_v31  ;;  %v11069_v23 = vrot.slane %v9484_v43, 1  ;;  %v7658_v18 = vld [vmem:[%s10985_s3 + $0x4e0] ss:$8 sps:$4 sm:$0xff]  }
 0x247   :  { %v1963_v33 = vmax.f32 %v9019_v59, %v1867_v22  ;;  %3709 = vmatprep.subr.bf16.mxu1 %v7657_v35  ;;  %v2269_v58 = vrot.slane %v9634_v63, 1  ;;  %v7661_v59 = vld [vmem:[%s10985_s3 + $0x1e0] ss:$8 sps:$4 sm:$0xff]   ;;  %v7664_v62 = vld [vmem:[%s10985_s3 + $0x4f0] ss:$8 sps:$4 sm:$0xff]   ;;  %v4023_v35 = vrot.slane %v9575_v45, 2 }
 0x248   :  { %v9665_v57 = vsel %vm879_vm3, %v11069_v23, %v2255_v20  ;;  %v4025_v34 = vrot.slane %v9659_v41, 2  ;;  %v4039_v30 = vrot.slane %v9667_v53, 2  ;;  %v4037_v31 = vrot.slane %v9634_v63, 2  ;;  %v7675_v32 = vld [vmem:[%s10985_s3 + $0x204] ss:$8 sps:$4 sm:$0xff]  }
 0x249   :  { %2910 = vmatpush1.bf16.msra.mxu0 %v7652_v49  ;;  %v9673_v51 = vpack.c.bf16 %v1963_v33, %v1956_v12  ;;  %v9687_v15 = vsel %vm879_vm3, %v2255_v20, %v2269_v58  ;;  %v7667_v49 = vld [vmem:[%s10985_s3 + $0x1f0] ss:$8 sps:$4 sm:$0xff]   ;;  %v7672_v20 = vld [vmem:[%s10985_s3 + $0x504] ss:$8 sps:$4 sm:$0xff]   ;;  %v11071_v22 = vrot.slane %v9484_v43, 2 }
 0x24a   :  { %3710 = vmatpush1.bf16.msra.mxu1 %v7655_v50  ;;  %2911 = vmatprep.subr.bf16.mxu0 %v7660_v8  ;;  %v11070_v50 = vrot.slane %v9486_v54, 2  ;;  %v9723_v33 = vsel %vm188_vm0, %v4023_v35, %v4037_v31  ;;  %v7670_v23 = vld [vmem:[%s10985_s3 + $0x500] ss:$8 sps:$4 sm:$0xff]  }
 0x24b   :  { %3711 = vmatprep.subr.bf16.mxu1 %v7663_v1  ;;  %v9713_v12 = vsel %vm188_vm0, %v11071_v22, %v4023_v35  ;;  %v9718_v1 = vsel %vm188_vm0, %v4025_v34, %v4039_v30  ;;  %v2257_v35 = vrot.slane %v9659_v41, 1 }
 0x24c   :  { %v9708_v8 = vsel %vm188_vm0, %v11070_v50, %v4025_v34  ;;  %v7679_v34 = vld [vmem:[%s10985_s3 + $0x210] ss:$8 sps:$4 sm:$0xff]   ;;  %v11072_v50 = vrot.slane %v9486_v54, 1 }
 0x24d   :  { %2912 = vmatpush1.bf16.msra.mxu0 %v7658_v18  ;;  %v7673_v18 = vld [vmem:[%s10985_s3 + $0x200] ss:$8 sps:$4 sm:$0xff]  }
 0x24e   :  { %3712 = vmatpush1.bf16.msra.mxu1 %v7661_v59  ;;  %2913 = vmatprep.subr.bf16.mxu0 %v7666_v61  ;;  %v7678_v59 = vld [vmem:[%s10985_s3 + $0x514] ss:$8 sps:$4 sm:$0xff]   ;;  %v2258_v22 = vsel %vm879_vm3, %v11072_v50, %v2257_v35 }
 0x24f   :  { %3713 = vmatprep.subr.bf16.mxu1 %v7669_v10  ;;  %v7681_v61 = vld [vmem:[%s10985_s3 + $0x214] ss:$8 sps:$4 sm:$0xff]   ;;  %v7676_v10 = vld [vmem:[%s10985_s3 + $0x510] ss:$8 sps:$4 sm:$0xff]  }
 0x251   :  { %2914 = vmatpush1.bf16.msra.mxu0 %v7664_v62  ;;  %v7684_v62 = vld [vmem:[%s10985_s3 + $0x524] ss:$8 sps:$4 sm:$0xff]  }
 0x252   :  { %3714 = vmatpush1.bf16.msra.mxu1 %v7667_v49  ;;  %2915 = vmatprep.subr.bf16.mxu0 %v7672_v20  ;;  %v7682_v49 = vld [vmem:[%s10985_s3 + $0x520] ss:$8 sps:$4 sm:$0xff]  }
 0x253   :  { %3754 = vmatprep.subr.bf16.mxu1 %v7675_v32  ;;  %v7685_v20 = vld [vmem:[%s10985_s3 + $0x220] ss:$8 sps:$4 sm:$0xff]   ;;  %v7690_v32 = vld [vmem:[%s10985_s3 + $0x534] ss:$8 sps:$4 sm:$0xff]  }
 0x255   :  { %3716 = vmatmul.mubr.bf16.vlgmr.msra.gmra.mrb[36].mxu1 %v9399_v40  ;;  %2916 = vmatpush1.bf16.msra.mxu0 %v7670_v23  ;;  %v7687_v40 = vld [vmem:[%s10985_s3 + $0x224] ss:$8 sps:$4 sm:$0xff]   ;;  %v7693_v23 = vld [vmem:[%s10985_s3 + $0x234] ss:$8 sps:$4 sm:$0xff]  }
 0x256   :  { %3725 = vmatprep.mubr.bf16.mxu1 %v9486_v54  ;;  %3755 = vmatpush1.bf16.msra.mxu1 %v7673_v18  ;;  %v7688_v18 = vld [vmem:[%s10985_s3 + $0x530] ss:$8 sps:$4 sm:$0xff]  }
 0x257   :  { %2917 = vmatprep.subr.bf16.mxu0 %v7678_v59  ;;  %3756 = vmatprep.subr.bf16.mxu1 %v7681_v61  ;;  %v7691_v54 = vld [vmem:[%s10985_s3 + $0x230] ss:$8 sps:$4 sm:$0xff]   ;;  %v7694_v59 = vld [vmem:[%s10985_s3 + $0x540] ss:$8 sps:$4 sm:$0xff]  }
 0x258   :  { %v7697_v61 = vld [vmem:[%s10985_s3 + $0x240] ss:$8 sps:$4 sm:$0xff]  }
 0x259   :  { %2918 = vmatpush1.bf16.msra.mxu0 %v7676_v10  ;;  %v7702_v10 = vld [vmem:[%s10985_s3 + $0x554] ss:$8 sps:$4 sm:$0xff]  }
 0x25a   :  { %3757 = vmatpush1.bf16.msra.mxu1 %v7679_v34  ;;  %2958 = vmatprep.subr.bf16.mxu0 %v7684_v62  ;;  %v11073_v34 = vunpack.i.h.bf16 %v9043_v38 }
 0x25b   :  { %3758 = vmatprep.subr.bf16.mxu1 %v7687_v40 }
 0x25c   :  { %2920 = vmatmul.mubr.bf16.vlgmr.msra.gmra.mrb[64].mxu0 %v9527_v36  ;;  %v7696_v36 = vld [vmem:[%s10985_s3 + $0x544] ss:$8 sps:$4 sm:$0xff]   ;;  %v1856_v62 = vsel %vm1832_vm5, %v7382_v48, %v11073_v34 }
 0x25d   :  { %3726 = vmatmul.mubr.bf16.gmra.mrb[40].mxu1 %v9484_v43  ;;  %2929 = vmatprep.mubr.bf16.mxu0 %v2258_v22  ;;  %v7699_v43 = vld [vmem:[%s10985_s3 + $0x244] ss:$8 sps:$4 sm:$0xff]   ;;  %v11076_v22 = vunpack.i.h.bf16 %v9017_v3 }
 0x25e   :  { %2959 = vmatpush1.bf16.msra.mxu0 %v7682_v49  ;;  %3735 = vmatprep.mubr.bf16.mxu1 %v9659_v41  ;;  %v2271_v41 = vrot.slane %v9667_v53, 1  ;;  %v7705_v49 = vld [vmem:[%s10985_s3 + $0x254] ss:$8 sps:$4 sm:$0xff]   ;;  %v7720_v34 = vld [vmem:[%s10985_s3 + $0x584] ss:$8 sps:$4 sm:$0xff]  }
 0x25f   :  { %3759 = vmatpush1.bf16.msra.mxu1 %v7685_v20  ;;  %2960 = vmatprep.subr.bf16.mxu0 %v7690_v32  ;;  %v11074_v20 = vunpack.i.l.bf16 %v9043_v38  ;;  %v11075_v32 = vunpack.i.l.bf16 %v9554_v21  ;;  %v7700_v38 = vld [vmem:[%s10985_s3 + $0x550] ss:$8 sps:$4 sm:$0xff]   ;;  %v7708_v21 = vld [vmem:[%s10985_s3 + $0x564] ss:$8 sps:$4 sm:$0xff]  }
 0x260   :  { %3760 = vmatprep.subr.bf16.mxu1 %v7693_v23  ;;  %v2272_v40 = vsel %vm879_vm3, %v2257_v35, %v2271_v41  ;;  %v11077_v23 = vunpack.i.h.bf16 %v9560_v52  ;;  %v11079_v35 = vunpack.i.l.bf16 %v9560_v52 }
 0x261   :  { %v1850_v50 = vsel %vm1832_vm5, %v11075_v32, %v11074_v20  ;;  %v7721_v20 = vld [vmem:[%s10985_s3 + $0x280] ss:$8 sps:$4 sm:$0xff]   ;;  %v7726_v32 = vld [vmem:[%s10985_s3 + $0x594] ss:$8 sps:$4 sm:$0xff]  }
 0x262   :  { %2961 = vmatpush1.bf16.msra.mxu0 %v7688_v18  ;;  %v1844_v48 = vsel %vm1832_vm5, %v11077_v23, %v11076_v22  ;;  %v1943_v52 = vmax.f32 %v8981_v47, %v1850_v50  ;;  %v7714_v47 = vld [vmem:[%s10985_s3 + $0x574] ss:$8 sps:$4 sm:$0xff]   ;;  %v7724_v23 = vld [vmem:[%s10985_s3 + $0x590] ss:$8 sps:$4 sm:$0xff]  }
 0x263   :  { %3761 = vmatpush1.bf16.msra.mxu1 %v7691_v54  ;;  %2962 = vmatprep.subr.bf16.mxu0 %v7696_v36  ;;  %v7711_v54 = vld [vmem:[%s10985_s3 + $0x264] ss:$8 sps:$4 sm:$0xff]   ;;  %v7729_v22 = vld [vmem:[%s10985_s3 + $0x294] ss:$8 sps:$4 sm:$0xff]  }
 0x264   :  { %2930 = vmatmul.mubr.bf16.gmra.mrb[68].mxu0 %v9665_v57  ;;  %3762 = vmatprep.subr.bf16.mxu1 %v7699_v43  ;;  %v11078_v57 = vunpack.i.l.bf16 %v9017_v3  ;;  %v7703_v3 = vld [vmem:[%s10985_s3 + $0x250] ss:$8 sps:$4 sm:$0xff]   ;;  %v1936_v43 = vmax.f32 %v8972_v6, %v1844_v48  ;;  %v7732_v48 = vld [vmem:[%s10985_s3 + $0x5a4] ss:$8 sps:$4 sm:$0xff]  }
 0x265   :  { %3736 = vmatmul.mubr.bf16.gmra.mrb[44].mxu1 %v9575_v45  ;;  %2939 = vmatprep.mubr.bf16.mxu0 %v2272_v40  ;;  %v1950_v45 = vmax.f32 %v8993_v37, %v1856_v62  ;;  %v7709_v37 = vld [vmem:[%s10985_s3 + $0x260] ss:$8 sps:$4 sm:$0xff]  }
 0x266   :  { %v1838_v18 = vsel %vm1832_vm5, %v11079_v35, %v11078_v57  ;;  %2963 = vmatpush1.bf16.msra.mxu0 %v7694_v59  ;;  %3745 = vmatprep.mubr.bf16.mxu1 %v9667_v53  ;;  %v7706_v59 = vld [vmem:[%s10985_s3 + $0x560] ss:$8 sps:$4 sm:$0xff]   ;;  %v7735_v57 = vld [vmem:[%s10985_s3 + $0x2a4] ss:$8 sps:$4 sm:$0xff]  }
 0x267   :  { %3763 = vmatpush1.bf16.msra.mxu1 %v7697_v61  ;;  %2964 = vmatprep.subr.bf16.mxu0 %v7702_v10  ;;  %v1929_v36 = vmax.f32 %v8960_v44, %v1838_v18  ;;  %v9844_v61 = vpack.c.bf16 %v1950_v45, %v1943_v52  ;;  %v7717_v44 = vld [vmem:[%s10985_s3 + $0x274] ss:$8 sps:$4 sm:$0xff]   ;;  %v7712_v10 = vld [vmem:[%s10985_s3 + $0x570] ss:$8 sps:$4 sm:$0xff]   ;;  %v7730_v35 = vld [vmem:[%s10985_s3 + $0x5a0] ss:$8 sps:$4 sm:$0xff]  }
 0x268   :  { %3764 = vmatprep.subr.bf16.mxu1 %v7705_v49  ;;  %v7718_v49 = vld [vmem:[%s10985_s3 + $0x580] ss:$8 sps:$4 sm:$0xff]   ;;  %v7739_v45 = vld [vmem:[%s10985_s3 + $0x2b0] ss:$8 sps:$4 sm:$0xff]   ;;  %v7744_v52 = vld [vmem:[%s10985_s3 + $0x5c4] ss:$8 sps:$4 sm:$0xff]  }
 0x269   :  { %v9847_v6 = vpack.c.bf16 %v1936_v43, %v1929_v36  ;;  %v2246_v40 = vrot.slane %v9844_v61, 1  ;;  %v7733_v18 = vld [vmem:[%s10985_s3 + $0x2a0] ss:$8 sps:$4 sm:$0xff]  }
 0x26a   :  { %2965 = vmatpush1.bf16.msra.mxu0 %v7700_v38  ;;  %v7738_v38 = vld [vmem:[%s10985_s3 + $0x5b4] ss:$8 sps:$4 sm:$0xff]   ;;  %v7742_v36 = vld [vmem:[%s10985_s3 + $0x5c0] ss:$8 sps:$4 sm:$0xff]  }
 0x26b   :  { %3765 = vmatpush1.bf16.msra.mxu1 %v7703_v3  ;;  %2966 = vmatprep.subr.bf16.mxu0 %v7708_v21  ;;  %v2245_v62 = vrot.slane %v9847_v6, 1  ;;  %v7741_v3 = vld [vmem:[%s10985_s3 + $0x2b4] ss:$8 sps:$4 sm:$0xff]   ;;  %v7736_v21 = vld [vmem:[%s10985_s3 + $0x5b0] ss:$8 sps:$4 sm:$0xff]  }
 0x26c   :  { %2940 = vmatmul.mubr.bf16.gmra.mrb[72].mxu0 %v9687_v15  ;;  %3766 = vmatprep.subr.bf16.mxu1 %v7711_v54  ;;  %v7715_v15 = vld [vmem:[%s10985_s3 + $0x270] ss:$8 sps:$4 sm:$0xff]   ;;  %v7747_v54 = vld [vmem:[%s10985_s3 + $0x2c4] ss:$8 sps:$4 sm:$0xff]   ;;  %v7745_v43 = vld [vmem:[%s10985_s3 + $0x2c0] ss:$8 sps:$4 sm:$0xff]  }
 0x26d   :  { %3746 = vmatmul.mubr.bf16.gmra.mrb[56].mxu1 %v9634_v63  ;;  %2949 = vmatprep.mubr.bf16.mxu0 %v2271_v41  ;;  %v7723_v41 = vld [vmem:[%s10985_s3 + $0x284] ss:$8 sps:$4 sm:$0xff]   ;;  %v2247_v50 = vsel %vm879_vm3, %v2245_v62, %v2246_v40  ;;  %v7762_v62 = vld [vmem:[%s10985_s3 + $0x5f4] ss:$8 sps:$4 sm:$0xff]  }
 0x26e   :  { %2967 = vmatpush1.bf16.msra.mxu0 %v7706_v59  ;;  %3786 = vmatprep.mubr.bf16.mxu1 %v9847_v6  ;;  %v7750_v59 = vld [vmem:[%s10985_s3 + $0x5d4] ss:$8 sps:$4 sm:$0xff]  }
 0x26f   :  { %3767 = vmatpush1.bf16.msra.mxu1 %v7709_v37  ;;  %2968 = vmatprep.subr.bf16.mxu0 %v7714_v47  ;;  %v7753_v37 = vld [vmem:[%s10985_s3 + $0x2d4] ss:$8 sps:$4 sm:$0xff]   ;;  %v7748_v47 = vld [vmem:[%s10985_s3 + $0x5d0] ss:$8 sps:$4 sm:$0xff]  }
 0x270   :  { %3768 = vmatprep.subr.bf16.mxu1 %v7717_v44  ;;  %v7751_v44 = vld [vmem:[%s10985_s3 + $0x2d0] ss:$8 sps:$4 sm:$0xff]   ;;  %v7903_v63 = vld [vmem:[%s10985_s3 + $0x8d4] ss:$8 sps:$4 sm:$0xff]  }
 0x272   :  { %2969 = vmatpush1.bf16.msra.mxu0 %v7712_v10  ;;  %v7756_v10 = vld [vmem:[%s10985_s3 + $0x5e4] ss:$8 sps:$4 sm:$0xff]  }
 0x273   :  { %3769 = vmatpush1.bf16.msra.mxu1 %v7715_v15  ;;  %2970 = vmatprep.subr.bf16.mxu0 %v7720_v34  ;;  %v7759_v15 = vld [vmem:[%s10985_s3 + $0x2e4] ss:$8 sps:$4 sm:$0xff]   ;;  %v7754_v34 = vld [vmem:[%s10985_s3 + $0x5e0] ss:$8 sps:$4 sm:$0xff]  }
 0x274   :  { %2950 = vmatmul.mubr.bf16.gmra.mrb[80].mxu0 %v2269_v58  ;;  %3770 = vmatprep.subr.bf16.mxu1 %v7723_v41  ;;  %v7727_v58 = vld [vmem:[%s10985_s3 + $0x290] ss:$8 sps:$4 sm:$0xff]   ;;  %v7757_v41 = vld [vmem:[%s10985_s3 + $0x2e0] ss:$8 sps:$4 sm:$0xff]  }
 0x275   :  { %2990 = vmatprep.mubr.bf16.mxu0 %v2247_v50  ;;  %v11081_v50 = vunpack.i.l.bf16 %v9052_v17 }
 0x276   :  { %2971 = vmatpush1.bf16.msra.mxu0 %v7718_v49  ;;  %v7765_v49 = vld [vmem:[%s10985_s3 + $0x2f4] ss:$8 sps:$4 sm:$0xff]  }
 0x277   :  { %3771 = vmatpush1.bf16.msra.mxu1 %v7721_v20  ;;  %2972 = vmatprep.subr.bf16.mxu0 %v7726_v32  ;;  %v11080_v20 = vunpack.i.h.bf16 %v9052_v17  ;;  %v7771_v17 = vld [vmem:[%s10985_s3 + $0x304] ss:$8 sps:$4 sm:$0xff]  }
 0x278   :  { %3772 = vmatprep.subr.bf16.mxu1 %v7729_v22  ;;  %v1862_v22 = vsel %vm1832_vm5, %v7386_v29, %v11081_v50  ;;  %v7784_v50 = vld [vmem:[%s10985_s3 + $0x660] ss:$8 sps:$4 sm:$0xff]  }
 0x279   :  { %v1868_v32 = vsel %vm1832_vm5, %v7387_v25, %v11080_v20  ;;  %v7768_v25 = vld [vmem:[%s10985_s3 + $0x604] ss:$8 sps:$4 sm:$0xff]   ;;  %v1957_v29 = vmax.f32 %v9002_v39, %v1862_v22  ;;  %v7777_v39 = vld [vmem:[%s10985_s3 + $0x314] ss:$8 sps:$4 sm:$0xff]   ;;  %v7781_v20 = vld [vmem:[%s10985_s3 + $0x650] ss:$8 sps:$4 sm:$0xff]  }
 0x27a   :  { %2973 = vmatpush1.bf16.msra.mxu0 %v7724_v23  ;;  %v7760_v23 = vld [vmem:[%s10985_s3 + $0x5f0] ss:$8 sps:$4 sm:$0xff]   ;;  %v1964_v46 = vmax.f32 %v9024_v0, %v1868_v32  ;;  %v1829_v0 = vpop.permute.xlu1 %1828  ;;  %v7786_v32 = vld [vmem:[%s10985_s3 + $0x664] ss:$8 sps:$4 sm:$0xff]   ;;  %v7789_v22 = vld [vmem:[%s10985_s3 + $0x674] ss:$8 sps:$4 sm:$0xff]  }
 0x27b   :  { %3773 = vmatpush1.bf16.msra.mxu1 %v7727_v58  ;;  %2974 = vmatprep.subr.bf16.mxu0 %v7732_v48  ;;  %v7763_v58 = vld [vmem:[%s10985_s3 + $0x2f0] ss:$8 sps:$4 sm:$0xff]   ;;  %v7766_v48 = vld [vmem:[%s10985_s3 + $0x600] ss:$8 sps:$4 sm:$0xff]  }
 0x27c   :  { %3774 = vmatprep.subr.bf16.mxu1 %v7735_v57  ;;  %v7769_v57 = vld [vmem:[%s10985_s3 + $0x300] ss:$8 sps:$4 sm:$0xff]  }
 0x27e   :  { %2975 = vmatpush1.bf16.msra.mxu0 %v7730_v35  ;;  %v7774_v35 = vld [vmem:[%s10985_s3 + $0x614] ss:$8 sps:$4 sm:$0xff]  }
 0x27f   :  { %3775 = vmatpush1.bf16.msra.mxu1 %v7733_v18  ;;  %2976 = vmatprep.subr.bf16.mxu0 %v7738_v38  ;;  %v9993_v18 = vpack.c.bf16 %v1964_v46, %v1957_v29  ;;  %v7772_v38 = vld [vmem:[%s10985_s3 + $0x610] ss:$8 sps:$4 sm:$0xff]  }
 0x280   :  { %3776 = vmatprep.subr.bf16.mxu1 %v7741_v3  ;;  %v7775_v3 = vld [vmem:[%s10985_s3 + $0x310] ss:$8 sps:$4 sm:$0xff]  }
 0x282   :  { %2977 = vmatpush1.bf16.msra.mxu0 %v7736_v21  ;;  %v1874_v21 = vsel %vm1832_vm5, %v1829_v0, %v9086_v24 }
 0x283   :  { %3777 = vmatpush1.bf16.msra.mxu1 %v7739_v45  ;;  %2978 = vmatprep.subr.bf16.mxu0 %v7744_v52  ;;  %v2242_v45 = vrot.slane %v9636_v27, 1  ;;  %v2243_v52 = vrot.slane %v9621_v14, 1 }
 0x284   :  { %3778 = vmatprep.subr.bf16.mxu1 %v7747_v54  ;;  %v7780_v54 = vld [vmem:[%s10985_s3 + $0x644] ss:$8 sps:$4 sm:$0xff]  }
 0x286   :  { %2979 = vmatpush1.bf16.msra.mxu0 %v7742_v36  ;;  %v2261_v36 = vrot.slane %v9993_v18, 1 }
 0x287   :  { %3779 = vmatpush1.bf16.msra.mxu1 %v7745_v43  ;;  %2980 = vmatprep.subr.bf16.mxu0 %v7750_v59  ;;  %v1971_v43 = vmax.f32 %v9048_v19, %v1874_v21  ;;  %v2244_v59 = vsel %vm879_vm3, %v2242_v45, %v2243_v52  ;;  %v2259_v19 = vrot.slane %v9673_v51, 1  ;;  %v7801_v21 = vld [vmem:[%s10985_s3 + $0x6b4] ss:$8 sps:$4 sm:$0xff]  }
 0x288   :  { %3780 = vmatprep.subr.bf16.mxu1 %v7753_v37  ;;  %v2262_v24 = vsel %vm879_vm3, %v2246_v40, %v2261_v36  ;;  %v11082_v37 = vunpack.i.h.bf16 %v9505_v7  ;;  %v11085_v45 = vld [vmem:[#allocation17_spill] sm:$0xff] }
 0x28a   :  { %2981 = vmatpush1.bf16.msra.mxu0 %v7748_v47  ;;  %v1873_v47 = vsel %vm1832_vm5, %v11082_v37, %v1829_v0  ;;  %v7793_v0 = vld [vmem:[%s10985_s3 + $0x690] ss:$8 sps:$4 sm:$0xff]   ;;  %v7813_v37 = vld [vmem:[%s10985_s3 + $0x6f4] ss:$8 sps:$4 sm:$0xff]  }
 0x28b   :  { %3781 = vmatpush1.bf16.msra.mxu1 %v7751_v44  ;;  %2982 = vmatprep.subr.bf16.mxu0 %v7756_v10  ;;  %v10020_v44 = vpack.c.bf16 %v1971_v43, %v1971_v43  ;;  %v1970_v10 = vmax.f32 %v9014_v28, %v1873_v47  ;;  %v7778_v28 = vld [vmem:[%s10985_s3 + $0x640] ss:$8 sps:$4 sm:$0xff]   ;;  %v7807_v43 = vld [vmem:[%s10985_s3 + $0x6d4] ss:$8 sps:$4 sm:$0xff]   ;;  %v7811_v47 = vld [vmem:[%s10985_s3 + $0x6f0] ss:$8 sps:$4 sm:$0xff]  }
 0x28c   :  { %3782 = vmatprep.subr.bf16.mxu1 %v7759_v15 }
 0x28d   :  { %v2275_v15 = vrot.slane %v10020_v44, 1 }
 0x28e   :  { %2983 = vmatpush1.bf16.msra.mxu0 %v7754_v34  ;;  %v2260_v34 = vsel %vm879_vm3, %v2243_v52, %v2259_v19  ;;  %v7799_v52 = vld [vmem:[%s10985_s3 + $0x6b0] ss:$8 sps:$4 sm:$0xff]  }
 0x28f   :  { %3783 = vmatpush1.bf16.msra.mxu1 %v7757_v41  ;;  %2984 = vmatprep.subr.bf16.mxu0 %v7762_v62  ;;  %v2276_v40 = vsel %vm879_vm3, %v2261_v36, %v2275_v15  ;;  %v10028_v41 = vpack.c.bf16 %v1970_v10, %v1970_v10  ;;  %v7802_v36 = vld [vmem:[%s10985_s3 + $0x6c0] ss:$8 sps:$4 sm:$0xff]  }
 0x290   :  { %3784 = vmatprep.subr.bf16.mxu1 %v7765_v49  ;;  %v7783_v49 = vld [vmem:[%s10985_s3 + $0x654] ss:$8 sps:$4 sm:$0xff]   ;;  %v7814_v10 = vld [vmem:[%s10985_s3 + $0x700] ss:$8 sps:$4 sm:$0xff]  }
 0x291   :  { %v2273_v7 = vrot.slane %v10028_v41, 1 }
 0x292   :  { %2985 = vmatpush1.bf16.msra.mxu0 %v7760_v23  ;;  %v11083_v23 = vld [vmem:[#allocation15_spill] sm:$0xff] }
 0x293   :  { %3785 = vmatpush1.bf16.msra.mxu1 %v7763_v58  ;;  %2986 = vmatprep.subr.bf16.mxu0 %v7768_v25  ;;  %v2274_v62 = vsel %vm879_vm3, %v2259_v19, %v2273_v7  ;;  %v7787_v58 = vld [vmem:[%s10985_s3 + $0x670] ss:$8 sps:$4 sm:$0xff]   ;;  %v7816_v19 = vld [vmem:[%s10985_s3 + $0x704] ss:$8 sps:$4 sm:$0xff]  }
 0x294   :  { %3825 = vmatprep.subr.bf16.mxu1 %v7771_v17  ;;  %v7792_v17 = vld [vmem:[%s10985_s3 + $0x684] ss:$8 sps:$4 sm:$0xff]  }
 0x296   :  { %3787 = vmatmul.mubr.bf16.vlgmr.msra.gmra.mrb[36].mxu1 %v9636_v27  ;;  %2987 = vmatpush1.bf16.msra.mxu0 %v7766_v48 }
 0x297   :  { %3796 = vmatprep.mubr.bf16.mxu1 %v9844_v61  ;;  %3826 = vmatpush1.bf16.msra.mxu1 %v7769_v57  ;;  %v7790_v57 = vld [vmem:[%s10985_s3 + $0x680] ss:$8 sps:$4 sm:$0xff]  }
 0x298   :  { %2988 = vmatprep.subr.bf16.mxu0 %v7774_v35  ;;  %3827 = vmatprep.subr.bf16.mxu1 %v7777_v39  ;;  %v7795_v35 = vld [vmem:[%s10985_s3 + $0x694] ss:$8 sps:$4 sm:$0xff]  }
 0x299   :  { %v11084_v39 = vld [vmem:[#allocation16_spill] sm:$0xff] }
 0x29a   :  { %2989 = vmatpush1.bf16.msra.mxu0 %v7772_v38  ;;  %v7798_v38 = vld [vmem:[%s10985_s3 + $0x6a4] ss:$8 sps:$4 sm:$0xff]  }
 0x29b   :  { %3828 = vmatpush1.bf16.msra.mxu1 %v7775_v3  ;;  %v7796_v3 = vld [vmem:[%s10985_s3 + $0x6a0] ss:$8 sps:$4 sm:$0xff]  }
 0x29c   :  { %4583 = vmatprep.subr.bf16.mxu1 %v7780_v54  ;;  %v7804_v54 = vld [vmem:[%s10985_s3 + $0x6c4] ss:$8 sps:$4 sm:$0xff]  }
 0x29d   :  { %2991 = vmatmul.mubr.bf16.vlgmr.msra.gmra.mrb[64].mxu0 %v2244_v59  ;;  %v7810_v59 = vld [vmem:[%s10985_s3 + $0x6e4] ss:$8 sps:$4 sm:$0xff]  }
 0x29e   :  { %3797 = vmatmul.mubr.bf16.gmra.mrb[40].mxu1 %v9621_v14  ;;  %3000 = vmatprep.mubr.bf16.mxu0 %v2262_v24  ;;  %v7808_v24 = vld [vmem:[%s10985_s3 + $0x6e0] ss:$8 sps:$4 sm:$0xff]  }
 0x29f   :  { %3806 = vmatprep.mubr.bf16.mxu1 %v9993_v18 }
 0x2a5   :  { %3001 = vmatmul.mubr.bf16.gmra.mrb[68].mxu0 %v2260_v34  ;;  %v7817_v34 = vld [vmem:[%s10985_s3 + $0x710] ss:$8 sps:$4 sm:$0xff]  }
 0x2a6   :  { %3807 = vmatmul.mubr.bf16.gmra.mrb[44].mxu1 %v9673_v51  ;;  %3010 = vmatprep.mubr.bf16.mxu0 %v2276_v40  ;;  %v7822_v40 = vld [vmem:[%s10985_s3 + $0x724] ss:$8 sps:$4 sm:$0xff]  }
 0x2a7   :  { %3816 = vmatprep.mubr.bf16.mxu1 %v10020_v44 }
 0x2ad   :  { %3011 = vmatmul.mubr.bf16.gmra.mrb[72].mxu0 %v2274_v62  ;;  %v7825_v62 = vld [vmem:[%s10985_s3 + $0x734] ss:$8 sps:$4 sm:$0xff]  }
 0x2ae   :  { %3817 = vmatmul.mubr.bf16.gmra.mrb[60].mxu1 %v10028_v41  ;;  %3020 = vmatprep.mubr.bf16.mxu0 %v2275_v15  ;;  %v7819_v15 = vld [vmem:[%s10985_s3 + $0x714] ss:$8 sps:$4 sm:$0xff]  }
 0x2af   :  { %3857 = vmatprep.mubr.bf16.mxu1 %v11046_v5 }
 0x2b5   :  { %3021 = vmatmul.mubr.bf16.gmra.mrb[84].mxu0 %v2273_v7  ;;  %v7820_v7 = vld [vmem:[%s10985_s3 + $0x720] ss:$8 sps:$4 sm:$0xff]  }
 0x2b6   :  { %6597 = vmatmul.mubr.msk.bf16.vlgmr.msra.gmra.mrb[36].mxu1 %vm2803_vm4, %v9050_v42 }
 0x2b7   :  { %4584 = vmatpush1.bf16.msra.mxu1 %v7778_v28  ;;  %3867 = vmatprep.mubr.bf16.mxu1 %v11046_v5  ;;  %v7823_v28 = vld [vmem:[%s10985_s3 + $0x730] ss:$8 sps:$4 sm:$0xff]  }
 0x2b8   :  { %4585 = vmatprep.subr.bf16.mxu1 %v7783_v49  ;;  %v7828_v49 = vld [vmem:[%s10985_s3 + $0x744] ss:$8 sps:$4 sm:$0xff]  }
 0x2bb   :  { %4586 = vmatpush1.bf16.msra.mxu1 %v7781_v20  ;;  %v7826_v20 = vld [vmem:[%s10985_s3 + $0x740] ss:$8 sps:$4 sm:$0xff]  }
 0x2bc   :  { %4587 = vmatprep.subr.bf16.mxu1 %v7786_v32  ;;  %v7831_v32 = vld [vmem:[%s10985_s3 + $0x754] ss:$8 sps:$4 sm:$0xff]  }
 0x2be   :  { %6598 = vmatmul.mubr.msk.bf16.gmra.mrb[40].mxu1 %vm2803_vm4, %v11083_v23 }
 0x2bf   :  { %4588 = vmatpush1.bf16.msra.mxu1 %v7784_v50  ;;  %3877 = vmatprep.mubr.bf16.mxu1 %v11046_v5  ;;  %v7829_v50 = vld [vmem:[%s10985_s3 + $0x750] ss:$8 sps:$4 sm:$0xff]  }
 0x2c0   :  { %4589 = vmatprep.subr.bf16.mxu1 %v7789_v22  ;;  %v10063_v25 = vpop.f32.mrb[48].mxu1  ;;  %v7834_v22 = vld [vmem:[%s10985_s3 + $0x764] ss:$8 sps:$4 sm:$0xff]  }
 0x2c1   :  { %v10068_v46 = vpop.f32.mrb[49].mxu1 }
 0x2c2   :  { %v3097_v29 = vpop.f32.mrb[50].mxu1 }
 0x2c3   :  { %4590 = vmatpush1.bf16.msra.mxu1 %v7787_v58  ;;  %v3098_v48 = vpop.f32.mrb[51].mxu1  ;;  %v7832_v58 = vld [vmem:[%s10985_s3 + $0x760] ss:$8 sps:$4 sm:$0xff]   ;;  %v7840_v29 = vld [vmem:[%s10985_s3 + $0x784] ss:$8 sps:$4 sm:$0xff]  }
 0x2c4   :  { %4591 = vmatprep.subr.bf16.mxu1 %v7792_v17 }
 0x2c6   :  { %6599 = vmatmul.mubr.msk.bf16.gmra.mrb[44].mxu1 %vm2803_vm4, %v11084_v39 }
 0x2c7   :  { %4592 = vmatpush1.bf16.msra.mxu1 %v7790_v57  ;;  %3887 = vmatprep.mubr.bf16.mxu1 %v11046_v5 }
 0x2c8   :  { %4593 = vmatprep.subr.bf16.mxu1 %v7795_v35 }
 0x2cb   :  { %4594 = vmatpush1.bf16.msra.mxu1 %v7793_v0  ;;  %v11086_v0 = vrot.slane %v9350_v55, 2  ;;  %v7844_v55 = vld [vmem:[%s10985_s3 + $0x7a0] ss:$8 sps:$4 sm:$0xff]  }
 0x2cc   :  { %4595 = vmatprep.subr.bf16.mxu1 %v7798_v38  ;;  %v7841_v38 = vld [vmem:[%s10985_s3 + $0x790] ss:$8 sps:$4 sm:$0xff]  }
 0x2ce   :  { %6600 = vmatmul.mubr.msk.bf16.gmra.mrb[64].mxu1 %vm2803_vm4, %v11085_v45 }
 0x2cf   :  { %4596 = vmatpush1.bf16.msra.mxu1 %v7796_v3  ;;  %4615 = vmatprep.mubr.bf16.mxu1 %v9286_v4  ;;  %v7805_v4 = vld [vmem:[%s10985_s3 + $0x6d0] ss:$8 sps:$4 sm:$0xff]   ;;  %v7846_v3 = vld [vmem:[%s10985_s3 + $0x7a4] ss:$8 sps:$4 sm:$0xff]  }
 0x2d0   :  { %4597 = vmatprep.subr.bf16.mxu1 %v7801_v21 }
 0x2d3   :  { %4598 = vmatpush1.bf16.msra.mxu1 %v7799_v52 }
 0x2d4   :  { %4599 = vmatprep.subr.bf16.mxu1 %v7804_v54  ;;  %v7849_v54 = vld [vmem:[%s10985_s3 + $0x7b4] ss:$8 sps:$4 sm:$0xff]  }
 0x2d7   :  { %4600 = vmatpush1.bf16.msra.mxu1 %v7802_v36 }
 0x2d8   :  { %4601 = vmatprep.subr.bf16.mxu1 %v7807_v43  ;;  %v11087_v43 = vrot.slane %v9358_v9, 2  ;;  %v7855_v9 = vld [vmem:[%s10985_s3 + $0x7d4] ss:$8 sps:$4 sm:$0xff]  }
 0x2db   :  { %4602 = vmatpush1.bf16.msra.mxu1 %v7805_v4  ;;  %v7847_v4 = vld [vmem:[%s10985_s3 + $0x7b0] ss:$8 sps:$4 sm:$0xff]  }
 0x2dc   :  { %4603 = vmatprep.subr.bf16.mxu1 %v7810_v59  ;;  %v7852_v59 = vld [vmem:[%s10985_s3 + $0x7c4] ss:$8 sps:$4 sm:$0xff]  }
 0x2df   :  { %4604 = vmatpush1.bf16.msra.mxu1 %v7808_v24  ;;  %v7850_v24 = vld [vmem:[%s10985_s3 + $0x7c0] ss:$8 sps:$4 sm:$0xff]  }
 0x2e0   :  { %4605 = vmatprep.subr.bf16.mxu1 %v7813_v37  ;;  %v7858_v37 = vld [vmem:[%s10985_s3 + $0x7e4] ss:$8 sps:$4 sm:$0xff]  }
 0x2e3   :  { %4606 = vmatpush1.bf16.msra.mxu1 %v7811_v47  ;;  %v7856_v47 = vld [vmem:[%s10985_s3 + $0x7e0] ss:$8 sps:$4 sm:$0xff]  }
 0x2e4   :  { %4607 = vmatprep.subr.bf16.mxu1 %v7816_v19  ;;  %v7861_v19 = vld [vmem:[%s10985_s3 + $0x7f4] ss:$8 sps:$4 sm:$0xff]  }
 0x2e7   :  { %4608 = vmatpush1.bf16.msra.mxu1 %v7814_v10  ;;  %v7859_v10 = vld [vmem:[%s10985_s3 + $0x7f0] ss:$8 sps:$4 sm:$0xff]  }
 0x2e8   :  { %4609 = vmatprep.subr.bf16.mxu1 %v7819_v15  ;;  %v7864_v15 = vld [vmem:[%s10985_s3 + $0x804] ss:$8 sps:$4 sm:$0xff]  }
 0x2eb   :  { %4610 = vmatpush1.bf16.msra.mxu1 %v7817_v34  ;;  %v7862_v34 = vld [vmem:[%s10985_s3 + $0x800] ss:$8 sps:$4 sm:$0xff]  }
 0x2ec   :  { %4611 = vmatprep.subr.bf16.mxu1 %v7822_v40  ;;  %v7867_v40 = vld [vmem:[%s10985_s3 + $0x814] ss:$8 sps:$4 sm:$0xff]  }
 0x2ef   :  { %4612 = vmatpush1.bf16.msra.mxu1 %v7820_v7  ;;  %v7865_v7 = vld [vmem:[%s10985_s3 + $0x810] ss:$8 sps:$4 sm:$0xff]  }
 0x2f0   :  { %4613 = vmatprep.subr.bf16.mxu1 %v7825_v62  ;;  %v7870_v62 = vld [vmem:[%s10985_s3 + $0x824] ss:$8 sps:$4 sm:$0xff]  }
 0x2f3   :  { %4614 = vmatpush1.bf16.msra.mxu1 %v7823_v28  ;;  %v7868_v28 = vld [vmem:[%s10985_s3 + $0x820] ss:$8 sps:$4 sm:$0xff]  }
 0x2f4   :  { %4654 = vmatprep.subr.bf16.mxu1 %v7828_v49  ;;  %v7873_v49 = vld [vmem:[%s10985_s3 + $0x834] ss:$8 sps:$4 sm:$0xff]  }
 0x2f6   :  { %4616 = vmatmul.mubr.bf16.vlgmr.msra.gmra.mrb[36].mxu1 %v9291_v56  ;;  %v7837_v56 = vld [vmem:[%s10985_s3 + $0x774] ss:$8 sps:$4 sm:$0xff]  }
 0x2f7   :  { %4625 = vmatprep.mubr.bf16.mxu1 %v9375_v16  ;;  %4655 = vmatpush1.bf16.msra.mxu1 %v7826_v20  ;;  %v7835_v16 = vld [vmem:[%s10985_s3 + $0x770] ss:$8 sps:$4 sm:$0xff]  }
 0x2f8   :  { %4656 = vmatprep.subr.bf16.mxu1 %v7831_v32  ;;  %v7871_v20 = vld [vmem:[%s10985_s3 + $0x830] ss:$8 sps:$4 sm:$0xff]   ;;  %v7876_v32 = vld [vmem:[%s10985_s3 + $0x844] ss:$8 sps:$4 sm:$0xff]  }
 0x2fb   :  { %4657 = vmatpush1.bf16.msra.mxu1 %v7829_v50  ;;  %v7874_v50 = vld [vmem:[%s10985_s3 + $0x840] ss:$8 sps:$4 sm:$0xff]  }
 0x2fc   :  { %4658 = vmatprep.subr.bf16.mxu1 %v7834_v22  ;;  %v7879_v22 = vld [vmem:[%s10985_s3 + $0x854] ss:$8 sps:$4 sm:$0xff]  }
 0x2fe   :  { %4626 = vmatmul.mubr.bf16.gmra.mrb[40].mxu1 %v9396_v11  ;;  %v7838_v11 = vld [vmem:[%s10985_s3 + $0x780] ss:$8 sps:$4 sm:$0xff]  }
 0x2ff   :  { %4635 = vmatprep.mubr.bf16.mxu1 %v9412_v13  ;;  %4659 = vmatpush1.bf16.msra.mxu1 %v7832_v58  ;;  %v7843_v13 = vld [vmem:[%s10985_s3 + $0x794] ss:$8 sps:$4 sm:$0xff]   ;;  %v7877_v58 = vld [vmem:[%s10985_s3 + $0x850] ss:$8 sps:$4 sm:$0xff]  }
 0x300   :  { %v10173_v17 = vpop.f32.mrb[52].mxu1  ;;  %4660 = vmatprep.subr.bf16.mxu1 %v7837_v56  ;;  %v7882_v56 = vld [vmem:[%s10985_s3 + $0x864] ss:$8 sps:$4 sm:$0xff]  }
 0x301   :  { %v10178_v48 = vpop.f32.mrb[53].mxu1 }
 0x302   :  { %v3680_v57 = vpop.f32.mrb[54].mxu1 }
 0x303   :  { %4661 = vmatpush1.bf16.msra.mxu1 %v7835_v16  ;;  %v3681_v35 = vpop.f32.mrb[55].mxu1  ;;  %v7880_v16 = vld [vmem:[%s10985_s3 + $0x860] ss:$8 sps:$4 sm:$0xff]   ;;  %v7888_v57 = vld [vmem:[%s10985_s3 + $0x884] ss:$8 sps:$4 sm:$0xff]  }
 0x304   :  { %4662 = vmatprep.subr.bf16.mxu1 %v7840_v29 }
 0x306   :  { %4636 = vmatmul.mubr.bf16.gmra.mrb[44].mxu1 %v9421_v60 }
 0x307   :  { %4645 = vmatprep.mubr.bf16.mxu1 %v11086_v0  ;;  %4663 = vmatpush1.bf16.msra.mxu1 %v7838_v11 }
 0x308   :  { %4664 = vmatprep.subr.bf16.mxu1 %v7843_v13 }
 0x30b   :  { %v10195_v21 = vpop.f32.mrb[76].mxu0  ;;  %4665 = vmatpush1.bf16.msra.mxu1 %v7841_v38  ;;  %v7889_v38 = vld [vmem:[%s10985_s3 + $0x890] ss:$8 sps:$4 sm:$0xff]  }
 0x30c   :  { %v10197_v52 = vpop.f32.mrb[77].mxu0  ;;  %4666 = vmatprep.subr.bf16.mxu1 %v7846_v3 }
 0x30d   :  { %v2884_v60 = vpop.f32.mrb[78].mxu0 }
 0x30e   :  { %v2885_v36 = vpop.f32.mrb[79].mxu0  ;;  %4646 = vmatmul.mubr.bf16.gmra.mrb[68].mxu1 %v11087_v43  ;;  %v7894_v60 = vld [vmem:[%s10985_s3 + $0x8a4] ss:$8 sps:$4 sm:$0xff]   ;;  %v7897_v43 = vld [vmem:[%s10985_s3 + $0x8b4] ss:$8 sps:$4 sm:$0xff]  }
 0x30f   :  { %4667 = vmatpush1.bf16.msra.mxu1 %v7844_v55  ;;  %4686 = vmatprep.mubr.bf16.mxu1 %v9540_v2  ;;  %v7853_v2 = vld [vmem:[%s10985_s3 + $0x7d0] ss:$8 sps:$4 sm:$0xff]   ;;  %v4014_v36 = vrot.slane %v9844_v61, 2 }
 0x310   :  { %4668 = vmatprep.subr.bf16.mxu1 %v7849_v54  ;;  %v4013_v54 = vrot.slane %v9847_v6, 2  ;;  %v7895_v61 = vld [vmem:[%s10985_s3 + $0x8b0] ss:$8 sps:$4 sm:$0xff]   ;;  %v7900_v6 = vld [vmem:[%s10985_s3 + $0x8c4] ss:$8 sps:$4 sm:$0xff]  }
 0x313   :  { %4669 = vmatpush1.bf16.msra.mxu1 %v7847_v4  ;;  %v7898_v4 = vld [vmem:[%s10985_s3 + $0x8c0] ss:$8 sps:$4 sm:$0xff]  }
 0x314   :  { %4670 = vmatprep.subr.bf16.mxu1 %v7852_v59  ;;  %v7906_v59 = vld [vmem:[%s10985_s3 + $0x8e4] ss:$8 sps:$4 sm:$0xff]  }
 0x317   :  { %4671 = vmatpush1.bf16.msra.mxu1 %v7850_v24  ;;  %v7904_v24 = vld [vmem:[%s10985_s3 + $0x8e0] ss:$8 sps:$4 sm:$0xff]  }
 0x318   :  { %4672 = vmatprep.subr.bf16.mxu1 %v7855_v9  ;;  %v7909_v9 = vld [vmem:[%s10985_s3 + $0x8f4] ss:$8 sps:$4 sm:$0xff]  }
 0x31b   :  { %4673 = vmatpush1.bf16.msra.mxu1 %v7853_v2  ;;  %v7907_v2 = vld [vmem:[%s10985_s3 + $0x8f0] ss:$8 sps:$4 sm:$0xff]  }
 0x31c   :  { %4674 = vmatprep.subr.bf16.mxu1 %v7858_v37  ;;  %v7912_v37 = vld [vmem:[%s10985_s3 + $0x904] ss:$8 sps:$4 sm:$0xff]  }
 0x31f   :  { %4675 = vmatpush1.bf16.msra.mxu1 %v7856_v47  ;;  %v7910_v47 = vld [vmem:[%s10985_s3 + $0x900] ss:$8 sps:$4 sm:$0xff]  }
 0x320   :  { %4676 = vmatprep.subr.bf16.mxu1 %v7861_v19  ;;  %v7915_v19 = vld [vmem:[%s10985_s3 + $0x914] ss:$8 sps:$4 sm:$0xff]  }
 0x323   :  { %4677 = vmatpush1.bf16.msra.mxu1 %v7859_v10  ;;  %v7913_v10 = vld [vmem:[%s10985_s3 + $0x910] ss:$8 sps:$4 sm:$0xff]  }
 0x324   :  { %4678 = vmatprep.subr.bf16.mxu1 %v7864_v15  ;;  %v7918_v15 = vld [vmem:[%s10985_s3 + $0x924] ss:$8 sps:$4 sm:$0xff]  }
 0x327   :  { %4679 = vmatpush1.bf16.msra.mxu1 %v7862_v34  ;;  %v7916_v34 = vld [vmem:[%s10985_s3 + $0x920] ss:$8 sps:$4 sm:$0xff]  }
 0x328   :  { %4680 = vmatprep.subr.bf16.mxu1 %v7867_v40  ;;  %v7921_v40 = vld [vmem:[%s10985_s3 + $0x934] ss:$8 sps:$4 sm:$0xff]  }
 0x32b   :  { %4681 = vmatpush1.bf16.msra.mxu1 %v7865_v7  ;;  %v7919_v7 = vld [vmem:[%s10985_s3 + $0x930] ss:$8 sps:$4 sm:$0xff]  }
 0x32c   :  { %4682 = vmatprep.subr.bf16.mxu1 %v7870_v62 }
 0x32f   :  { %4683 = vmatpush1.bf16.msra.mxu1 %v7868_v28  ;;  %v7924_v28 = vld [vmem:[%s10985_s3 + $0x944] ss:$8 sps:$4 sm:$0xff]  }
 0x330   :  { %4684 = vmatprep.subr.bf16.mxu1 %v7873_v49 }
 0x333   :  { %4685 = vmatpush1.bf16.msra.mxu1 %v7871_v20  ;;  %v4010_v20 = vrot.slane %v9636_v27, 2 }
 0x334   :  { %4725 = vmatprep.subr.bf16.mxu1 %v7876_v32  ;;  %v4011_v32 = vrot.slane %v9621_v14, 2 }
 0x336   :  { %4687 = vmatmul.mubr.bf16.vlgmr.msra.gmra.mrb[36].mxu1 %v9545_v26  ;;  %v7885_v26 = vld [vmem:[%s10985_s3 + $0x874] ss:$8 sps:$4 sm:$0xff]   ;;  %v4012_v27 = vsel %vm188_vm0, %v4010_v20, %v4011_v32 }
 0x337   :  { %4696 = vmatprep.mubr.bf16.mxu1 %v9708_v8  ;;  %4726 = vmatpush1.bf16.msra.mxu1 %v7874_v50  ;;  %v7883_v8 = vld [vmem:[%s10985_s3 + $0x870] ss:$8 sps:$4 sm:$0xff]   ;;  %v7933_v20 = vld [vmem:[%s10987_s5 + $0xb4] ss:$8 sps:$4 sm:$0xff]  }
 0x338   :  { %4727 = vmatprep.subr.bf16.mxu1 %v7879_v22  ;;  %v4029_v22 = vrot.slane %v9993_v18, 2  ;;  %v7925_v18 = vld [vmem:[%s10985_s3 + $0x950] ss:$8 sps:$4 sm:$0xff]  }
 0x33a   :  { %v4030_v14 = vsel %vm188_vm0, %v4014_v36, %v4029_v22 }
 0x33b   :  { %4728 = vmatpush1.bf16.msra.mxu1 %v7877_v58 }
 0x33c   :  { %4729 = vmatprep.subr.bf16.mxu1 %v7882_v56  ;;  %v7922_v56 = vld [vmem:[%s10985_s3 + $0x940] ss:$8 sps:$4 sm:$0xff]  }
 0x33e   :  { %4697 = vmatmul.mubr.bf16.gmra.mrb[40].mxu1 %v9713_v12  ;;  %v7886_v12 = vld [vmem:[%s10985_s3 + $0x880] ss:$8 sps:$4 sm:$0xff]  }
 0x33f   :  { %4706 = vmatprep.mubr.bf16.mxu1 %v9718_v1  ;;  %4730 = vmatpush1.bf16.msra.mxu1 %v7880_v16  ;;  %v7891_v1 = vld [vmem:[%s10985_s3 + $0x894] ss:$8 sps:$4 sm:$0xff]  }
 0x340   :  { %v10287_v29 = vpop.f32.mrb[56].mxu1  ;;  %4731 = vmatprep.subr.bf16.mxu1 %v7885_v26  ;;  %v7927_v16 = vld [vmem:[%s10985_s3 + $0x954] ss:$8 sps:$4 sm:$0xff]  }
 0x341   :  { %v10292_v35 = vpop.f32.mrb[57].mxu1 }
 0x342   :  { %v3751_v11 = vpop.f32.mrb[58].mxu1 }
 0x343   :  { %4732 = vmatpush1.bf16.msra.mxu1 %v7883_v8  ;;  %v3752_v13 = vpop.f32.mrb[59].mxu1 }
 0x344   :  { %4733 = vmatprep.subr.bf16.mxu1 %v7888_v57  ;;  %v4027_v57 = vrot.slane %v9673_v51, 2 }
 0x346   :  { %4707 = vmatmul.mubr.bf16.gmra.mrb[44].mxu1 %v9723_v33 }
 0x347   :  { %4716 = vmatprep.mubr.bf16.mxu1 %v4039_v30  ;;  %4734 = vmatpush1.bf16.msra.mxu1 %v7886_v12  ;;  %v2951_v0 = vpop.f32.mrb[80].mxu0  ;;  %v4043_v12 = vrot.slane %v10020_v44, 2 }
 0x348   :  { %v10307_v3 = vadd.f32 %v2951_v0, %v10195_v21  ;;  %4735 = vmatprep.subr.bf16.mxu1 %v7891_v1  ;;  %v2953_v55 = vpop.f32.mrb[81].mxu0  ;;  %v7892_v21 = vld [vmem:[%s10985_s3 + $0x8a0] ss:$8 sps:$4 sm:$0xff]   ;;  %v4028_v1 = vsel %vm188_vm0, %v4011_v32, %v4027_v57  ;;  %v7936_v32 = vld [vmem:[%s10987_s5 + $0xc4] ss:$8 sps:$4 sm:$0xff]  }
 0x349   :  { %v10313_v33 = vadd.f32 %v2953_v55, %v10197_v52  ;;  %v2955_v53 = vpop.f32.mrb[82].mxu0  ;;  %v4015_v52 = vsel %vm188_vm0, %v4013_v54, %v4014_v36  ;;  %v4044_v0 = vsel %vm188_vm0, %v4029_v22, %v4043_v12  ;;  %v4041_v36 = vrot.slane %v10028_v41, 2  ;;  %v7934_v22 = vld [vmem:[%s10987_s5 + $0xc0] ss:$8 sps:$4 sm:$0xff]  }
 0x34a   :  { %v2956_v30 = vpop.f32.mrb[83].mxu0 }
 0x34b   :  { %4736 = vmatpush1.bf16.msra.mxu1 %v7889_v38 }
 0x34c   :  { %4737 = vmatprep.subr.bf16.mxu1 %v7894_v60 }
 0x34e   :  { %4717 = vmatmul.mubr.bf16.gmra.mrb[72].mxu1 %v4037_v31  ;;  %v7901_v31 = vld [vmem:[%s10985_s3 + $0x8d0] ss:$8 sps:$4 sm:$0xff]   ;;  %s8106_s3 = scalar_lea.vmem %s6141_s22, 32 }
 0x34f   :  { %4738 = vmatpush1.bf16.msra.mxu1 %v7892_v21  ;;  %4757 = vmatprep.mubr.bf16.mxu1 %v4015_v52  ;;  %v4042_v21 = vsel %vm188_vm0, %v4027_v57, %v4041_v36  ;;  %p8107_p0 = scmp.ne.s32.totalorder %s6141_s22, %s8106_s3  ;;  %p8112_p2 = scmp.lt.s32.totalorder %s8106_s3, %s8106_s3 }
 0x350   :  { %4739 = vmatprep.subr.bf16.mxu1 %v7897_v43 }
 0x351   :  { %p8113_p3 = por %p8112_p2, %p8111_p1 }
 0x353   :  { %4740 = vmatpush1.bf16.msra.mxu1 %v7895_v61  ;;  %p8114_p4 = pnand %p8113_p3, %p8107_p0 }
 0x354   :  { %4741 = vmatprep.subr.bf16.mxu1 %v7900_v6 }
 0x357   :  { %4742 = vmatpush1.bf16.msra.mxu1 %v7898_v4 }
 0x358   :  { %4743 = vmatprep.subr.bf16.mxu1 %v7903_v63 }
 0x35b   :  { %4744 = vmatpush1.bf16.msra.mxu1 %v7901_v31 }
 0x35c   :  { %4745 = vmatprep.subr.bf16.mxu1 %v7906_v59 }
 0x35f   :  { %4746 = vmatpush1.bf16.msra.mxu1 %v7904_v24 }
 0x360   :  { %4747 = vmatprep.subr.bf16.mxu1 %v7909_v9 }
 0x363   :  { %4748 = vmatpush1.bf16.msra.mxu1 %v7907_v2  ;;  %v4017_v2 = vrot.slane %v11083_v23, 2  ;;  %v4045_v23 = vrot.slane %v11085_v45, 2 }
 0x364   :  { %4749 = vmatprep.subr.bf16.mxu1 %v7912_v37 }
 0x367   :  { %4750 = vmatpush1.bf16.msra.mxu1 %v7910_v47 }
 0x368   :  { %4751 = vmatprep.subr.bf16.mxu1 %v7915_v19 }
 0x36b   :  { %4752 = vmatpush1.bf16.msra.mxu1 %v7913_v10 }
 0x36c   :  { %4753 = vmatprep.subr.bf16.mxu1 %v7918_v15 }
 0x36f   :  { %4754 = vmatpush1.bf16.msra.mxu1 %v7916_v34 }
 0x370   :  { %v10377_v62 = vpop.f32.mrb[64].mxu0  ;;  %4755 = vmatprep.subr.bf16.mxu1 %v7921_v40 }
 0x371   :  { %v10382_v49 = vpop.f32.mrb[65].mxu0 }
 0x372   :  { %v10386_v50 = vpop.f32.mrb[66].mxu0 }
 0x373   :  { %4756 = vmatpush1.bf16.msra.mxu1 %v7919_v7  ;;  %v10389_v58 = vpop.f32.mrb[67].mxu0  ;;  %v7928_v7 = vld [vmem:[%s10987_s5 + $0xa0] ss:$8 sps:$4 sm:$0xff]  }
 0x374   :  { %4796 = vmatprep.subr.bf16.mxu1 %v7924_v28  ;;  %v7930_v28 = vld [vmem:[%s10987_s5 + $0xa4] ss:$8 sps:$4 sm:$0xff]  }
 0x375   :  { %5223 = vmatprep.subr.bf16.mxu0 %v7930_v28 }
 0x376   :  { %4758 = vmatmul.mubr.bf16.vlgmr.msra.gmra.mrb[36].mxu1 %v4012_v27  ;;  %5224 = vmatpush1.bf16.msra.mxu0 %v7928_v7  ;;  %v7942_v27 = vld [vmem:[%s10987_s5 + $0xe4] ss:$8 sps:$4 sm:$0xff]  }
 0x377   :  { %4767 = vmatprep.mubr.bf16.mxu1 %v4030_v14  ;;  %4797 = vmatpush1.bf16.msra.mxu1 %v7922_v56  ;;  %v7939_v56 = vld [vmem:[%s10987_s5 + $0xd4] ss:$8 sps:$4 sm:$0xff]  }
 0x378   :  { %v10402_v26 = vpop.f32.mrb[68].mxu0  ;;  %4798 = vmatprep.subr.bf16.mxu1 %v7927_v16  ;;  %5225 = vmatprep.subr.bf16.mxu0 %v7933_v20  ;;  %v7937_v16 = vld [vmem:[%s10987_s5 + $0xd0] ss:$8 sps:$4 sm:$0xff]  }
 0x379   :  { %v10404_v8 = vpop.f32.mrb[69].mxu0 }
 0x37a   :  { %v10407_v11 = vpop.f32.mrb[70].mxu0 }
 0x37b   :  { %v10409_v13 = vpop.f32.mrb[71].mxu0  ;;  %4799 = vmatpush1.bf16.msra.mxu1 %v7925_v18  ;;  %v7940_v18 = vld [vmem:[%s10987_s5 + $0xe0] ss:$8 sps:$4 sm:$0xff]  }
 0x37e   :  { %4768 = vmatmul.mubr.bf16.gmra.mrb[40].mxu1 %v4028_v1 }
 0x37f   :  { %4777 = vmatprep.mubr.bf16.mxu1 %v4044_v0 }
 0x380   :  { %v10414_v38 = vpop.f32.mrb[72].mxu0 }
 0x381   :  { %v3818_v55 = vpop.f32.mrb[60].mxu1  ;;  %v10416_v60 = vpop.f32.mrb[73].mxu0 }
 0x382   :  { %v3820_v53 = vpop.f32.mrb[61].mxu1  ;;  %v10418_v51 = vpop.f32.mrb[74].mxu0 }
 0x383   :  { %v3822_v30 = vpop.f32.mrb[62].mxu1  ;;  %v10420_v54 = vpop.f32.mrb[75].mxu0 }
 0x384   :  { %v3823_v44 = vpop.f32.mrb[63].mxu1 }
 0x386   :  { %4778 = vmatmul.mubr.bf16.gmra.mrb[44].mxu1 %v4042_v21 }
 0x387   :  { %4787 = vmatprep.mubr.bf16.mxu1 %v4043_v12 }
 0x388   :  { %v3022_v43 = vpop.f32.mrb[84].mxu0 }
 0x389   :  { %v3023_v52 = vadd.f32 %v3022_v43, %v10307_v3  ;;  %v3024_v61 = vpop.f32.mrb[85].mxu0 }
 0x38a   :  { %v3025_v6 = vadd.f32 %v3024_v61, %v10313_v33  ;;  %v3026_v4 = vpop.f32.mrb[86].mxu0  ;;  %v11088_v61 = vld [vmem:[#allocation9_spill] sm:$0xff] }
 0x38b   :  { %v3094_v63 = vadd.f32 %v10063_v25, %v3023_v52  ;;  %v3027_v31 = vpop.f32.mrb[87].mxu0  ;;  %v4016_v25 = vrot.slane %v9050_v42, 2  ;;  %v4881_v52 = vld [vmem:[%s10986_s4] sm:$0x3] }
 0x38c   :  { %v3096_v59 = vadd.f32 %v10068_v46, %v3025_v6  ;;  %v4031_v46 = vrot.slane %v11084_v39, 2  ;;  %v10489_v6 = vrot.slane %v4881_v52, %v11088_v61 }
 0x38d   :  { %v3677_v24 = vadd.f32 %v10173_v17, %v3094_v63  ;;  %v4018_v47 = vsel %vm188_vm0, %v4016_v25, %v4017_v2  ;;  %v11089_v63 = vld [vmem:[#allocation10_spill] sm:$0xff] }
 0x38e   :  { %v3679_v41 = vadd.f32 %v10178_v48, %v3096_v59  ;;  %4788 = vmatmul.mubr.bf16.gmra.mrb[76].mxu1 %v4041_v36  ;;  %v4032_v17 = vsel %vm188_vm0, %v4017_v2, %v4031_v46  ;;  %v4046_v15 = vsel %vm188_vm0, %v4031_v46, %v4045_v23  ;;  %v10492_v31 = vrot.slane %v4881_v52, %v11089_v63 }
 0x38f   :  { %4828 = vmatprep.mubr.bf16.mxu1 %v11046_v5  ;;  %v3748_v9 = vadd.f32 %v10287_v29, %v3677_v24 }
 0x390   :  { %v3750_v3 = vadd.f32 %v10292_v35, %v3679_v41 }
 0x391   :  { %v3819_v33 = vadd.f32 %v3818_v55, %v3748_v9 }
 0x392   :  { %v3821_v37 = vadd.f32 %v3820_v53, %v3750_v3 }
 0x396   :  { %6801 = vmatmul.mubr.msk.bf16.vlgmr.msra.gmra.mrb[36].mxu1 %vm2803_vm4, %v4018_v47 }
 0x397   :  { %4838 = vmatprep.mubr.bf16.mxu1 %v11046_v5 }
 0x39e   :  { %6802 = vmatmul.mubr.msk.bf16.gmra.mrb[40].mxu1 %vm2803_vm4, %v4032_v17 }
 0x39f   :  { %4848 = vmatprep.mubr.bf16.mxu1 %v11046_v5 }
 0x3a1   :  { %v3889_v48 = vpop.f32.mrb[64].mxu1 }
 0x3a2   :  { %v10443_v29 = vadd.f32 %v3889_v48, %v3819_v33  ;;  %v3891_v42 = vpop.f32.mrb[65].mxu1 }
 0x3a3   :  { %v10445_v35 = vadd.f32 %v3891_v42, %v3821_v37  ;;  %v3893_v19 = vpop.f32.mrb[66].mxu1 }
 0x3a4   :  { %v3894_v10 = vpop.f32.mrb[67].mxu1 }
 0x3a6   :  { %6803 = vmatmul.mubr.msk.bf16.gmra.mrb[44].mxu1 %vm2803_vm4, %v4046_v15 }
 0x3a7   :  { %4858 = vmatprep.mubr.bf16.mxu1 %v11046_v5  ;;  %v7931_v5 = vld [vmem:[%s10987_s5 + $0xb0] ss:$8 sps:$4 sm:$0xff]  }
 0x3a8   :  { %5226 = vmatpush1.bf16.msra.mxu0 %v7931_v5 }
 0x3a9   :  { %5227 = vmatprep.subr.bf16.mxu0 %v7936_v32 }
 0x3ac   :  { %5228 = vmatpush1.bf16.msra.mxu0 %v7934_v22 }
 0x3ad   :  { %5229 = vmatprep.subr.bf16.mxu0 %v7939_v56 }
 0x3ae   :  { %6804 = vmatmul.mubr.msk.bf16.gmra.mrb[80].mxu1 %vm2803_vm4, %v4045_v23 }
 0x3b0   :  { %5230 = vmatpush1.bf16.msra.mxu0 %v7937_v16 }
 0x3b1   :  { %5231 = vmatprep.subr.bf16.mxu0 %v7942_v27 }
 0x3b4   :  { %5232 = vmatpush1.bf16.msra.mxu0 %v7940_v18 }
 0x3e1   :  { %v4647_v39 = vpop.f32.mrb[68].mxu1 }
 0x3e2   :  { %v4649_v34 = vpop.f32.mrb[69].mxu1 }
 0x3e3   :  { %v4651_v40 = vpop.f32.mrb[70].mxu1 }
 0x3e4   :  { %v4652_v45 = vpop.f32.mrb[71].mxu1 }
 0x421   :  { %v4718_v14 = vpop.f32.mrb[72].mxu1 }
 0x422   :  { %v4719_v57 = vadd.f32 %v4718_v14, %v4647_v39  ;;  %v4720_v12 = vpop.f32.mrb[73].mxu1 }
 0x423   :  { %v4721_v1 = vadd.f32 %v4720_v12, %v4649_v34  ;;  %v4722_v0 = vpop.f32.mrb[74].mxu1  ;;  %v7946_v12 = vld [vmem:[%s10987_s5 + $0x100] ss:$8 sps:$4 sm:$0xff]  }
 0x424   :  { %v4723_v55 = vpop.f32.mrb[75].mxu1 }
 0x461   :  { %v4789_v53 = vpop.f32.mrb[76].mxu1 }
 0x462   :  { %v10481_v30 = vadd.f32 %v4789_v53, %v4719_v57  ;;  %v4791_v36 = vpop.f32.mrb[77].mxu1 }
 0x463   :  { %v10483_v44 = vadd.f32 %v4791_v36, %v4721_v1  ;;  %v4793_v21 = vpop.f32.mrb[78].mxu1  ;;  %v7948_v1 = vld [vmem:[%s10987_s5 + $0x104] ss:$8 sps:$4 sm:$0xff]  }
 0x464   :  { %v4794_v43 = vpop.f32.mrb[79].mxu1 }
 0x469   :  { %v4830_v4 = vpop.f32.mrb[36].mxu1 }
 0x46a   :  { %v7063_v59 = vadd.f32 %v4830_v4, %v10377_v62  ;;  %v4832_v24 = vpop.f32.mrb[37].mxu1  ;;  %v7951_v4 = vld [vmem:[%s10987_s5 + $0x114] ss:$8 sps:$4 sm:$0xff]  }
 0x46b   :  { %v7064_v41 = vadd.f32 %v4832_v24, %v10382_v49  ;;  %v4834_v9 = vpop.f32.mrb[38].mxu1  ;;  %v7943_v49 = vld [vmem:[%s10987_s5 + $0xf0] ss:$8 sps:$4 sm:$0xff]  }
 0x46c   :  { %v4893_v3 = vadd.f32 %v7063_v59, %v10489_v6  ;;  %v7065_v2 = vadd.f32 %v4834_v9, %v10386_v50  ;;  %v4836_v33 = vpop.f32.mrb[39].mxu1  ;;  %v7945_v50 = vld [vmem:[%s10987_s5 + $0xf4] ss:$8 sps:$4 sm:$0xff]  }
 0x46d   :  { %v4894_v37 = vadd.f32 %v7064_v41, %v10492_v31  ;;  %v7066_v25 = vadd.f32 %v4836_v33, %v10389_v58  ;;  %5233 = vmatprep.subr.bf16.mxu0 %v7945_v50 }
 0x46e   :  { %v4907_v47 = vmax.f32 %v4893_v3, 0.0  ;;  %v4895_v46 = vadd.f32 %v7065_v2, %v10489_v6  ;;  %5234 = vmatpush1.bf16.msra.mxu0 %v7943_v49 }
 0x46f   :  { %v4908_v17 = vmax.f32 %v4894_v37, 0.0  ;;  %v4896_v23 = vadd.f32 %v7066_v25, %v10492_v31  ;;  %5235 = vmatprep.subr.bf16.mxu0 %v7948_v1 }
 0x470   :  { %v4909_v62 = vmax.f32 %v4895_v46, 0.0  ;;  %v4935_v19 = vrot.slane %v4907_v47, 2 }
 0x471   :  { %v4910_v48 = vmax.f32 %v4896_v23, 0.0  ;;  %v4840_v42 = vpop.f32.mrb[40].mxu1  ;;  %v4938_v39 = vrot.slane %v4908_v17, 2 }
 0x472   :  { %v4936_v10 = vrot.slane %v4909_v62, 2  ;;  %v7067_v58 = vadd.f32 %v4840_v42, %v10402_v26  ;;  %v4842_v15 = vpop.f32.mrb[41].mxu1  ;;  %5236 = vmatpush1.bf16.msra.mxu0 %v7946_v12 }
 0x473   :  { %v4939_v34 = vrot.slane %v4910_v48, 2  ;;  %v7068_v40 = vadd.f32 %v4842_v15, %v10404_v8  ;;  %v4844_v45 = vpop.f32.mrb[42].mxu1  ;;  %5237 = vmatprep.subr.bf16.mxu0 %v7951_v4  ;;  %v7954_v15 = vld [vmem:[%s10987_s5 + $0x124] ss:$8 sps:$4 sm:$0xff]  }
 0x474   :  { %v4897_v7 = vadd.f32 %v7067_v58, %v10489_v6  ;;  %v7069_v28 = vadd.f32 %v4844_v45, %v10407_v11  ;;  %v4846_v20 = vpop.f32.mrb[43].mxu1  ;;  %v4937_v5 = vsel %vm188_vm0, %v4935_v19, %v4936_v10  ;;  %v7952_v58 = vld [vmem:[%s10987_s5 + $0x120] ss:$8 sps:$4 sm:$0xff]  }
 0x475   :  { %v4898_v32 = vadd.f32 %v7068_v40, %v10492_v31  ;;  %v7070_v22 = vadd.f32 %v4846_v20, %v10409_v13  ;;  %v4940_v26 = vsel %vm188_vm0, %v4938_v39, %v4939_v34  ;;  %v10516_v56 = vmax.f32 %v4907_v47, %v4937_v5  ;;  %v7957_v5 = vld [vmem:[%s10987_s5 + $0x134] ss:$8 sps:$4 sm:$0xff]  }
 0x476   :  { %v4911_v16 = vmax.f32 %v4897_v7, 0.0  ;;  %v10519_v8 = vadd.f32 %v7069_v28, %v10489_v6  ;;  %v10521_v27 = vmax.f32 %v4908_v17, %v4940_v26 }
 0x477   :  { %v4912_v14 = vmax.f32 %v4898_v32, 0.0  ;;  %v10524_v11 = vadd.f32 %v7070_v22, %v10492_v31 }
 0x478   :  { %v4941_v18 = vrot.slane %v4911_v16, 2  ;;  %v4913_v57 = vmax.f32 %v10519_v8, 0.0  ;;  %v7388_v13 = vpack.i.bf16 %v10521_v27, %v10516_v56 }
 0x479   :  { %v4943_v0 = vrot.slane %v4912_v14, 2  ;;  %v4914_v55 = vmax.f32 %v10524_v11, 0.0  ;;  %v4850_v53 = vpop.f32.mrb[44].mxu1 }
 0x47a   :  { %v4945_v36 = vrot.slane %v4913_v57, 2  ;;  %v7071_v21 = vadd.f32 %v4850_v53, %v10414_v38  ;;  %v4852_v43 = vpop.f32.mrb[45].mxu1  ;;  %7389 = vrot.lane.b32.xlu0 %v7388_v13, %s8156_s25  ;;  %v4942_v52 = vsel %vm188_vm0, %v4936_v10, %v4941_v18  ;;  %v7949_v38 = vld [vmem:[%s10987_s5 + $0x110] ss:$8 sps:$4 sm:$0xff]  }
 0x47b   :  { %v4947_v59 = vrot.slane %v4914_v55, 2  ;;  %v7072_v24 = vadd.f32 %v4852_v43, %v10416_v60  ;;  %v4854_v41 = vpop.f32.mrb[46].mxu1  ;;  %v4944_v9 = vsel %vm188_vm0, %v4939_v34, %v4943_v0  ;;  %v10544_v3 = vmax.f32 %v4909_v62, %v4942_v52  ;;  %5238 = vmatpush1.bf16.msra.mxu0 %v7949_v38 }
 0x47c   :  { %v4901_v2 = vadd.f32 %v7071_v21, %v10489_v6  ;;  %v7073_v33 = vadd.f32 %v4854_v41, %v10418_v51  ;;  %v4856_v37 = vpop.f32.mrb[47].mxu1  ;;  %v10551_v25 = vmax.f32 %v4910_v48, %v4944_v9  ;;  %v4946_v47 = vsel %vm188_vm0, %v4941_v18, %v4945_v36  ;;  %5239 = vmatprep.subr.bf16.mxu0 %v7954_v15 }
 0x47d   :  { %v4902_v60 = vadd.f32 %v7072_v24, %v10492_v31  ;;  %v7074_v46 = vadd.f32 %v4856_v37, %v10420_v54  ;;  %v4948_v17 = vsel %vm188_vm0, %v4943_v0, %v4947_v59  ;;  %v10557_v23 = vmax.f32 %v4911_v16, %v4946_v47 }
 0x47e   :  { %v4915_v62 = vmax.f32 %v4901_v2, 0.0  ;;  %v4903_v49 = vadd.f32 %v7073_v33, %v10489_v6  ;;  %v7393_v51 = vpack.i.bf16 %v10551_v25, %v10544_v3  ;;  %v10562_v50 = vmax.f32 %v4912_v14, %v4948_v17 }
 0x47f   :  { %v4916_v48 = vmax.f32 %v4902_v60, 0.0  ;;  %v4904_v42 = vadd.f32 %v7074_v46, %v10492_v31  ;;  %5240 = vmatpush1.bf16.msra.mxu0 %v7952_v58 }
 0x480   :  { %v4949_v19 = vrot.slane %v4915_v62, 2  ;;  %v4917_v10 = vmax.f32 %v4903_v49, 0.0  ;;  %7394 = vrot.lane.b32.xlu1 %v7393_v51, %s8156_s25  ;;  %v7398_v54 = vpack.i.bf16 %v10562_v50, %v10557_v23  ;;  %5241 = vmatprep.subr.bf16.mxu0 %v7957_v5 }
 0x481   :  { %v4951_v39 = vrot.slane %v4916_v48, 2  ;;  %v4918_v34 = vmax.f32 %v4904_v42, 0.0  ;;  %v4860_v40 = vpop.f32.mrb[80].mxu1 }
 0x482   :  { %v4953_v45 = vrot.slane %v4917_v10, 2  ;;  %v4861_v7 = vadd.f32 %v4860_v40, %v10481_v30  ;;  %v4862_v28 = vpop.f32.mrb[81].mxu1  ;;  %7399 = vrot.lane.b32.xlu0 %v7398_v54, %s8156_s25  ;;  %v4950_v20 = vsel %vm188_vm0, %v4945_v36, %v4949_v19  ;;  %v7955_v30 = vld [vmem:[%s10987_s5 + $0x130] ss:$8 sps:$4 sm:$0xff]  }
 0x483   :  { %v4955_v32 = vrot.slane %v4918_v34, 2  ;;  %v4863_v22 = vadd.f32 %v4862_v28, %v10483_v44  ;;  %v4864_v26 = vpop.f32.mrb[82].mxu1  ;;  %v4952_v16 = vsel %vm188_vm0, %v4947_v59, %v4951_v39  ;;  %v4979_v8 = vmax.f32 %v4913_v57, %v4950_v20  ;;  %v7960_v44 = vld [vmem:[%s10987_s5 + $0x4] ss:$8 sps:$4 sm:$0xff]   ;;  %5242 = vmatpush1.bf16.msra.mxu0 %v7955_v30 }
 0x484   :  { %v4879_v14 = vadd.f32 %v4861_v7, %v10443_v29  ;;  %v4865_v11 = vpop.f32.mrb[83].mxu1  ;;  %v4980_v18 = vmax.f32 %v4914_v55, %v4952_v16  ;;  %v4954_v13 = vsel %vm188_vm0, %v4949_v19, %v4953_v45  ;;  %5378 = vmatprep.subr.bf16.mxu0 %v7960_v44  ;;  %v7963_v16 = vld [vmem:[%s10987_s5 + $0x14] ss:$8 sps:$4 sm:$0xff]  }
 0x485   :  { %v4880_v12 = vadd.f32 %v4863_v22, %v10445_v35  ;;  %v4956_v57 = vsel %vm188_vm0, %v4951_v39, %v4955_v32  ;;  %v10592_v1 = vmax.f32 %v4915_v62, %v4954_v13  ;;  %v7961_v13 = vld [vmem:[%s10987_s5 + $0x10] ss:$8 sps:$4 sm:$0xff]  }
 0x486   :  { %v4905_v0 = vadd.f32 %v10489_v6, %v4879_v14  ;;  %v7403_v53 = vpack.i.bf16 %v4980_v18, %v4979_v8  ;;  %v10595_v36 = vmax.f32 %v4916_v48, %v4956_v57 }
 0x487   :  { %v4906_v29 = vadd.f32 %v10492_v31, %v4880_v12 }
 0x488   :  { %v4919_v55 = vmax.f32 %v4905_v0, 0.0  ;;  %7404 = vrot.lane.b32.xlu1 %v7403_v53, %s8156_s25  ;;  %v7408_v21 = vpack.i.bf16 %v10595_v36, %v10592_v1  ;;  %v7966_v0 = vld [vmem:[%s10987_s5 + $0x24] ss:$8 sps:$4 sm:$0xff]  }
 0x489   :  { %v4920_v35 = vmax.f32 %v4906_v29, 0.0 }
 0x48a   :  { %v4957_v43 = vrot.slane %v4919_v55, 2  ;;  %7409 = vrot.lane.b32.xlu0 %v7408_v21, %s8156_s25 }
 0x48b   :  { %v4959_v52 = vrot.slane %v4920_v35, 2 }
 0x48c   :  { %v4958_v6 = vsel %vm188_vm0, %v4953_v45, %v4957_v43  ;;  %v7969_v43 = vld [vmem:[%s10987_s5 + $0x34] ss:$8 sps:$4 sm:$0xff]  }
 0x48d   :  { %v4960_v4 = vsel %vm188_vm0, %v4955_v32, %v4959_v52  ;;  %v4983_v59 = vmax.f32 %v4917_v10, %v4958_v6 }
 0x48e   :  { %v4984_v24 = vmax.f32 %v4918_v34, %v4960_v4  ;;  %v7967_v4 = vld [vmem:[%s10987_s5 + $0x30] ss:$8 sps:$4 sm:$0xff]  }
 0x490   :  { %v7413_v31 = vpack.i.bf16 %v4984_v24, %v4983_v59 }
 0x492   :  { %7414 = vrot.lane.b32.xlu1 %v7413_v31, %s8156_s25  ;;  %v7975_v31 = vld [vmem:[%s10987_s5 + $0x54] ss:$8 sps:$4 sm:$0xff]  }
 0x4ec   :  { %v7390_v41 = vpop.permute.xlu0 %7389 }
 0x4ed   :  { %v7392_v37 = vunpack.i.h.bf16 %v7390_v41  ;;  %v7391_v47 = vunpack.i.l.bf16 %v7390_v41  ;;  %v7973_v41 = vld [vmem:[%s10987_s5 + $0x50] ss:$8 sps:$4 sm:$0xff]  }
 0x4ef   :  { %v5022_v62 = vsel %vm5021_vm6, %v7391_v47, %v7392_v37  ;;  %v5041_v42 = vmax.f32 %v10521_v27, %v7392_v37  ;;  %v7984_v37 = vld [vmem:[%s10987_s5 + $0x84] ss:$8 sps:$4 sm:$0xff]   ;;  %v7982_v47 = vld [vmem:[%s10987_s5 + $0x80] ss:$8 sps:$4 sm:$0xff]  }
 0x4f0   :  { %v5040_v58 = vmax.f32 %v10516_v56, %v5022_v62  ;;  %v7988_v62 = vld [vmem:[%s10987_s5 + $0x140] ss:$8 sps:$4 sm:$0xff]  }
 0x4f2   :  { %v7395_v9 = vpop.permute.xlu1 %7394 }
 0x4f3   :  { %v7397_v38 = vunpack.i.h.bf16 %v7395_v9  ;;  %v7396_v2 = vunpack.i.l.bf16 %v7395_v9  ;;  %v7978_v9 = vld [vmem:[%s10987_s5 + $0x64] ss:$8 sps:$4 sm:$0xff]  }
 0x4f4   :  { %v7400_v33 = vpop.permute.xlu0 %7399 }
 0x4f5   :  { %v5023_v60 = vsel %vm5021_vm6, %v7396_v2, %v7397_v38  ;;  %v7402_v46 = vunpack.i.h.bf16 %v7400_v33  ;;  %v7401_v17 = vunpack.i.l.bf16 %v7400_v33  ;;  %v5043_v49 = vmax.f32 %v10551_v25, %v7397_v38  ;;  %v7976_v38 = vld [vmem:[%s10987_s5 + $0x60] ss:$8 sps:$4 sm:$0xff]   ;;  %v7981_v2 = vld [vmem:[%s10987_s5 + $0x74] ss:$8 sps:$4 sm:$0xff]   ;;  %v7979_v33 = vld [vmem:[%s10987_s5 + $0x70] ss:$8 sps:$4 sm:$0xff]  }
 0x4f6   :  { %v5042_v51 = vmax.f32 %v10544_v3, %v5023_v60  ;;  %v7987_v60 = vld [vmem:[%s10987_s5 + $0x94] ss:$8 sps:$4 sm:$0xff]  }
 0x4f7   :  { %v5024_v19 = vsel %vm5021_vm6, %v7401_v17, %v7402_v46  ;;  %v10612_v15 = vpack.c.bf16 %v5043_v49, %v5041_v42  ;;  %v5045_v39 = vmax.f32 %v10562_v50, %v7402_v46  ;;  %v7958_v50 = vld [vmem:[%s10987_s5] ss:$8 sps:$4 sm:$0xff]   ;;  %v7985_v46 = vld [vmem:[%s10987_s5 + $0x90] ss:$8 sps:$4 sm:$0xff]   ;;  %v7990_v17 = vld [vmem:[%s10987_s5 + $0x144] ss:$8 sps:$4 sm:$0xff]  }
 0x4f8   :  { %v10616_v45 = vpack.c.bf16 %v5042_v51, %v5040_v58  ;;  %v5044_v3 = vmax.f32 %v10557_v23, %v5024_v19  ;;  %v7993_v49 = vld [vmem:[%s10987_s5 + $0x154] ss:$8 sps:$4 sm:$0xff]   ;;  %v7991_v51 = vld [vmem:[%s10987_s5 + $0x150] ss:$8 sps:$4 sm:$0xff]   ;;  %v7994_v19 = vld [vmem:[%s10987_s5 + $0x160] ss:$8 sps:$4 sm:$0xff]  }
 0x4f9   :  { %v5108_v56 = vrot.slane %v10612_v15, 2 }
 0x4fa   :  { %v7405_v48 = vpop.permute.xlu1 %7404  ;;  %v5105_v22 = vrot.slane %v10616_v45, 2 }
 0x4fb   :  { %v7407_v10 = vunpack.i.h.bf16 %v7405_v48  ;;  %v7406_v54 = vunpack.i.l.bf16 %v7405_v48  ;;  %v7996_v48 = vld [vmem:[%s10987_s5 + $0x164] ss:$8 sps:$4 sm:$0xff]  }
 0x4fc   :  { %v7410_v7 = vpop.permute.xlu0 %7409 }
 0x4fd   :  { %v5047_v34 = vmax.f32 %v4980_v18, %v7407_v10  ;;  %v5025_v40 = vsel %vm5021_vm6, %v7406_v54, %v7407_v10  ;;  %v7412_v20 = vunpack.i.h.bf16 %v7410_v7  ;;  %v7411_v5 = vunpack.i.l.bf16 %v7410_v7  ;;  %v7999_v54 = vld [vmem:[%s10987_s5 + $0x174] ss:$8 sps:$4 sm:$0xff]   ;;  %v8008_v7 = vld [vmem:[%s10987_s5 + $0x1a4] ss:$8 sps:$4 sm:$0xff]  }
 0x4fe   :  { %v5046_v25 = vmax.f32 %v4979_v8, %v5025_v40  ;;  %v5452_v10 = vrot.slane %v10612_v15, 4  ;;  %v8000_v40 = vld [vmem:[%s10987_s5 + $0x180] ss:$8 sps:$4 sm:$0xff]  }
 0x4ff   :  { %v10619_v27 = vpack.c.bf16 %v5047_v34, %v5045_v39  ;;  %v5026_v14 = vsel %vm5021_vm6, %v7411_v5, %v7412_v20  ;;  %v5049_v44 = vmax.f32 %v10595_v36, %v7412_v20  ;;  %v7964_v36 = vld [vmem:[%s10987_s5 + $0x20] ss:$8 sps:$4 sm:$0xff]   ;;  %v7997_v39 = vld [vmem:[%s10987_s5 + $0x170] ss:$8 sps:$4 sm:$0xff]   ;;  %v8002_v34 = vld [vmem:[%s10987_s5 + $0x184] ss:$8 sps:$4 sm:$0xff]  }
 0x500   :  { %v10621_v28 = vpack.c.bf16 %v5046_v25, %v5044_v3  ;;  %v5048_v53 = vmax.f32 %v10592_v1, %v5026_v14  ;;  %v8005_v3 = vld [vmem:[%s10987_s5 + $0x194] ss:$8 sps:$4 sm:$0xff]   ;;  %v8003_v25 = vld [vmem:[%s10987_s5 + $0x190] ss:$8 sps:$4 sm:$0xff]   ;;  %v8006_v20 = vld [vmem:[%s10987_s5 + $0x1a0] ss:$8 sps:$4 sm:$0xff]  }
 0x501   :  { %v5109_v32 = vrot.slane %v10619_v27, 2  ;;  %v5453_v42 = vrot.slane %v10619_v27, 4  ;;  %v8011_v5 = vld [vmem:[%s10987_s5 + $0x1b4] ss:$8 sps:$4 sm:$0xff]   ;;  %v8018_v14 = vld [vmem:[%s10987_s5 + $0x1e0] ss:$8 sps:$4 sm:$0xff]  }
 0x502   :  { %v5106_v23 = vrot.slane %v10621_v28, 2 }
 0x503   :  { %v5110_v26 = vsel %vm188_vm0, %v5108_v56, %v5109_v32  ;;  %v5454_v58 = vsel %vm5448_vm7, %v5452_v10, %v5453_v42  ;;  %v8009_v56 = vld [vmem:[%s10987_s5 + $0x1b0] ss:$8 sps:$4 sm:$0xff]   ;;  %v8059_v10 = vld [vmem:[%s10987_s5 + $0x2b4] ss:$8 sps:$4 sm:$0xff]  }
 0x504   :  { %6845 = vmatprep.mubr.msk.bf16.mxu0 %vm2803_vm4, %v5110_v26  ;;  %v7415_v8 = vpop.permute.xlu1 %7414  ;;  %v5107_v30 = vsel %vm188_vm0, %v5105_v22, %v5106_v23  ;;  %v8017_v22 = vld [vmem:[%s10987_s5 + $0x1d4] ss:$8 sps:$4 sm:$0xff]   ;;  %v8020_v26 = vld [vmem:[%s10987_s5 + $0x1e4] ss:$8 sps:$4 sm:$0xff]  }
 0x505   :  { %v7417_v11 = vunpack.i.h.bf16 %v7415_v8  ;;  %v7416_v18 = vunpack.i.l.bf16 %v7415_v8  ;;  %5256 = vmatmul.mubr.bf16.vlgmr.msra.gmra.mrb[88].mxu0 %v5107_v30  ;;  %v5449_v30 = vrot.slane %v10616_v45, 4 }
 0x506   :  { %5379 = vmatpush1.bf16.msra.mxu0 %v7958_v50  ;;  %v8012_v50 = vld [vmem:[%s10987_s5 + $0x1c0] ss:$8 sps:$4 sm:$0xff]  }
 0x507   :  { %v5051_v12 = vmax.f32 %v4984_v24, %v7417_v11  ;;  %v5027_v57 = vsel %vm5021_vm6, %v7416_v18, %v7417_v11  ;;  %5380 = vmatprep.subr.bf16.mxu0 %v7963_v16  ;;  %v7970_v24 = vld [vmem:[%s10987_s5 + $0x40] ss:$8 sps:$4 sm:$0xff]   ;;  %v5450_v16 = vrot.slane %v10621_v28, 4  ;;  %v8023_v11 = vld [vmem:[%s10987_s5 + $0x1f4] ss:$8 sps:$4 sm:$0xff]  }
 0x508   :  { %v5050_v29 = vmax.f32 %v4983_v59, %v5027_v57  ;;  %v7972_v59 = vld [vmem:[%s10987_s5 + $0x44] ss:$8 sps:$4 sm:$0xff]  }
 0x509   :  { %v10646_v55 = vpack.c.bf16 %v5051_v12, %v5049_v44  ;;  %v5451_v18 = vsel %vm5448_vm7, %v5449_v30, %v5450_v16  ;;  %v8021_v44 = vld [vmem:[%s10987_s5 + $0x1f0] ss:$8 sps:$4 sm:$0xff]   ;;  %v8026_v12 = vld [vmem:[%s10987_s5 + $0x204] ss:$8 sps:$4 sm:$0xff]  }
 0x50a   :  { %v10648_v21 = vpack.c.bf16 %v5050_v29, %v5048_v53  ;;  %5381 = vmatpush1.bf16.msra.mxu0 %v7961_v13  ;;  %v8024_v53 = vld [vmem:[%s10987_s5 + $0x200] ss:$8 sps:$4 sm:$0xff]   ;;  %v5645_v29 = vrot.slane %v10612_v15, 6 }
 0x50b   :  { %5382 = vmatprep.subr.bf16.mxu0 %v7966_v0  ;;  %v5113_v35 = vrot.slane %v10646_v55, 2  ;;  %v5457_v8 = vrot.slane %v10646_v55, 4  ;;  %v5646_v0 = vrot.slane %v10619_v27, 6 }
 0x50c   :  { %v5111_v52 = vrot.slane %v10648_v21, 2  ;;  %v5455_v57 = vrot.slane %v10648_v21, 4 }
 0x50d   :  { %v5114_v1 = vsel %vm188_vm0, %v5109_v32, %v5113_v35  ;;  %v8014_v32 = vld [vmem:[%s10987_s5 + $0x1c4] ss:$8 sps:$4 sm:$0xff]   ;;  %v5458_v13 = vsel %vm5448_vm7, %v5453_v42, %v5457_v8  ;;  %v5648_v42 = vrot.slane %v10648_v21, 6 }
 0x50e   :  { %5383 = vmatpush1.bf16.msra.mxu0 %v7964_v36  ;;  %6846 = vmatprep.mubr.msk.bf16.mxu0 %vm2803_vm4, %v5114_v1  ;;  %v5112_v6 = vsel %vm188_vm0, %v5106_v23, %v5111_v52  ;;  %v8015_v23 = vld [vmem:[%s10987_s5 + $0x1d0] ss:$8 sps:$4 sm:$0xff]   ;;  %v8029_v36 = vld [vmem:[%s10987_s5 + $0x214] ss:$8 sps:$4 sm:$0xff]   ;;  %v5456_v35 = vsel %vm5448_vm7, %v5450_v16, %v5455_v57  ;;  %v8030_v1 = vld [vmem:[%s10987_s5 + $0x220] ss:$8 sps:$4 sm:$0xff]  }
 0x50f   :  { %5264 = vmatmul.mubr.bf16.gmra.mrb[92].mxu0 %v5112_v6  ;;  %5384 = vmatprep.subr.bf16.mxu0 %v7969_v43  ;;  %v5647_v43 = vsel %vm5641_vm8, %v5645_v29, %v5646_v0  ;;  %v8027_v52 = vld [vmem:[%s10987_s5 + $0x210] ss:$8 sps:$4 sm:$0xff]   ;;  %v8035_v6 = vld [vmem:[%s10987_s5 + $0x234] ss:$8 sps:$4 sm:$0xff]  }
 0x510   :  { %6867 = vmatprep.mubr.msk.bf16.mxu0 %vm2803_vm4, %v10612_v15  ;;  %v8032_v15 = vld [vmem:[%s10987_s5 + $0x224] ss:$8 sps:$4 sm:$0xff]  }
 0x512   :  { %5385 = vmatpush1.bf16.msra.mxu0 %v7967_v4  ;;  %v8033_v4 = vld [vmem:[%s10987_s5 + $0x230] ss:$8 sps:$4 sm:$0xff]  }
 0x513   :  { %5386 = vmatprep.subr.bf16.mxu0 %v7972_v59  ;;  %v8038_v59 = vld [vmem:[%s10987_s5 + $0x244] ss:$8 sps:$4 sm:$0xff]  }
 0x516   :  { %5387 = vmatpush1.bf16.msra.mxu0 %v7970_v24  ;;  %v8036_v24 = vld [vmem:[%s10987_s5 + $0x240] ss:$8 sps:$4 sm:$0xff]  }
 0x517   :  { %5388 = vmatprep.subr.bf16.mxu0 %v7975_v31  ;;  %v8041_v31 = vld [vmem:[%s10987_s5 + $0x254] ss:$8 sps:$4 sm:$0xff]  }
 0x51a   :  { %5389 = vmatpush1.bf16.msra.mxu0 %v7973_v41  ;;  %v8039_v41 = vld [vmem:[%s10987_s5 + $0x250] ss:$8 sps:$4 sm:$0xff]  }
 0x51b   :  { %5390 = vmatprep.subr.bf16.mxu0 %v7978_v9  ;;  %v8044_v9 = vld [vmem:[%s10987_s5 + $0x264] ss:$8 sps:$4 sm:$0xff]  }
 0x51e   :  { %5391 = vmatpush1.bf16.msra.mxu0 %v7976_v38  ;;  %v8042_v38 = vld [vmem:[%s10987_s5 + $0x260] ss:$8 sps:$4 sm:$0xff]  }
 0x51f   :  { %5392 = vmatprep.subr.bf16.mxu0 %v7981_v2  ;;  %v8047_v2 = vld [vmem:[%s10987_s5 + $0x274] ss:$8 sps:$4 sm:$0xff]  }
 0x522   :  { %5393 = vmatpush1.bf16.msra.mxu0 %v7979_v33  ;;  %v8045_v33 = vld [vmem:[%s10987_s5 + $0x270] ss:$8 sps:$4 sm:$0xff]  }
 0x523   :  { %5394 = vmatprep.subr.bf16.mxu0 %v7984_v37  ;;  %v8050_v37 = vld [vmem:[%s10987_s5 + $0x284] ss:$8 sps:$4 sm:$0xff]  }
 0x526   :  { %5395 = vmatpush1.bf16.msra.mxu0 %v7982_v47  ;;  %v5643_v47 = vrot.slane %v10621_v28, 6 }
 0x527   :  { %5396 = vmatprep.subr.bf16.mxu0 %v7987_v60  ;;  %v5650_v60 = vrot.slane %v10646_v55, 6 }
 0x52a   :  { %5397 = vmatpush1.bf16.msra.mxu0 %v7985_v46  ;;  %v5642_v46 = vrot.slane %v10616_v45, 6 }
 0x52b   :  { %5567 = vmatprep.subr.bf16.mxu0 %v7990_v17  ;;  %v8048_v17 = vld [vmem:[%s10987_s5 + $0x280] ss:$8 sps:$4 sm:$0xff]  }
 0x52d   :  { %5411 = vmatmul.mubr.bf16.vlgmr.msra.gmra.mrb[96].mxu0 %v10616_v45  ;;  %v8051_v45 = vld [vmem:[%s10987_s5 + $0x290] ss:$8 sps:$4 sm:$0xff]  }
 0x52e   :  { %6868 = vmatprep.mubr.msk.bf16.mxu0 %vm2803_vm4, %v10619_v27  ;;  %5568 = vmatpush1.bf16.msra.mxu0 %v7988_v62  ;;  %v8053_v62 = vld [vmem:[%s10987_s5 + $0x294] ss:$8 sps:$4 sm:$0xff]  }
 0x52f   :  { %5569 = vmatprep.subr.bf16.mxu0 %v7993_v49  ;;  %v5644_v49 = vsel %vm5641_vm8, %v5642_v46, %v5643_v47 }
 0x532   :  { %5570 = vmatpush1.bf16.msra.mxu0 %v7991_v51  ;;  %v5651_v51 = vsel %vm5641_vm8, %v5646_v0, %v5650_v60 }
 0x533   :  { %5571 = vmatprep.subr.bf16.mxu0 %v7996_v48  ;;  %v8056_v48 = vld [vmem:[%s10987_s5 + $0x2a4] ss:$8 sps:$4 sm:$0xff]  }
 0x535   :  { %5419 = vmatmul.mubr.bf16.gmra.mrb[100].mxu0 %v10621_v28 }
 0x536   :  { %5572 = vmatpush1.bf16.msra.mxu0 %v7994_v19  ;;  %6909 = vmatprep.mubr.msk.bf16.mxu0 %vm2803_vm4, %v5454_v58  ;;  %v8054_v19 = vld [vmem:[%s10987_s5 + $0x2a0] ss:$8 sps:$4 sm:$0xff]   ;;  %v8057_v58 = vld [vmem:[%s10987_s5 + $0x2b0] ss:$8 sps:$4 sm:$0xff]  }
 0x537   :  { %5573 = vmatprep.subr.bf16.mxu0 %v7999_v54  ;;  %v5649_v54 = vsel %vm5641_vm8, %v5643_v47, %v5648_v42 }
 0x53a   :  { %5574 = vmatpush1.bf16.msra.mxu0 %v7997_v39  ;;  %v8062_v39 = vld [vmem:[%s10987_s5 + $0x2c4] ss:$8 sps:$4 sm:$0xff]  }
 0x53b   :  { %5575 = vmatprep.subr.bf16.mxu0 %v8002_v34  ;;  %v8060_v34 = vld [vmem:[%s10987_s5 + $0x2c0] ss:$8 sps:$4 sm:$0xff]  }
 0x53e   :  { %5576 = vmatpush1.bf16.msra.mxu0 %v8000_v40  ;;  %v8065_v40 = vld [vmem:[%s10987_s5 + $0x2d4] ss:$8 sps:$4 sm:$0xff]  }
 0x53f   :  { %5577 = vmatprep.subr.bf16.mxu0 %v8005_v3  ;;  %v8068_v3 = vld [vmem:[%s10987_s5 + $0x2e4] ss:$8 sps:$4 sm:$0xff]  }
 0x542   :  { %5578 = vmatpush1.bf16.msra.mxu0 %v8003_v25  ;;  %v8066_v25 = vld [vmem:[%s10987_s5 + $0x2e0] ss:$8 sps:$4 sm:$0xff]  }
 0x543   :  { %5579 = vmatprep.subr.bf16.mxu0 %v8008_v7  ;;  %v8071_v7 = vld [vmem:[%s10987_s5 + $0x2f4] ss:$8 sps:$4 sm:$0xff]  }
 0x546   :  { %5580 = vmatpush1.bf16.msra.mxu0 %v8006_v20  ;;  %v8069_v20 = vld [vmem:[%s10987_s5 + $0x2f0] ss:$8 sps:$4 sm:$0xff]  }
 0x547   :  { %5581 = vmatprep.subr.bf16.mxu0 %v8011_v5  ;;  %v8074_v5 = vld [vmem:[%s10987_s5 + $0x304] ss:$8 sps:$4 sm:$0xff]  }
 0x54a   :  { %5582 = vmatpush1.bf16.msra.mxu0 %v8009_v56  ;;  %v8072_v56 = vld [vmem:[%s10987_s5 + $0x300] ss:$8 sps:$4 sm:$0xff]  }
 0x54b   :  { %5583 = vmatprep.subr.bf16.mxu0 %v8014_v32  ;;  %v8077_v32 = vld [vmem:[%s10987_s5 + $0x314] ss:$8 sps:$4 sm:$0xff]  }
 0x54e   :  { %5584 = vmatpush1.bf16.msra.mxu0 %v8012_v50  ;;  %v8075_v50 = vld [vmem:[%s10987_s5 + $0x310] ss:$8 sps:$4 sm:$0xff]  }
 0x54f   :  { %5585 = vmatprep.subr.bf16.mxu0 %v8017_v22  ;;  %v6050_v22 = vld [vmem:[%s10989_s7] sm:$0x3] }
 0x550   :  { %6052 = vrot.lane.b32.xlu0 %v6050_v22, %s8157_s2 }
 0x552   :  { %5586 = vmatpush1.bf16.msra.mxu0 %v8015_v23  ;;  %v6093_v23 = vrot.slane %v6050_v22, 5 }
 0x553   :  { %5760 = vmatprep.subr.bf16.mxu0 %v8020_v26 }
 0x554   :  { %6094 = vrot.lane.b32.xlu1 %v6093_v23, %s8157_s2 }
 0x555   :  { %5600 = vmatmul.mubr.bf16.vlgmr.msra.gmra.mrb[104].mxu0 %v5451_v18 }
 0x556   :  { %6910 = vmatprep.mubr.msk.bf16.mxu0 %vm2803_vm4, %v5458_v13  ;;  %5761 = vmatpush1.bf16.msra.mxu0 %v8018_v14 }
 0x557   :  { %5762 = vmatprep.subr.bf16.mxu0 %v8023_v11 }
 0x55a   :  { %5763 = vmatpush1.bf16.msra.mxu0 %v8021_v44 }
 0x55b   :  { %5764 = vmatprep.subr.bf16.mxu0 %v8026_v12 }
 0x55d   :  { %5608 = vmatmul.mubr.bf16.gmra.mrb[108].mxu0 %v5456_v35 }
 0x55e   :  { %5765 = vmatpush1.bf16.msra.mxu0 %v8024_v53  ;;  %6951 = vmatprep.mubr.msk.bf16.mxu0 %vm2803_vm4, %v5647_v43 }
 0x55f   :  { %5766 = vmatprep.subr.bf16.mxu0 %v8029_v36 }
 0x562   :  { %5767 = vmatpush1.bf16.msra.mxu0 %v8027_v52 }
 0x563   :  { %5768 = vmatprep.subr.bf16.mxu0 %v8032_v15 }
 0x566   :  { %5769 = vmatpush1.bf16.msra.mxu0 %v8030_v1 }
 0x567   :  { %5770 = vmatprep.subr.bf16.mxu0 %v8035_v6 }
 0x56a   :  { %5771 = vmatpush1.bf16.msra.mxu0 %v8033_v4 }
 0x56b   :  { %5772 = vmatprep.subr.bf16.mxu0 %v8038_v59 }
 0x56e   :  { %5773 = vmatpush1.bf16.msra.mxu0 %v8036_v24 }
 0x56f   :  { %5774 = vmatprep.subr.bf16.mxu0 %v8041_v31 }
 0x572   :  { %5775 = vmatpush1.bf16.msra.mxu0 %v8039_v41 }
 0x573   :  { %5776 = vmatprep.subr.bf16.mxu0 %v8044_v9 }
 0x576   :  { %5777 = vmatpush1.bf16.msra.mxu0 %v8042_v38 }
 0x577   :  { %5778 = vmatprep.subr.bf16.mxu0 %v8047_v2 }
 0x57a   :  { %5779 = vmatpush1.bf16.msra.mxu0 %v8045_v33 }
 0x57b   :  { %5937 = vmatprep.subr.bf16.mxu0 %v8050_v37 }
 0x57d   :  { %5793 = vmatmul.mubr.bf16.vlgmr.msra.gmra.mrb[112].mxu0 %v5644_v49 }
 0x57e   :  { %6952 = vmatprep.mubr.msk.bf16.mxu0 %vm2803_vm4, %v5651_v51  ;;  %5938 = vmatpush1.bf16.msra.mxu0 %v8048_v17 }
 0x57f   :  { %5939 = vmatprep.subr.bf16.mxu0 %v8053_v62 }
 0x582   :  { %5940 = vmatpush1.bf16.msra.mxu0 %v8051_v45 }
 0x583   :  { %5941 = vmatprep.subr.bf16.mxu0 %v8056_v48 }
 0x585   :  { %5801 = vmatmul.mubr.bf16.gmra.mrb[116].mxu0 %v5649_v54 }
 0x586   :  { %5942 = vmatpush1.bf16.msra.mxu0 %v8054_v19  ;;  %6993 = vmatprep.mubr.msk.bf16.mxu0 %vm2803_vm4, %v10619_v27  ;;  %v8063_v27 = vld [vmem:[%s10987_s5 + $0x2d0] ss:$8 sps:$4 sm:$0xff]   ;;  %v5990_v19 = vld [vmem:[%s10988_s6] sm:$0x3]  ;;  %s8158_s6 = smov 48  }
 0x587   :  { %5943 = vmatprep.subr.bf16.mxu0 %v8059_v10  ;;  %v5995_v10 = vrot.slane %v5990_v19, %v11088_v61 }
 0x58a   :  { %5944 = vmatpush1.bf16.msra.mxu0 %v8057_v58  ;;  %v5999_v58 = vrot.slane %v5990_v19, %v11089_v63 }
 0x58b   :  { %5945 = vmatprep.subr.bf16.mxu0 %v8062_v39 }
 0x58e   :  { %5946 = vmatpush1.bf16.msra.mxu0 %v8060_v34 }
 0x58f   :  { %5947 = vmatprep.subr.bf16.mxu0 %v8065_v40 }
 0x592   :  { %5948 = vmatpush1.bf16.msra.mxu0 %v8063_v27 }
 0x593   :  { %5949 = vmatprep.subr.bf16.mxu0 %v8068_v3 }
 0x596   :  { %5950 = vmatpush1.bf16.msra.mxu0 %v8066_v25 }
 0x597   :  { %5951 = vmatprep.subr.bf16.mxu0 %v8071_v7 }
 0x59a   :  { %5952 = vmatpush1.bf16.msra.mxu0 %v8069_v20 }
 0x59b   :  { %5953 = vmatprep.subr.bf16.mxu0 %v8074_v5 }
 0x59e   :  { %5954 = vmatpush1.bf16.msra.mxu0 %v8072_v56 }
 0x59f   :  { %5955 = vmatprep.subr.bf16.mxu0 %v8077_v32 }
 0x5a2   :  { %5956 = vmatpush1.bf16.msra.mxu0 %v8075_v50 }
 0x5a5   :  { %5970 = vmatmul.mubr.bf16.vlgmr.msra.gmra.mrb[120].mxu0 %v10621_v28 }
 0x5a6   :  { %6994 = vmatprep.mubr.msk.bf16.mxu0 %vm2803_vm4, %v10646_v55 }
 0x5ad   :  { %5978 = vmatmul.mubr.bf16.gmra.mrb[124].mxu0 %v10648_v21 }
 0x5d8   :  { %v5257_v26 = vpop.f32.mrb[88].mxu0 }
 0x5d9   :  { %v5259_v16 = vpop.f32.mrb[89].mxu0 }
 0x5da   :  { %v5261_v8 = vpop.f32.mrb[90].mxu0 }
 0x5db   :  { %v5262_v30 = vpop.f32.mrb[91].mxu0 }
 0x5e2   :  { %v5265_v14 = vpop.f32.mrb[92].mxu0 }
 0x5e3   :  { %v5266_v11 = vpop.f32.mrb[93].mxu0 }
 0x5e4   :  { %v5267_v28 = vpop.f32.mrb[94].mxu0 }
 0x5e5   :  { %v5269_v18 = vpop.f32.mrb[95].mxu0 }
 0x600   :  { %v5412_v13 = vpop.f32.mrb[96].mxu0 }
 0x601   :  { %v5413_v55 = vadd.f32 %v5412_v13, %v5257_v26  ;;  %v5414_v44 = vpop.f32.mrb[97].mxu0 }
 0x602   :  { %v5415_v12 = vadd.f32 %v5414_v44, %v5259_v16  ;;  %v5416_v57 = vpop.f32.mrb[98].mxu0 }
 0x603   :  { %v5417_v0 = vpop.f32.mrb[99].mxu0 }
 0x608   :  { %v5420_v53 = vpop.f32.mrb[100].mxu0 }
 0x609   :  { %v5421_v29 = vpop.f32.mrb[101].mxu0 }
 0x60a   :  { %v5422_v36 = vpop.f32.mrb[102].mxu0 }
 0x60b   :  { %v5423_v35 = vadd.f32 %v5422_v36, %v5267_v28  ;;  %v5424_v21 = vpop.f32.mrb[103].mxu0 }
 0x60c   :  { %v5425_v43 = vadd.f32 %v5424_v21, %v5269_v18 }
 0x628   :  { %v5601_v52 = vpop.f32.mrb[104].mxu0 }
 0x629   :  { %v5616_v15 = vadd.f32 %v5601_v52, %v5413_v55  ;;  %v5603_v1 = vpop.f32.mrb[105].mxu0 }
 0x62a   :  { %v5617_v6 = vadd.f32 %v5603_v1, %v5415_v12  ;;  %v5605_v4 = vpop.f32.mrb[106].mxu0 }
 0x62b   :  { %v5606_v59 = vpop.f32.mrb[107].mxu0 }
 0x630   :  { %v5609_v24 = vpop.f32.mrb[108].mxu0 }
 0x631   :  { %v5610_v31 = vpop.f32.mrb[109].mxu0 }
 0x632   :  { %v5611_v41 = vpop.f32.mrb[110].mxu0 }
 0x633   :  { %v5618_v9 = vadd.f32 %v5611_v41, %v5423_v35  ;;  %v5613_v38 = vpop.f32.mrb[111].mxu0 }
 0x634   :  { %v5619_v2 = vadd.f32 %v5613_v38, %v5425_v43 }
 0x650   :  { %v5794_v33 = vpop.f32.mrb[112].mxu0 }
 0x651   :  { %v5809_v37 = vadd.f32 %v5794_v33, %v5616_v15  ;;  %v5796_v47 = vpop.f32.mrb[113].mxu0 }
 0x652   :  { %v5810_v60 = vadd.f32 %v5796_v47, %v5617_v6  ;;  %v5798_v46 = vpop.f32.mrb[114].mxu0  ;;  %v6053_v47 = vpop.permute.xlu0 %6052 }
 0x653   :  { %v5799_v17 = vpop.f32.mrb[115].mxu0 }
 0x658   :  { %v5802_v62 = vpop.f32.mrb[116].mxu0 }
 0x659   :  { %v5803_v49 = vpop.f32.mrb[117].mxu0  ;;  %v6095_v62 = vpop.permute.xlu1 %6094 }
 0x65a   :  { %v5804_v51 = vpop.f32.mrb[118].mxu0 }
 0x65b   :  { %v5811_v45 = vadd.f32 %v5804_v51, %v5618_v9  ;;  %v5806_v48 = vpop.f32.mrb[119].mxu0 }
 0x65c   :  { %v5812_v42 = vadd.f32 %v5806_v48, %v5619_v2 }
 0x678   :  { %v5971_v54 = vpop.f32.mrb[120].mxu0 }
 0x679   :  { %v5986_v39 = vadd.f32 %v5971_v54, %v5809_v37  ;;  %v5973_v34 = vpop.f32.mrb[121].mxu0 }
 0x67a   :  { %v5987_v40 = vadd.f32 %v5973_v34, %v5810_v60  ;;  %v5975_v27 = vpop.f32.mrb[122].mxu0 }
 0x67b   :  { %v10924_v3 = vadd.f32 %v5995_v10, %v5986_v39  ;;  %v5976_v25 = vpop.f32.mrb[123].mxu0 }
 0x67c   :  { %v6003_v7 = vadd.f32 %v5999_v58, %v5987_v40 }
 0x67d   :  { %v6010_v20 = vand.u32 2147483647, %v10924_v3  ;;  %v6006_v15 = vmax.f32 %v10924_v3, 0.0 }
 0x67e   :  { %v6011_v5 = vand.u32 2147483647, %v6003_v7  ;;  %v6007_v6 = vmax.f32 %v6003_v7, 0.0 }
 0x67f   :  { %v6014_v56 = vsub.f32 0.0, %v6010_v20 }
 0x680   :  { %v6015_v32 = vsub.f32 0.0, %v6011_v5  ;;  %v5979_v50 = vpop.f32.mrb[124].mxu0 }
 0x681   :  { %v6018_v22 = vmul.f32 1.442695, %v6014_v56  ;;  %v5980_v23 = vpop.f32.mrb[125].mxu0 }
 0x682   :  { %v6020_v61 = vmul.f32 1.442695, %v6015_v32  ;;  %v5981_v26 = vpop.f32.mrb[126].mxu0 }
 0x683   :  { %8078 = vpow2.f32 %v6018_v22  ;;  %v5988_v63 = vadd.f32 %v5981_v26, %v5811_v45  ;;  %v5983_v16 = vpop.f32.mrb[127].mxu0 }
 0x684   :  { %8080 = vpow2.f32 %v6020_v61  ;;  %v5989_v8 = vadd.f32 %v5983_v16, %v5812_v42 }
 0x685   :  { %v10927_v30 = vadd.f32 %v5995_v10, %v5988_v63 }
 0x686   :  { %v6005_v14 = vadd.f32 %v5999_v58, %v5989_v8 }
 0x687   :  { %v6012_v11 = vand.u32 2147483647, %v10927_v30  ;;  %v6008_v9 = vmax.f32 %v10927_v30, 0.0 }
 0x688   :  { %v6013_v28 = vand.u32 2147483647, %v6005_v14  ;;  %v6009_v2 = vmax.f32 %v6005_v14, 0.0 }
 0x689   :  { %v6016_v18 = vsub.f32 0.0, %v6012_v11 }
 0x68a   :  { %v6017_v13 = vsub.f32 0.0, %v6013_v28 }
 0x68b   :  { %v6022_v55 = vmul.f32 1.442695, %v6016_v18 }
 0x68c   :  { %v6024_v44 = vmul.f32 1.442695, %v6017_v13 }
 0x68d   :  { %v8079_v12 = vpop.eup %8078  ;;  %8082 = vpow2.f32 %v6022_v55 }
 0x68e   :  { %v8081_v57 = vpop.eup %8080  ;;  %8084 = vpow2.f32 %v6024_v44  ;;  %v6026_v0 = vadd.f32 1.0, %v8079_v12 }
 0x68f   :  { %v6027_v53 = vadd.f32 1.0, %v8081_v57 }
 0x690   :  { %8086 = vlog2.f32 %v6026_v0 }
 0x691   :  { %8088 = vlog2.f32 %v6027_v53 }
 0x697   :  { %v8083_v29 = vpop.eup %8082 }
 0x698   :  { %v8085_v36 = vpop.eup %8084  ;;  %v6028_v35 = vadd.f32 1.0, %v8083_v29 }
 0x699   :  { %v6029_v21 = vadd.f32 1.0, %v8085_v36 }
 0x69a   :  { %v8087_v43 = vpop.eup %8086  ;;  %8090 = vlog2.f32 %v6028_v35 }
 0x69b   :  { %v8089_v52 = vpop.eup %8088  ;;  %8092 = vlog2.f32 %v6029_v21  ;;  %v6031_v1 = vmul.f32 0.6931472, %v8087_v43 }
 0x69c   :  { %v6033_v4 = vmul.f32 0.6931472, %v8089_v52 }
 0x69d   :  { %v6038_v59 = vadd.f32 %v6031_v1, %v6006_v15 }
 0x69e   :  { %v6039_v24 = vadd.f32 %v6033_v4, %v6007_v6 }
 0x69f   :  { %6070 = vrot.lane.b32.xlu0 %v6038_v59, %s8158_s6  ;;  %8094 = vlog2.f32 %v6038_v59  ;;  %v6055_v46 = vmul.f32 %v6053_v47, %v6038_v59 }
 0x6a0   :  { %6072 = vrot.lane.b32.xlu1 %v6039_v24, %s8158_s6  ;;  %8096 = vlog2.f32 %v6039_v24  ;;  %v6056_v17 = vmul.f32 %v6053_v47, %v6039_v24 }
 0x6a4   :  { %v8091_v31 = vpop.eup %8090 }
 0x6a5   :  { %v8093_v41 = vpop.eup %8092  ;;  %v6035_v38 = vmul.f32 0.6931472, %v8091_v31 }
 0x6a6   :  { %v6037_v33 = vmul.f32 0.6931472, %v8093_v41 }
 0x6a7   :  { %v6040_v37 = vadd.f32 %v6035_v38, %v6008_v9 }
 0x6a8   :  { %v6041_v60 = vadd.f32 %v6037_v33, %v6009_v2 }
 0x6a9   :  { %6111 = vrot.lane.b32.xlu0 %v6040_v37, %s8158_s6  ;;  %8098 = vlog2.f32 %v6040_v37  ;;  %v6097_v49 = vmul.f32 %v6095_v62, %v6040_v37  ;;  %v8095_v51 = vpop.eup %8094 }
 0x6aa   :  { %6113 = vrot.lane.b32.xlu1 %v6041_v60, %s8158_s6  ;;  %8100 = vlog2.f32 %v6041_v60  ;;  %v6098_v45 = vmul.f32 %v6095_v62, %v6041_v60  ;;  %v8097_v48 = vpop.eup %8096  ;;  %v6043_v42 = vmul.f32 0.6931472, %v8095_v51 }
 0x6ab   :  { %v6045_v10 = vmul.f32 0.6931472, %v8097_v48 }
 0x6ad   :  { %6059 = vrot.lane.b32.xlu0 %v6055_v46, %s8158_s6 }
 0x6ae   :  { %6061 = vrot.lane.b32.xlu1 %v6056_v17, %s8158_s6 }
 0x6b1   :  { %6101 = vrot.lane.b32.xlu0 %v6097_v49, %s8158_s6 }
 0x6b2   :  { %6103 = vrot.lane.b32.xlu1 %v6098_v45, %s8158_s6 }
 0x6b3   :  { %v8099_v19 = vpop.eup %8098 }
 0x6b4   :  { %v8101_v54 = vpop.eup %8100  ;;  %v6047_v58 = vmul.f32 0.6931472, %v8099_v19 }
 0x6b5   :  { %6082 = vrot.lane.b32.xlu0 %v6043_v42, %s8158_s6  ;;  %v6049_v39 = vmul.f32 0.6931472, %v8101_v54 }
 0x6b6   :  { %6084 = vrot.lane.b32.xlu1 %v6045_v10, %s8158_s6 }
 0x6b9   :  { %6123 = vrot.lane.b32.xlu0 %v6047_v58, %s8158_s6 }
 0x6ba   :  { %6125 = vrot.lane.b32.xlu1 %v6049_v39, %s8158_s6 }
 0x711   :  { %v6071_v34 = vpop.permute.xlu0 %6070 }
 0x712   :  { %v6073_v40 = vpop.permute.xlu1 %6072 }
 0x713   :  { %v6074_v27 = vsel %vm6063_vm9, %v6071_v34, %v6073_v40 }
 0x714   :  { %8102 = vrcp.f32 %v6074_v27 }
 0x71b   :  { %v6112_v25 = vpop.permute.xlu0 %6111 }
 0x71c   :  { %v6114_v7 = vpop.permute.xlu1 %6113 }
 0x71d   :  { %v6115_v20 = vsel %vm6063_vm9, %v6112_v25, %v6114_v7 }
 0x71e   :  { %8104 = vrcp.f32 %v6115_v20  ;;  %v8103_v26 = vpop.eup %8102 }
 0x71f   :  { %v6060_v5 = vpop.permute.xlu0 %6059 }
 0x720   :  { %v6062_v56 = vpop.permute.xlu1 %6061 }
 0x721   :  { %v6064_v32 = vsel %vm6063_vm9, %v6060_v5, %v6062_v56 }
 0x722   :  { %v6066_v50 = vadd.f32 %v6064_v32, %v10924_v3 }
 0x723   :  { %v6102_v22 = vpop.permute.xlu0 %6101 }
 0x724   :  { %v6067_v23 = vsub.f32 %v6066_v50, %v10924_v3  ;;  %v6104_v61 = vpop.permute.xlu1 %6103  ;;  %6091 = vst.msk [vmem:[#allocation2] sm:$0x1] %vm6090_vm10, %v6066_v50 }
 0x725   :  { %v6105_v63 = vsel %vm6063_vm9, %v6102_v22, %v6104_v61 }
 0x726   :  { %v6107_v16 = vadd.f32 %v6105_v63, %v10927_v30  ;;  %v6077_v8 = vmul.f32 %v8103_v26, %v6067_v23 }
 0x727   :  { %v6083_v14 = vpop.permute.xlu0 %6082 }
 0x728   :  { %v8105_v11 = vpop.eup %8104  ;;  %v6108_v28 = vsub.f32 %v6107_v16, %v10927_v30  ;;  %v6085_v18 = vpop.permute.xlu1 %6084  ;;  %v6078_v13 = vmul.f32 -0.5, %v6077_v8  ;;  %6132 = vst.msk [vmem:[#allocation2 - $0x3] sm:$0x10] %vm6131_vm11, %v6107_v16 }
 0x729   :  { %8117 = shalt.err (!%p8114_p4)
}
 0x72a   :  { %s8118_s24 = scalar_lea.hbm %s10990_s8, 32 }
 0x72b   :  { %p8119_p5 = scmp.ne.s32.totalorder %s10990_s8, %s8118_s24  ;;  %p8122_p6 = scmp.lt.u32.totalorder %s8118_s24, %s10990_s8 }
 0x72d   :  { %p8124_p7 = pnand %p8122_p6, %p8119_p5 }
 0x72f   :  { %8127 = shalt.err (!%p8124_p7)
}
 0x730   :  { %6143 = dma.vmem_to_hbm [thread:$0]  %s6141_s22, 32, %s10990_s8, [#allocation3]   ;;  %v6079_v3 = vmul.f32 %v6078_v13, %v6077_v8  ;;  %v6118_v30 = vmul.f32 %v8105_v11, %v6108_v28  ;;  %v6086_v55 = vsel %vm6063_vm9, %v6083_v14, %v6085_v18  ;;  %v6124_v12 = vpop.permute.xlu0 %6123  ;;  %v6126_v57 = vpop.permute.xlu1 %6125 }
 0x731   :  { %v6127_v36 = vsel %vm6063_vm9, %v6124_v12, %v6126_v57  ;;  %s8160_s10 = smov [#allocation4]  }
 0x732   :  { %v6088_v44 = vsub.f32 %v6079_v3, %v6086_v55  ;;  %v6119_v0 = vmul.f32 -0.5, %v6118_v30  ;;  %s6150_s11 = sshll.u32 %s8160_s10, 4  ;;  %s6151_s11 = int_to_ptr.vmem [resolvable:$true] %s6150_s11 }
 0x733   :  { %s8128_s8 = scalar_lea.vmem %s6151_s11, 32  ;;  %p8133_p9 = scmp.lt.s32.totalorder %s6151_s11, %s6151_s11 }
 0x734   :  { %v6995_v53 = vadd.f32 -0.9189385, %v6088_v44  ;;  %v6120_v29 = vmul.f32 %v6119_v0, %v6118_v30  ;;  %p8129_p8 = scmp.ne.s32.totalorder %s6151_s11, %s8128_s8  ;;  %p8134_p10 = scmp.lt.s32.totalorder %s8128_s8, %s8128_s8 }
 0x736   :  { %v6129_v35 = vsub.f32 %v6120_v29, %v6127_v36  ;;  %6092 = vst.msk [vmem:[#allocation4] sm:$0x1] %vm6090_vm10, %v6995_v53  ;;  %p8135_p11 = por %p8134_p10, %p8133_p9 }
 0x738   :  { %v6996_v21 = vadd.f32 -0.9189385, %v6129_v35  ;;  %p8136_p12 = pnand %p8135_p11, %p8129_p8 }
 0x73a   :  { %6133 = vst.msk [vmem:[#allocation4 - $0x3] sm:$0x10] %vm6131_vm11, %v6996_v21 }
 0x73b   :  { %8139 = shalt.err (!%p8136_p12)
}
 0x73c   :  { %s8140_s14 = scalar_lea.hbm %s10991_s9, 32 }
 0x73d   :  { %p8141_p13 = scmp.ne.s32.totalorder %s10991_s9, %s8140_s14  ;;  %p8144_p0 = scmp.lt.u32.totalorder %s8140_s14, %s10991_s9 }
 0x73f   :  { %p8146_p1 = pnand %p8144_p0, %p8141_p13 }
 0x741   :  { %8149 = shalt.err (!%p8146_p1)
}
 0x742   :  { %6153 = dma.vmem_to_hbm [thread:$0]  %s6151_s11, 32, %s10991_s9, [#allocation5]  }
 0x743   :  { %8150 = dma.done.wait [#allocation3], 32  }
 0x744   :  { %8151 = vsyncadd [#allocation3], 4294967264 }
 0x745   :  { %8152 = dma.done.wait [#allocation5], 32  }
 0x746   :  { %8153 = vsyncadd [#allocation5], 4294967264 }
 0x747   :  { %6160 = vsyncpa [#allocation3], 1 }
 0x748   :  { %6161 = vsyncpa [#allocation5], 1 }

</bundles_post_ra>
